<compile_context>
chip_gen: v7x
topology: tpu7x:2x2x1
jax: 0.10.0
libtpu: 0.0.40
codegen_flags: <defaults>
</compile_context>

<pallas_src>
import functools

import jax
import jax.numpy as jnp
from jax import lax
from jax.experimental import pallas as pl
from jax.experimental.pallas import tpu as pltpu


def _fold_weight_norm(v, g):
    """PyTorch weight_norm (dim=0): w = g * v / ||v||_2 (norm over input dim)."""
    v = v.astype(jnp.float32)
    norm = jnp.sqrt(jnp.sum(v * v, axis=1, keepdims=True))
    return (g.astype(jnp.float32)[:, None] / norm) * v


def _rgb_mlp_kernel(*refs, n_inputs, n_mid, num_chunks, chunk_rows, unroll):
    """Fused weight-normed MLP, row-major activations, bias folded into MXU.

    refs layout:
      [0:n_inputs]                       data refs, (block_rows, d_k) f32
      [n_inputs:2*n_inputs]              layer-0 weight slices, (d_k, H+1) bf16
      [2*n_inputs]                       layer-0 bias row, (1, H+1) f32
      [2*n_inputs+1 : ... +n_mid]        hidden weights, (H+1, H+1) bf16
      [2*n_inputs+1+n_mid]               output weight, (H+1, d_out) bf16
      [2*n_inputs+2+n_mid]               output ref, (block_rows, d_out) f32
    Column H of every activation is the constant 1 that carries the biases.
    """
    data_refs = refs[:n_inputs]
    w0_refs = refs[n_inputs:2 * n_inputs]
    b0_ref = refs[2 * n_inputs]
    mid_refs = refs[2 * n_inputs + 1:2 * n_inputs + 1 + n_mid]
    wout_ref = refs[2 * n_inputs + 1 + n_mid]
    o_ref = refs[2 * n_inputs + 2 + n_mid]

    # Hoist the (tiny) weight / bias loads out of the chunk loop.
    w0s = [r[...] for r in w0_refs]            # (d_k, H+1) bf16
    b0 = b0_ref[...]                           # (1, H+1)  f32 (includes the 1)
    mids = [r[...] for r in mid_refs]          # (H+1, H+1) bf16
    wout = wout_ref[...]                       # (H+1, d_out) bf16

    def body(c, carry):
        r0 = pl.multiple_of(c * chunk_rows, chunk_rows)
        # Layer 0: concat-free — sum of per-input partial matmuls (f32 accum),
        # bias (+ the constant-1 channel) folded into the accumulator init.
        acc = b0
        for x_ref, w in zip(data_refs, w0s):
            xc = x_ref[pl.ds(r0, chunk_rows), :].astype(jnp.bfloat16)
            acc = acc + jnp.dot(xc, w, preferred_element_type=jnp.float32)
        # bf16 ReLU/down-cast (native VALU on v6e/v7x); ones channel stays 1.
        h = jnp.maximum(acc.astype(jnp.bfloat16), 0)          # (chunk, H+1)
        # Hidden layers: bias rides in the extra weight row; no VPU bias add.
        for w in mids:
            hh = jnp.dot(h, w, preferred_element_type=jnp.float32)
            h = jnp.maximum(hh.astype(jnp.bfloat16), 0)
        out = jnp.dot(h, wout, preferred_element_type=jnp.float32)  # (chunk, d_out)
        o_ref[pl.ds(r0, chunk_rows), :] = out.astype(o_ref.dtype)
        return carry

    lax.fori_loop(0, num_chunks, body, 0, unroll=unroll)


def rgb_network_forward(points, normals, dirs_encoded, geo_feature, params,
                        *, chunk_rows: int = 256, chunks_per_block: int = 16):
    """Pallas implementation of RGBNetwork.forward.

    params: list of (v, g, b) per layer, mirroring weight_norm'd nn.Linear:
      v: (out_dim, in_dim), g: (out_dim,), b: (out_dim,)
    Returns (n_rows, 3) float32 (same as the PyTorch module).
    """
    inputs = (points, dirs_encoded, normals, geo_feature)   # module concat order
    n_rows = int(inputs[0].shape[0])
    d_ks = tuple(int(x.shape[-1]) for x in inputs)
    hidden = int(params[0][0].shape[0])
    d_out = int(params[-1][0].shape[0])
    h1 = hidden + 1            # +1: constant-ones channel carrying the biases

    # ---- parameter preprocessing (O(params), tiny) ---------------------------
    # Layer 0: fold weight_norm, transpose to (in, out), append a zero column
    # (ones channel), split column-blocks per raw input.
    w0 = _fold_weight_norm(params[0][0], params[0][1])                 # (hid, d_in)
    w0_t = jnp.pad(w0.T, ((0, 0), (0, 1)))                             # (d_in, h1)
    w0_slices, off = [], 0
    for d_k in d_ks:
        w0_slices.append(w0_t[off:off + d_k].astype(jnp.bfloat16))     # (d_k, h1)
        off += d_k
    b0_row = jnp.concatenate([params[0][2].astype(jnp.float32),
                              jnp.ones((1,), jnp.float32)])
    # round like the MXU-folded biases of later layers (matched numerics)
    b0_row = b0_row.astype(jnp.bfloat16).astype(jnp.float32).reshape(1, h1)

    # Hidden layers: wT_aug = [[w.T, 0], [b, 1]]  -> bias + ones channel in MXU.
    mid_ws = []
    for (v, g, b) in params[1:-1]:
        w = _fold_weight_norm(v, g)                                    # (hid, hid)
        top = jnp.concatenate([w.T, jnp.zeros((hidden, 1), jnp.float32)], axis=1)
        bot = jnp.concatenate([b.astype(jnp.float32)[None, :],
                               jnp.ones((1, 1), jnp.float32)], axis=1)
        mid_ws.append(jnp.concatenate([top, bot], axis=0).astype(jnp.bfloat16))

    # Output layer: wT_aug = [[w.T], [b]]
    v, g, b = params[-1]
    w_out = jnp.concatenate([_fold_weight_norm(v, g).T,
                             b.astype(jnp.float32)[None, :]],
                            axis=0).astype(jnp.bfloat16)               # (h1, d_out)

    # ---- row tiling: big blocks per grid step, chunked inside the kernel -----
    chunk_rows = max(8, (chunk_rows // 8) * 8)
    c_total = pl.cdiv(n_rows, chunk_rows)
    c_blk = max(1, min(chunks_per_block, c_total))

    # Narrow (rows, k<=16) f32 blocks are lane-padded to 128 in VMEM; cap the
    # double-buffered working set so it fits comfortably on v5e/v6e/v7x.
    def vmem_estimate(c):
        block_rows = c * chunk_rows
        per_row = (len(inputs) + 1) * 128 * 4       # lane-padded f32, in + out
        return 2 * block_rows * per_row             # x2: double-buffered
    vmem_budget = 24 * 1024 * 1024
    while c_blk > 1 and vmem_estimate(c_blk) > vmem_budget:
        c_blk -= 1

    block_rows = c_blk * chunk_rows
    grid_m = pl.cdiv(c_total, c_blk)
    # No row padding: Pallas masks the out-of-bounds tail of the last block
    # (OOB reads are don't-care, OOB writes dropped); no cross-row reduction,
    # so garbage tail rows never reach the real output.

    in_specs = [pl.BlockSpec((block_rows, d_k), lambda i: (i, 0)) for d_k in d_ks]
    flat_w = list(w0_slices) + [b0_row] + mid_ws + [w_out]
    for w in flat_w:
        # Constant index_map: weights/bias are DMA'd into VMEM once (step 0).
        in_specs.append(pl.BlockSpec(w.shape, lambda i: (0, 0)))
    out_spec = pl.BlockSpec((block_rows, d_out), lambda i: (i, 0))

    kernel = functools.partial(
        _rgb_mlp_kernel,
        n_inputs=len(inputs), n_mid=len(mid_ws),
        num_chunks=c_blk, chunk_rows=chunk_rows,
        unroll=min(8, c_blk))       # partial unroll: LLO visibility w/o bloat

    fn = pl.pallas_call(
        kernel,
        out_shape=jax.ShapeDtypeStruct((n_rows, d_out), jnp.float32),
        grid_spec=pltpu.PrefetchScalarGridSpec(
            num_scalar_prefetch=0,
            grid=(grid_m,),
            in_specs=in_specs,
            out_specs=out_spec),
        compiler_params=pltpu.CompilerParams(
            dimension_semantics=("parallel",),
            vmem_limit_bytes=32 * 1024 * 1024),
    )
    return fn(*inputs, *flat_w)


def _init_params(key, dim_input, dim_hidden=64, n_layers=4):
    """Deterministic synthetic parameters matching RGBNetwork's layer shapes."""
    dims = [dim_input] + [dim_hidden] * n_layers + [3]
    params = []
    for l in range(len(dims) - 1):
        key, k1, k2 = jax.random.split(key, 3)
        fan_in, fan_out = dims[l], dims[l + 1]
        bound = 1.0 / jnp.sqrt(fan_in)
        v = jax.random.uniform(k1, (fan_out, fan_in), jnp.float32, -bound, bound)
        g = jnp.sqrt(jnp.sum(v ** 2, axis=1))   # weight_norm init: g = ||v||
        b = jax.random.uniform(k2, (fan_out,), jnp.float32, -bound, bound)
        params.append((v, g, b))
    return params


def _reference_f32(points, normals, dirs_encoded, geo_feature, params):
    """Pure-JAX f32 reference (mirrors the PyTorch module exactly)."""
    x = jnp.concatenate([points, dirs_encoded, normals, geo_feature], axis=-1)
    n = len(params)
    for l, (v, g, b) in enumerate(params):
        w = _fold_weight_norm(v, g)
        x = x @ w.T + b
        if l < n - 1:
            x = jnp.maximum(x, 0.0)
    return x


def _reference_bf16(points, normals, dirs_encoded, geo_feature, params):
    """Precision-matched reference (bf16 weights/bias/activations, f32 accum)."""
    x = jnp.concatenate([points, dirs_encoded, normals, geo_feature], axis=-1)
    x = x.astype(jnp.bfloat16)
    n = len(params)
    for l, (v, g, b) in enumerate(params):
        w = _fold_weight_norm(v, g).astype(jnp.bfloat16)
        b_eff = b.astype(jnp.bfloat16).astype(jnp.float32)
        x = jnp.dot(x, w.T, preferred_element_type=jnp.float32) + b_eff
        if l < n - 1:
            x = jnp.maximum(x.astype(jnp.bfloat16), 0)
    return x


if __name__ == "__main__":
    key = jax.random.PRNGKey(0)

    n_rows = 1000            # not a multiple of 256 -> exercises boundary masking
    d_points, d_normals, d_dirs, d_geo = 3, 3, 16, 10
    dim_input = d_points + d_dirs + d_normals + d_geo     # = 32
    dim_hidden = 64
    n_layers = 4

    key, kp, kn, kd, kg, kw = jax.random.split(key, 6)
    points = jax.random.normal(kp, (n_rows, d_points), jnp.float32)
    normals = jax.random.normal(kn, (n_rows, d_normals), jnp.float32)
    dirs_encoded = jax.random.normal(kd, (n_rows, d_dirs), jnp.float32)
    geo_feature = jax.random.normal(kg, (n_rows, d_geo), jnp.float32)

    params = _init_params(kw, dim_input, dim_hidden, n_layers)

    out = rgb_network_forward(points, normals, dirs_encoded, geo_feature, params)
    out = jax.block_until_ready(out)
    assert out.shape == (n_rows, 3)

    ref_bf16 = _reference_bf16(points, normals, dirs_encoded, geo_feature, params)
    ref_f32 = _reference_f32(points, normals, dirs_encoded, geo_feature, params)
    err_matched = float(jnp.max(jnp.abs(out - ref_bf16)))
    err_f32 = float(jnp.max(jnp.abs(out - ref_f32)))
    assert err_matched < 1e-2, f"matched-precision mismatch: {err_matched}"
    assert err_f32 < 1e-1, f"f32-reference mismatch: {err_f32}"

    print("KERNEL_OK")
</pallas_src>

<mosaic_0001>
module attributes {stable_mosaic.version = 11 : i64} {
  func.func @_rgb_mlp_kernel(%arg0: i32, %arg1: memref<1024x3xf32, #tpu.memory_space<vmem>>, %arg2: memref<1024x16xf32, #tpu.memory_space<vmem>>, %arg3: memref<1024x3xf32, #tpu.memory_space<vmem>>, %arg4: memref<1024x10xf32, #tpu.memory_space<vmem>>, %arg5: memref<3x65xbf16, #tpu.memory_space<vmem>>, %arg6: memref<16x65xbf16, #tpu.memory_space<vmem>>, %arg7: memref<3x65xbf16, #tpu.memory_space<vmem>>, %arg8: memref<10x65xbf16, #tpu.memory_space<vmem>>, %arg9: memref<1x65xf32, #tpu.memory_space<vmem>>, %arg10: memref<65x65xbf16, #tpu.memory_space<vmem>>, %arg11: memref<65x65xbf16, #tpu.memory_space<vmem>>, %arg12: memref<65x65xbf16, #tpu.memory_space<vmem>>, %arg13: memref<65x3xbf16, #tpu.memory_space<vmem>>, %arg14: memref<1024x3xf32, #tpu.memory_space<vmem>>) attributes {dimension_semantics = [#tpu.dimension_semantics<parallel>], iteration_bounds = array<i64: 1>, scalar_prefetch = 0 : i64, scratch_operands = 0 : i64, tpu.core_type = #tpu.core_type<tc>, window_params = [{transform_indices = @transform_0, window_bounds = array<i64: 1024, 3>}, {transform_indices = @transform_1, window_bounds = array<i64: 1024, 16>}, {transform_indices = @transform_2, window_bounds = array<i64: 1024, 3>}, {transform_indices = @transform_3, window_bounds = array<i64: 1024, 10>}, {pipeline_mode = #tpu.pipeline_mode<synchronous>, transform_indices = @transform_4, window_bounds = array<i64: 3, 65>}, {pipeline_mode = #tpu.pipeline_mode<synchronous>, transform_indices = @transform_5, window_bounds = array<i64: 16, 65>}, {pipeline_mode = #tpu.pipeline_mode<synchronous>, transform_indices = @transform_6, window_bounds = array<i64: 3, 65>}, {pipeline_mode = #tpu.pipeline_mode<synchronous>, transform_indices = @transform_7, window_bounds = array<i64: 10, 65>}, {pipeline_mode = #tpu.pipeline_mode<synchronous>, transform_indices = @transform_8, window_bounds = array<i64: 1, 65>}, {pipeline_mode = #tpu.pipeline_mode<synchronous>, transform_indices = @transform_9, window_bounds = array<i64: 65, 65>}, {pipeline_mode = #tpu.pipeline_mode<synchronous>, transform_indices = @transform_10, window_bounds = array<i64: 65, 65>}, {pipeline_mode = #tpu.pipeline_mode<synchronous>, transform_indices = @transform_11, window_bounds = array<i64: 65, 65>}, {pipeline_mode = #tpu.pipeline_mode<synchronous>, transform_indices = @transform_12, window_bounds = array<i64: 65, 3>}, {transform_indices = @transform_13, window_bounds = array<i64: 1024, 3>}]} {
    %c0 = arith.constant 0 : index
    %c0_0 = arith.constant 0 : index
    %0 = vector.load %arg5[%c0, %c0_0] : memref<3x65xbf16, #tpu.memory_space<vmem>>, vector<3x65xbf16>
    %c0_1 = arith.constant 0 : index
    %c0_2 = arith.constant 0 : index
    %1 = vector.load %arg6[%c0_1, %c0_2] : memref<16x65xbf16, #tpu.memory_space<vmem>>, vector<16x65xbf16>
    %c0_3 = arith.constant 0 : index
    %c0_4 = arith.constant 0 : index
    %2 = vector.load %arg7[%c0_3, %c0_4] : memref<3x65xbf16, #tpu.memory_space<vmem>>, vector<3x65xbf16>
    %c0_5 = arith.constant 0 : index
    %c0_6 = arith.constant 0 : index
    %3 = vector.load %arg8[%c0_5, %c0_6] : memref<10x65xbf16, #tpu.memory_space<vmem>>, vector<10x65xbf16>
    %c0_7 = arith.constant 0 : index
    %c0_8 = arith.constant 0 : index
    %4 = vector.load %arg9[%c0_7, %c0_8] : memref<1x65xf32, #tpu.memory_space<vmem>>, vector<1x65xf32>
    %c0_9 = arith.constant 0 : index
    %c0_10 = arith.constant 0 : index
    %5 = vector.load %arg10[%c0_9, %c0_10] : memref<65x65xbf16, #tpu.memory_space<vmem>>, vector<65x65xbf16>
    %c0_11 = arith.constant 0 : index
    %c0_12 = arith.constant 0 : index
    %6 = vector.load %arg11[%c0_11, %c0_12] : memref<65x65xbf16, #tpu.memory_space<vmem>>, vector<65x65xbf16>
    %c0_13 = arith.constant 0 : index
    %c0_14 = arith.constant 0 : index
    %7 = vector.load %arg12[%c0_13, %c0_14] : memref<65x65xbf16, #tpu.memory_space<vmem>>, vector<65x65xbf16>
    %c0_15 = arith.constant 0 : index
    %c0_16 = arith.constant 0 : index
    %8 = vector.load %arg13[%c0_15, %c0_16] : memref<65x3xbf16, #tpu.memory_space<vmem>>, vector<65x3xbf16>
    %c0_i32 = arith.constant 0 : i32
    %c256_i32 = arith.constant 256 : i32
    %9 = arith.muli %c0_i32, %c256_i32 : i32
    %10 = tpu.assume_multiple %9, 256 : i32
    %11 = arith.index_cast %10 : i32 to index
    %c0_17 = arith.constant 0 : index
    %12 = vector.load %arg1[%11, %c0_17] : memref<1024x3xf32, #tpu.memory_space<vmem>>, vector<256x3xf32>
    %13 = arith.truncf %12 : vector<256x3xf32> to vector<256x3xbf16>
    %cst = arith.constant dense<0.000000e+00> : vector<256x65xf32>
    %14 = tpu.matmul %13, %0, %cst {dimension_numbers = #tpu.dot_dimension_numbers<[1], [0], [0], [1], [0, 0, 1, 1], [], []>} : vector<256x3xbf16>, vector<3x65xbf16>, vector<256x65xf32> -> vector<256x65xf32>
    %15 = vector.broadcast %4 : vector<1x65xf32> to vector<256x65xf32>
    %16 = arith.addf %15, %14 : vector<256x65xf32>
    %17 = arith.index_cast %10 : i32 to index
    %c0_18 = arith.constant 0 : index
    %18 = vector.load %arg2[%17, %c0_18] : memref<1024x16xf32, #tpu.memory_space<vmem>>, vector<256x16xf32>
    %19 = arith.truncf %18 : vector<256x16xf32> to vector<256x16xbf16>
    %cst_19 = arith.constant dense<0.000000e+00> : vector<256x65xf32>
    %20 = tpu.matmul %19, %1, %cst_19 {dimension_numbers = #tpu.dot_dimension_numbers<[1], [0], [0], [1], [0, 0, 1, 1], [], []>} : vector<256x16xbf16>, vector<16x65xbf16>, vector<256x65xf32> -> vector<256x65xf32>
    %21 = arith.addf %16, %20 : vector<256x65xf32>
    %22 = arith.index_cast %10 : i32 to index
    %c0_20 = arith.constant 0 : index
    %23 = vector.load %arg3[%22, %c0_20] : memref<1024x3xf32, #tpu.memory_space<vmem>>, vector<256x3xf32>
    %24 = arith.truncf %23 : vector<256x3xf32> to vector<256x3xbf16>
    %cst_21 = arith.constant dense<0.000000e+00> : vector<256x65xf32>
    %25 = tpu.matmul %24, %2, %cst_21 {dimension_numbers = #tpu.dot_dimension_numbers<[1], [0], [0], [1], [0, 0, 1, 1], [], []>} : vector<256x3xbf16>, vector<3x65xbf16>, vector<256x65xf32> -> vector<256x65xf32>
    %26 = arith.addf %21, %25 : vector<256x65xf32>
    %27 = arith.index_cast %10 : i32 to index
    %c0_22 = arith.constant 0 : index
    %28 = vector.load %arg4[%27, %c0_22] : memref<1024x10xf32, #tpu.memory_space<vmem>>, vector<256x10xf32>
    %29 = arith.truncf %28 : vector<256x10xf32> to vector<256x10xbf16>
    %cst_23 = arith.constant dense<0.000000e+00> : vector<256x65xf32>
    %30 = tpu.matmul %29, %3, %cst_23 {dimension_numbers = #tpu.dot_dimension_numbers<[1], [0], [0], [1], [0, 0, 1, 1], [], []>} : vector<256x10xbf16>, vector<10x65xbf16>, vector<256x65xf32> -> vector<256x65xf32>
    %31 = arith.addf %26, %30 : vector<256x65xf32>
    %32 = arith.truncf %31 : vector<256x65xf32> to vector<256x65xbf16>
    %cst_24 = arith.constant 0.000000e+00 : bf16
    %33 = vector.broadcast %cst_24 : bf16 to vector<256x65xbf16>
    %34 = arith.maximumf %32, %33 : vector<256x65xbf16>
    %cst_25 = arith.constant dense<0.000000e+00> : vector<256x65xf32>
    %35 = tpu.matmul %34, %5, %cst_25 {dimension_numbers = #tpu.dot_dimension_numbers<[1], [0], [0], [1], [0, 0, 1, 1], [], []>} : vector<256x65xbf16>, vector<65x65xbf16>, vector<256x65xf32> -> vector<256x65xf32>
    %36 = arith.truncf %35 : vector<256x65xf32> to vector<256x65xbf16>
    %cst_26 = arith.constant 0.000000e+00 : bf16
    %37 = vector.broadcast %cst_26 : bf16 to vector<256x65xbf16>
    %38 = arith.maximumf %36, %37 : vector<256x65xbf16>
    %cst_27 = arith.constant dense<0.000000e+00> : vector<256x65xf32>
    %39 = tpu.matmul %38, %6, %cst_27 {dimension_numbers = #tpu.dot_dimension_numbers<[1], [0], [0], [1], [0, 0, 1, 1], [], []>} : vector<256x65xbf16>, vector<65x65xbf16>, vector<256x65xf32> -> vector<256x65xf32>
    %40 = arith.truncf %39 : vector<256x65xf32> to vector<256x65xbf16>
    %cst_28 = arith.constant 0.000000e+00 : bf16
    %41 = vector.broadcast %cst_28 : bf16 to vector<256x65xbf16>
    %42 = arith.maximumf %40, %41 : vector<256x65xbf16>
    %cst_29 = arith.constant dense<0.000000e+00> : vector<256x65xf32>
    %43 = tpu.matmul %42, %7, %cst_29 {dimension_numbers = #tpu.dot_dimension_numbers<[1], [0], [0], [1], [0, 0, 1, 1], [], []>} : vector<256x65xbf16>, vector<65x65xbf16>, vector<256x65xf32> -> vector<256x65xf32>
    %44 = arith.truncf %43 : vector<256x65xf32> to vector<256x65xbf16>
    %cst_30 = arith.constant 0.000000e+00 : bf16
    %45 = vector.broadcast %cst_30 : bf16 to vector<256x65xbf16>
    %46 = arith.maximumf %44, %45 : vector<256x65xbf16>
    %cst_31 = arith.constant dense<0.000000e+00> : vector<256x3xf32>
    %47 = tpu.matmul %46, %8, %cst_31 {dimension_numbers = #tpu.dot_dimension_numbers<[1], [0], [0], [1], [0, 0, 1, 1], [], []>} : vector<256x65xbf16>, vector<65x3xbf16>, vector<256x3xf32> -> vector<256x3xf32>
    %48 = arith.index_cast %10 : i32 to index
    %c0_32 = arith.constant 0 : index
    %49 = vector.load %arg14[%48, %c0_32] : memref<1024x3xf32, #tpu.memory_space<vmem>>, vector<256x3xf32>
    tpu.vector_store %arg14[%48, %c0_32], %47 {strides = array<i32>} : memref<1024x3xf32, #tpu.memory_space<vmem>>, vector<256x3xf32>,
    %c1_i32 = arith.constant 1 : i32
    %c256_i32_33 = arith.constant 256 : i32
    %50 = arith.muli %c1_i32, %c256_i32_33 : i32
    %51 = tpu.assume_multiple %50, 256 : i32
    %52 = arith.index_cast %51 : i32 to index
    %c0_34 = arith.constant 0 : index
    %53 = vector.load %arg1[%52, %c0_34] : memref<1024x3xf32, #tpu.memory_space<vmem>>, vector<256x3xf32>
    %54 = arith.truncf %53 : vector<256x3xf32> to vector<256x3xbf16>
    %cst_35 = arith.constant dense<0.000000e+00> : vector<256x65xf32>
    %55 = tpu.matmul %54, %0, %cst_35 {dimension_numbers = #tpu.dot_dimension_numbers<[1], [0], [0], [1], [0, 0, 1, 1], [], []>} : vector<256x3xbf16>, vector<3x65xbf16>, vector<256x65xf32> -> vector<256x65xf32>
    %56 = vector.broadcast %4 : vector<1x65xf32> to vector<256x65xf32>
    %57 = arith.addf %56, %55 : vector<256x65xf32>
    %58 = arith.index_cast %51 : i32 to index
    %c0_36 = arith.constant 0 : index
    %59 = vector.load %arg2[%58, %c0_36] : memref<1024x16xf32, #tpu.memory_space<vmem>>, vector<256x16xf32>
    %60 = arith.truncf %59 : vector<256x16xf32> to vector<256x16xbf16>
    %cst_37 = arith.constant dense<0.000000e+00> : vector<256x65xf32>
    %61 = tpu.matmul %60, %1, %cst_37 {dimension_numbers = #tpu.dot_dimension_numbers<[1], [0], [0], [1], [0, 0, 1, 1], [], []>} : vector<256x16xbf16>, vector<16x65xbf16>, vector<256x65xf32> -> vector<256x65xf32>
    %62 = arith.addf %57, %61 : vector<256x65xf32>
    %63 = arith.index_cast %51 : i32 to index
    %c0_38 = arith.constant 0 : index
    %64 = vector.load %arg3[%63, %c0_38] : memref<1024x3xf32, #tpu.memory_space<vmem>>, vector<256x3xf32>
    %65 = arith.truncf %64 : vector<256x3xf32> to vector<256x3xbf16>
    %cst_39 = arith.constant dense<0.000000e+00> : vector<256x65xf32>
    %66 = tpu.matmul %65, %2, %cst_39 {dimension_numbers = #tpu.dot_dimension_numbers<[1], [0], [0], [1], [0, 0, 1, 1], [], []>} : vector<256x3xbf16>, vector<3x65xbf16>, vector<256x65xf32> -> vector<256x65xf32>
    %67 = arith.addf %62, %66 : vector<256x65xf32>
    %68 = arith.index_cast %51 : i32 to index
    %c0_40 = arith.constant 0 : index
    %69 = vector.load %arg4[%68, %c0_40] : memref<1024x10xf32, #tpu.memory_space<vmem>>, vector<256x10xf32>
    %70 = arith.truncf %69 : vector<256x10xf32> to vector<256x10xbf16>
    %cst_41 = arith.constant dense<0.000000e+00> : vector<256x65xf32>
    %71 = tpu.matmul %70, %3, %cst_41 {dimension_numbers = #tpu.dot_dimension_numbers<[1], [0], [0], [1], [0, 0, 1, 1], [], []>} : vector<256x10xbf16>, vector<10x65xbf16>, vector<256x65xf32> -> vector<256x65xf32>
    %72 = arith.addf %67, %71 : vector<256x65xf32>
    %73 = arith.truncf %72 : vector<256x65xf32> to vector<256x65xbf16>
    %cst_42 = arith.constant 0.000000e+00 : bf16
    %74 = vector.broadcast %cst_42 : bf16 to vector<256x65xbf16>
    %75 = arith.maximumf %73, %74 : vector<256x65xbf16>
    %cst_43 = arith.constant dense<0.000000e+00> : vector<256x65xf32>
    %76 = tpu.matmul %75, %5, %cst_43 {dimension_numbers = #tpu.dot_dimension_numbers<[1], [0], [0], [1], [0, 0, 1, 1], [], []>} : vector<256x65xbf16>, vector<65x65xbf16>, vector<256x65xf32> -> vector<256x65xf32>
    %77 = arith.truncf %76 : vector<256x65xf32> to vector<256x65xbf16>
    %cst_44 = arith.constant 0.000000e+00 : bf16
    %78 = vector.broadcast %cst_44 : bf16 to vector<256x65xbf16>
    %79 = arith.maximumf %77, %78 : vector<256x65xbf16>
    %cst_45 = arith.constant dense<0.000000e+00> : vector<256x65xf32>
    %80 = tpu.matmul %79, %6, %cst_45 {dimension_numbers = #tpu.dot_dimension_numbers<[1], [0], [0], [1], [0, 0, 1, 1], [], []>} : vector<256x65xbf16>, vector<65x65xbf16>, vector<256x65xf32> -> vector<256x65xf32>
    %81 = arith.truncf %80 : vector<256x65xf32> to vector<256x65xbf16>
    %cst_46 = arith.constant 0.000000e+00 : bf16
    %82 = vector.broadcast %cst_46 : bf16 to vector<256x65xbf16>
    %83 = arith.maximumf %81, %82 : vector<256x65xbf16>
    %cst_47 = arith.constant dense<0.000000e+00> : vector<256x65xf32>
    %84 = tpu.matmul %83, %7, %cst_47 {dimension_numbers = #tpu.dot_dimension_numbers<[1], [0], [0], [1], [0, 0, 1, 1], [], []>} : vector<256x65xbf16>, vector<65x65xbf16>, vector<256x65xf32> -> vector<256x65xf32>
    %85 = arith.truncf %84 : vector<256x65xf32> to vector<256x65xbf16>
    %cst_48 = arith.constant 0.000000e+00 : bf16
    %86 = vector.broadcast %cst_48 : bf16 to vector<256x65xbf16>
    %87 = arith.maximumf %85, %86 : vector<256x65xbf16>
    %cst_49 = arith.constant dense<0.000000e+00> : vector<256x3xf32>
    %88 = tpu.matmul %87, %8, %cst_49 {dimension_numbers = #tpu.dot_dimension_numbers<[1], [0], [0], [1], [0, 0, 1, 1], [], []>} : vector<256x65xbf16>, vector<65x3xbf16>, vector<256x3xf32> -> vector<256x3xf32>
    %89 = arith.index_cast %51 : i32 to index
    %c0_50 = arith.constant 0 : index
    %90 = vector.load %arg14[%89, %c0_50] : memref<1024x3xf32, #tpu.memory_space<vmem>>, vector<256x3xf32>
    tpu.vector_store %arg14[%89, %c0_50], %88 {strides = array<i32>} : memref<1024x3xf32, #tpu.memory_space<vmem>>, vector<256x3xf32>,
    %c2_i32 = arith.constant 2 : i32
    %c256_i32_51 = arith.constant 256 : i32
    %91 = arith.muli %c2_i32, %c256_i32_51 : i32
    %92 = tpu.assume_multiple %91, 256 : i32
    %93 = arith.index_cast %92 : i32 to index
    %c0_52 = arith.constant 0 : index
    %94 = vector.load %arg1[%93, %c0_52] : memref<1024x3xf32, #tpu.memory_space<vmem>>, vector<256x3xf32>
    %95 = arith.truncf %94 : vector<256x3xf32> to vector<256x3xbf16>
    %cst_53 = arith.constant dense<0.000000e+00> : vector<256x65xf32>
    %96 = tpu.matmul %95, %0, %cst_53 {dimension_numbers = #tpu.dot_dimension_numbers<[1], [0], [0], [1], [0, 0, 1, 1], [], []>} : vector<256x3xbf16>, vector<3x65xbf16>, vector<256x65xf32> -> vector<256x65xf32>
    %97 = vector.broadcast %4 : vector<1x65xf32> to vector<256x65xf32>
    %98 = arith.addf %97, %96 : vector<256x65xf32>
    %99 = arith.index_cast %92 : i32 to index
    %c0_54 = arith.constant 0 : index
    %100 = vector.load %arg2[%99, %c0_54] : memref<1024x16xf32, #tpu.memory_space<vmem>>, vector<256x16xf32>
    %101 = arith.truncf %100 : vector<256x16xf32> to vector<256x16xbf16>
    %cst_55 = arith.constant dense<0.000000e+00> : vector<256x65xf32>
    %102 = tpu.matmul %101, %1, %cst_55 {dimension_numbers = #tpu.dot_dimension_numbers<[1], [0], [0], [1], [0, 0, 1, 1], [], []>} : vector<256x16xbf16>, vector<16x65xbf16>, vector<256x65xf32> -> vector<256x65xf32>
    %103 = arith.addf %98, %102 : vector<256x65xf32>
    %104 = arith.index_cast %92 : i32 to index
    %c0_56 = arith.constant 0 : index
    %105 = vector.load %arg3[%104, %c0_56] : memref<1024x3xf32, #tpu.memory_space<vmem>>, vector<256x3xf32>
    %106 = arith.truncf %105 : vector<256x3xf32> to vector<256x3xbf16>
    %cst_57 = arith.constant dense<0.000000e+00> : vector<256x65xf32>
    %107 = tpu.matmul %106, %2, %cst_57 {dimension_numbers = #tpu.dot_dimension_numbers<[1], [0], [0], [1], [0, 0, 1, 1], [], []>} : vector<256x3xbf16>, vector<3x65xbf16>, vector<256x65xf32> -> vector<256x65xf32>
    %108 = arith.addf %103, %107 : vector<256x65xf32>
    %109 = arith.index_cast %92 : i32 to index
    %c0_58 = arith.constant 0 : index
    %110 = vector.load %arg4[%109, %c0_58] : memref<1024x10xf32, #tpu.memory_space<vmem>>, vector<256x10xf32>
    %111 = arith.truncf %110 : vector<256x10xf32> to vector<256x10xbf16>
    %cst_59 = arith.constant dense<0.000000e+00> : vector<256x65xf32>
    %112 = tpu.matmul %111, %3, %cst_59 {dimension_numbers = #tpu.dot_dimension_numbers<[1], [0], [0], [1], [0, 0, 1, 1], [], []>} : vector<256x10xbf16>, vector<10x65xbf16>, vector<256x65xf32> -> vector<256x65xf32>
    %113 = arith.addf %108, %112 : vector<256x65xf32>
    %114 = arith.truncf %113 : vector<256x65xf32> to vector<256x65xbf16>
    %cst_60 = arith.constant 0.000000e+00 : bf16
    %115 = vector.broadcast %cst_60 : bf16 to vector<256x65xbf16>
    %116 = arith.maximumf %114, %115 : vector<256x65xbf16>
    %cst_61 = arith.constant dense<0.000000e+00> : vector<256x65xf32>
    %117 = tpu.matmul %116, %5, %cst_61 {dimension_numbers = #tpu.dot_dimension_numbers<[1], [0], [0], [1], [0, 0, 1, 1], [], []>} : vector<256x65xbf16>, vector<65x65xbf16>, vector<256x65xf32> -> vector<256x65xf32>
    %118 = arith.truncf %117 : vector<256x65xf32> to vector<256x65xbf16>
    %cst_62 = arith.constant 0.000000e+00 : bf16
    %119 = vector.broadcast %cst_62 : bf16 to vector<256x65xbf16>
    %120 = arith.maximumf %118, %119 : vector<256x65xbf16>
    %cst_63 = arith.constant dense<0.000000e+00> : vector<256x65xf32>
    %121 = tpu.matmul %120, %6, %cst_63 {dimension_numbers = #tpu.dot_dimension_numbers<[1], [0], [0], [1], [0, 0, 1, 1], [], []>} : vector<256x65xbf16>, vector<65x65xbf16>, vector<256x65xf32> -> vector<256x65xf32>
    %122 = arith.truncf %121 : vector<256x65xf32> to vector<256x65xbf16>
    %cst_64 = arith.constant 0.000000e+00 : bf16
    %123 = vector.broadcast %cst_64 : bf16 to vector<256x65xbf16>
    %124 = arith.maximumf %122, %123 : vector<256x65xbf16>
    %cst_65 = arith.constant dense<0.000000e+00> : vector<256x65xf32>
    %125 = tpu.matmul %124, %7, %cst_65 {dimension_numbers = #tpu.dot_dimension_numbers<[1], [0], [0], [1], [0, 0, 1, 1], [], []>} : vector<256x65xbf16>, vector<65x65xbf16>, vector<256x65xf32> -> vector<256x65xf32>
    %126 = arith.truncf %125 : vector<256x65xf32> to vector<256x65xbf16>
    %cst_66 = arith.constant 0.000000e+00 : bf16
    %127 = vector.broadcast %cst_66 : bf16 to vector<256x65xbf16>
    %128 = arith.maximumf %126, %127 : vector<256x65xbf16>
    %cst_67 = arith.constant dense<0.000000e+00> : vector<256x3xf32>
    %129 = tpu.matmul %128, %8, %cst_67 {dimension_numbers = #tpu.dot_dimension_numbers<[1], [0], [0], [1], [0, 0, 1, 1], [], []>} : vector<256x65xbf16>, vector<65x3xbf16>, vector<256x3xf32> -> vector<256x3xf32>
    %130 = arith.index_cast %92 : i32 to index
    %c0_68 = arith.constant 0 : index
    %131 = vector.load %arg14[%130, %c0_68] : memref<1024x3xf32, #tpu.memory_space<vmem>>, vector<256x3xf32>
    tpu.vector_store %arg14[%130, %c0_68], %129 {strides = array<i32>} : memref<1024x3xf32, #tpu.memory_space<vmem>>, vector<256x3xf32>,
    %c3_i32 = arith.constant 3 : i32
    %c256_i32_69 = arith.constant 256 : i32
    %132 = arith.muli %c3_i32, %c256_i32_69 : i32
    %133 = tpu.assume_multiple %132, 256 : i32
    %134 = arith.index_cast %133 : i32 to index
    %c0_70 = arith.constant 0 : index
    %135 = vector.load %arg1[%134, %c0_70] : memref<1024x3xf32, #tpu.memory_space<vmem>>, vector<256x3xf32>
    %136 = arith.truncf %135 : vector<256x3xf32> to vector<256x3xbf16>
    %cst_71 = arith.constant dense<0.000000e+00> : vector<256x65xf32>
    %137 = tpu.matmul %136, %0, %cst_71 {dimension_numbers = #tpu.dot_dimension_numbers<[1], [0], [0], [1], [0, 0, 1, 1], [], []>} : vector<256x3xbf16>, vector<3x65xbf16>, vector<256x65xf32> -> vector<256x65xf32>
    %138 = vector.broadcast %4 : vector<1x65xf32> to vector<256x65xf32>
    %139 = arith.addf %138, %137 : vector<256x65xf32>
    %140 = arith.index_cast %133 : i32 to index
    %c0_72 = arith.constant 0 : index
    %141 = vector.load %arg2[%140, %c0_72] : memref<1024x16xf32, #tpu.memory_space<vmem>>, vector<256x16xf32>
    %142 = arith.truncf %141 : vector<256x16xf32> to vector<256x16xbf16>
    %cst_73 = arith.constant dense<0.000000e+00> : vector<256x65xf32>
    %143 = tpu.matmul %142, %1, %cst_73 {dimension_numbers = #tpu.dot_dimension_numbers<[1], [0], [0], [1], [0, 0, 1, 1], [], []>} : vector<256x16xbf16>, vector<16x65xbf16>, vector<256x65xf32> -> vector<256x65xf32>
    %144 = arith.addf %139, %143 : vector<256x65xf32>
    %145 = arith.index_cast %133 : i32 to index
    %c0_74 = arith.constant 0 : index
    %146 = vector.load %arg3[%145, %c0_74] : memref<1024x3xf32, #tpu.memory_space<vmem>>, vector<256x3xf32>
    %147 = arith.truncf %146 : vector<256x3xf32> to vector<256x3xbf16>
    %cst_75 = arith.constant dense<0.000000e+00> : vector<256x65xf32>
    %148 = tpu.matmul %147, %2, %cst_75 {dimension_numbers = #tpu.dot_dimension_numbers<[1], [0], [0], [1], [0, 0, 1, 1], [], []>} : vector<256x3xbf16>, vector<3x65xbf16>, vector<256x65xf32> -> vector<256x65xf32>
    %149 = arith.addf %144, %148 : vector<256x65xf32>
    %150 = arith.index_cast %133 : i32 to index
    %c0_76 = arith.constant 0 : index
    %151 = vector.load %arg4[%150, %c0_76] : memref<1024x10xf32, #tpu.memory_space<vmem>>, vector<256x10xf32>
    %152 = arith.truncf %151 : vector<256x10xf32> to vector<256x10xbf16>
    %cst_77 = arith.constant dense<0.000000e+00> : vector<256x65xf32>
    %153 = tpu.matmul %152, %3, %cst_77 {dimension_numbers = #tpu.dot_dimension_numbers<[1], [0], [0], [1], [0, 0, 1, 1], [], []>} : vector<256x10xbf16>, vector<10x65xbf16>, vector<256x65xf32> -> vector<256x65xf32>
    %154 = arith.addf %149, %153 : vector<256x65xf32>
    %155 = arith.truncf %154 : vector<256x65xf32> to vector<256x65xbf16>
    %cst_78 = arith.constant 0.000000e+00 : bf16
    %156 = vector.broadcast %cst_78 : bf16 to vector<256x65xbf16>
    %157 = arith.maximumf %155, %156 : vector<256x65xbf16>
    %cst_79 = arith.constant dense<0.000000e+00> : vector<256x65xf32>
    %158 = tpu.matmul %157, %5, %cst_79 {dimension_numbers = #tpu.dot_dimension_numbers<[1], [0], [0], [1], [0, 0, 1, 1], [], []>} : vector<256x65xbf16>, vector<65x65xbf16>, vector<256x65xf32> -> vector<256x65xf32>
    %159 = arith.truncf %158 : vector<256x65xf32> to vector<256x65xbf16>
    %cst_80 = arith.constant 0.000000e+00 : bf16
    %160 = vector.broadcast %cst_80 : bf16 to vector<256x65xbf16>
    %161 = arith.maximumf %159, %160 : vector<256x65xbf16>
    %cst_81 = arith.constant dense<0.000000e+00> : vector<256x65xf32>
    %162 = tpu.matmul %161, %6, %cst_81 {dimension_numbers = #tpu.dot_dimension_numbers<[1], [0], [0], [1], [0, 0, 1, 1], [], []>} : vector<256x65xbf16>, vector<65x65xbf16>, vector<256x65xf32> -> vector<256x65xf32>
    %163 = arith.truncf %162 : vector<256x65xf32> to vector<256x65xbf16>
    %cst_82 = arith.constant 0.000000e+00 : bf16
    %164 = vector.broadcast %cst_82 : bf16 to vector<256x65xbf16>
    %165 = arith.maximumf %163, %164 : vector<256x65xbf16>
    %cst_83 = arith.constant dense<0.000000e+00> : vector<256x65xf32>
    %166 = tpu.matmul %165, %7, %cst_83 {dimension_numbers = #tpu.dot_dimension_numbers<[1], [0], [0], [1], [0, 0, 1, 1], [], []>} : vector<256x65xbf16>, vector<65x65xbf16>, vector<256x65xf32> -> vector<256x65xf32>
    %167 = arith.truncf %166 : vector<256x65xf32> to vector<256x65xbf16>
    %cst_84 = arith.constant 0.000000e+00 : bf16
    %168 = vector.broadcast %cst_84 : bf16 to vector<256x65xbf16>
    %169 = arith.maximumf %167, %168 : vector<256x65xbf16>
    %cst_85 = arith.constant dense<0.000000e+00> : vector<256x3xf32>
    %170 = tpu.matmul %169, %8, %cst_85 {dimension_numbers = #tpu.dot_dimension_numbers<[1], [0], [0], [1], [0, 0, 1, 1], [], []>} : vector<256x65xbf16>, vector<65x3xbf16>, vector<256x3xf32> -> vector<256x3xf32>
    %171 = arith.index_cast %133 : i32 to index
    %c0_86 = arith.constant 0 : index
    %172 = vector.load %arg14[%171, %c0_86] : memref<1024x3xf32, #tpu.memory_space<vmem>>, vector<256x3xf32>
    tpu.vector_store %arg14[%171, %c0_86], %170 {strides = array<i32>} : memref<1024x3xf32, #tpu.memory_space<vmem>>, vector<256x3xf32>,
    %c4_i32 = arith.constant 4 : i32
    return
  }
  func.func @transform_0(%arg0: i32) -> (i32, i32) {
    %c0_i32 = arith.constant 0 : i32
    %c0_i32_0 = arith.constant 0 : i32
    return %arg0, %c0_i32 : i32, i32
  }
  func.func @transform_1(%arg0: i32) -> (i32, i32) {
    %c0_i32 = arith.constant 0 : i32
    %c0_i32_0 = arith.constant 0 : i32
    return %arg0, %c0_i32 : i32, i32
  }
  func.func @transform_2(%arg0: i32) -> (i32, i32) {
    %c0_i32 = arith.constant 0 : i32
    %c0_i32_0 = arith.constant 0 : i32
    return %arg0, %c0_i32 : i32, i32
  }
  func.func @transform_3(%arg0: i32) -> (i32, i32) {
    %c0_i32 = arith.constant 0 : i32
    %c0_i32_0 = arith.constant 0 : i32
    return %arg0, %c0_i32 : i32, i32
  }
  func.func @transform_4(%arg0: i32) -> (i32, i32) {
    %c0_i32 = arith.constant 0 : i32
    %c0_i32_0 = arith.constant 0 : i32
    %c0_i32_1 = arith.constant 0 : i32
    return %c0_i32, %c0_i32_0 : i32, i32
  }
  func.func @transform_5(%arg0: i32) -> (i32, i32) {
    %c0_i32 = arith.constant 0 : i32
    %c0_i32_0 = arith.constant 0 : i32
    %c0_i32_1 = arith.constant 0 : i32
    return %c0_i32, %c0_i32_0 : i32, i32
  }
  func.func @transform_6(%arg0: i32) -> (i32, i32) {
    %c0_i32 = arith.constant 0 : i32
    %c0_i32_0 = arith.constant 0 : i32
    %c0_i32_1 = arith.constant 0 : i32
    return %c0_i32, %c0_i32_0 : i32, i32
  }
  func.func @transform_7(%arg0: i32) -> (i32, i32) {
    %c0_i32 = arith.constant 0 : i32
    %c0_i32_0 = arith.constant 0 : i32
    %c0_i32_1 = arith.constant 0 : i32
    return %c0_i32, %c0_i32_0 : i32, i32
  }
  func.func @transform_8(%arg0: i32) -> (i32, i32) {
    %c0_i32 = arith.constant 0 : i32
    %c0_i32_0 = arith.constant 0 : i32
    %c0_i32_1 = arith.constant 0 : i32
    return %c0_i32, %c0_i32_0 : i32, i32
  }
  func.func @transform_9(%arg0: i32) -> (i32, i32) {
    %c0_i32 = arith.constant 0 : i32
    %c0_i32_0 = arith.constant 0 : i32
    %c0_i32_1 = arith.constant 0 : i32
    return %c0_i32, %c0_i32_0 : i32, i32
  }
  func.func @transform_10(%arg0: i32) -> (i32, i32) {
    %c0_i32 = arith.constant 0 : i32
    %c0_i32_0 = arith.constant 0 : i32
    %c0_i32_1 = arith.constant 0 : i32
    return %c0_i32, %c0_i32_0 : i32, i32
  }
  func.func @transform_11(%arg0: i32) -> (i32, i32) {
    %c0_i32 = arith.constant 0 : i32
    %c0_i32_0 = arith.constant 0 : i32
    %c0_i32_1 = arith.constant 0 : i32
    return %c0_i32, %c0_i32_0 : i32, i32
  }
  func.func @transform_12(%arg0: i32) -> (i32, i32) {
    %c0_i32 = arith.constant 0 : i32
    %c0_i32_0 = arith.constant 0 : i32
    %c0_i32_1 = arith.constant 0 : i32
    return %c0_i32, %c0_i32_0 : i32, i32
  }
  func.func @transform_13(%arg0: i32) -> (i32, i32) {
    %c0_i32 = arith.constant 0 : i32
    %c0_i32_0 = arith.constant 0 : i32
    return %arg0, %c0_i32 : i32, i32
  }
}

</mosaic_0001>

<bundles_post_ra>
// kernel: tpu_custom_call.1
= control target key start
LH: loop header
LB: loop body
LE: loop exit
PB: predicated region body
PF: predicated region fallthrough
CT: control target
= control target key end

     0   :  { %vm185_vm0 = vcmask 1040384   ;;  %vm186_vm1 = vcmask 1041408   ;;  %v12749_v2 = vmov 65535   ;;  %vm136_vm2 = vcmask 23552   ;;  %s16599_s0 = inlined_call_operand.vmem [shape: f32[1000,3], index: 0, kind: input, shape index: {}]   ;;  %s16600_s1 = inlined_call_operand.vmem [shape: f32[1000,16], index: 1, kind: input, shape index: {}]   ;;  %s16601_s2 = inlined_call_operand.vmem [shape: f32[1000,3], index: 2, kind: input, shape index: {}]   ;;  %s16602_s3 = inlined_call_operand.vmem [shape: f32[1000,10], index: 3, kind: input, shape index: {}]   ;;  %s16603_s4 = inlined_call_operand.vmem [shape: bf16[3,65], index: 4, kind: input, shape index: {}]   ;;  %s16604_s5 = inlined_call_operand.vmem [shape: bf16[16,65], index: 5, kind: input, shape index: {}]   ;;  %s16605_s6 = inlined_call_operand.vmem [shape: bf16[3,65], index: 6, kind: input, shape index: {}]   ;;  %s16606_s7 = inlined_call_operand.vmem [shape: bf16[10,65], index: 7, kind: input, shape index: {}]   ;;  %s16607_s8 = inlined_call_operand.vmem [shape: f32[1,65], index: 8, kind: input, shape index: {}]   ;;  %s16608_s9 = inlined_call_operand.vmem [shape: bf16[65,65], index: 9, kind: input, shape index: {}]   ;;  %s16609_s10 = inlined_call_operand.vmem [shape: bf16[65,65], index: 10, kind: input, shape index: {}]   ;;  %s16610_s11 = inlined_call_operand.vmem [shape: bf16[65,65], index: 11, kind: input, shape index: {}]   ;;  %s16611_s12 = inlined_call_operand.vmem [shape: bf16[65,3], index: 12, kind: input, shape index: {}]   ;;  %s16612_s13 = inlined_call_operand.vmem [shape: f32[1000,3], index: 13, kind: output, shape index: {}]  }
   0x1   :  { %v45_v0 = vld [vmem:[%s16603_s4] sm:$0x3]  ;;  %v187_v3 = vsel %vm185_vm0, 4294967295, %v12749_v2  ;;  %v89_v4 = vld [vmem:[%s16599_s0 + $0x8] sm:$0xff]  ;;  %v90_v5 = vld [vmem:[%s16599_s0 + $0x10] sm:$0xff]  ;;  %vm445_vm3 = vcmask 130048  }
   0x2   :  { %v88_v1 = vld [vmem:[%s16599_s0] sm:$0xff]  ;;  %v188_v6 = vsel %vm186_vm1, %v187_v3, 0  ;;  %v91_v8 = vld [vmem:[%s16599_s0 + $0x18] sm:$0xff]  ;;  %v93_v12 = vld [vmem:[%s16599_s0 + $0x28] sm:$0xff]  ;;  %vm1081_vm4 = vcmask 1044480   ;;  %vm1032_vm5 = vcmask 80896  }
   0x3   :  { %v120_v7 = vpack.c.bf16 %v89_v4, %v88_v1  ;;  %v12837_v9 = vand.u32 %v188_v6, %v45_v0  ;;  %v12842_v10 = vld [vmem:[%s16604_s5] sm:$0xff]   ;;  %v121_v13 = vpack.c.bf16 %v91_v8, %v90_v5  ;;  %v94_v15 = vld [vmem:[%s16599_s0 + $0x30] sm:$0xff]  ;;  %v95_v16 = vld [vmem:[%s16599_s0 + $0x38] sm:$0xff]  ;;  %vm1337_vm6 = vcmask 531456  }
   0x4   :  { %v92_v11 = vld [vmem:[%s16599_s0 + $0x20] sm:$0xff]  ;;  %v97_v18 = vld [vmem:[%s16599_s0 + $0x48] sm:$0xff]  ;;  %v123_v19 = vpack.c.bf16 %v95_v16, %v94_v15  ;;  %v98_v23 = vld [vmem:[%s16599_s0 + $0x50] sm:$0xff] }
   0x5   :  { %10933 = vmatprep.mubr.msk.bf16.mxu0 %vm136_vm2, %v120_v7  ;;  %10931 = vmatprep.subr.bf16.mxu0 %v12837_v9  ;;  %v122_v14 = vpack.c.bf16 %v93_v12, %v92_v11  ;;  %v96_v17 = vld [vmem:[%s16599_s0 + $0x40] sm:$0xff]  ;;  %v99_v24 = vld [vmem:[%s16599_s0 + $0x58] sm:$0xff]  ;;  %v101_v26 = vld [vmem:[%s16599_s0 + $0x68] sm:$0xff] }
   0x6   :  { %10932 = vmatpush3.bf16.msra.mxu0 %v12837_v9  ;;  %v48_v20 = vld [vmem:[%s16605_s6] sm:$0x3]  ;;  %v124_v21 = vpack.c.bf16 %v97_v18, %v96_v17  ;;  %v125_v27 = vpack.c.bf16 %v99_v24, %v98_v23  ;;  %v102_v29 = vld [vmem:[%s16599_s0 + $0x70] sm:$0xff]  ;;  %v103_v30 = vld [vmem:[%s16599_s0 + $0x78] sm:$0xff] }
   0x7   :  { %10965 = vmatprep.subr.bf16.mxu0 %v12842_v10  ;;  %v12872_v22 = vand.u32 %v188_v6, %v48_v20  ;;  %v100_v25 = vld [vmem:[%s16599_s0 + $0x60] sm:$0xff]  ;;  %v105_v32 = vld [vmem:[%s16599_s0 + $0x88] sm:$0xff]  ;;  %v127_v33 = vpack.c.bf16 %v103_v30, %v102_v29  ;;  %v106_v35 = vld [vmem:[%s16599_s0 + $0x90] sm:$0xff] }
   0x8   :  { %v126_v28 = vpack.c.bf16 %v101_v26, %v100_v25  ;;  %v104_v31 = vld [vmem:[%s16599_s0 + $0x80] sm:$0xff]  ;;  %v107_v36 = vld [vmem:[%s16599_s0 + $0x98] sm:$0xff]  ;;  %v109_v38 = vld [vmem:[%s16599_s0 + $0xa8] sm:$0xff] }
   0x9   :  { %10934 = vmatmul.mubr.msk.bf16.vlgmr.msra.gmra.mrb[0].mxu0 %vm136_vm2, %v121_v13  ;;  %v128_v34 = vpack.c.bf16 %v105_v32, %v104_v31  ;;  %v108_v37 = vld [vmem:[%s16599_s0 + $0xa0] sm:$0xff]  ;;  %v129_v39 = vpack.c.bf16 %v107_v36, %v106_v35  ;;  %v110_v41 = vld [vmem:[%s16599_s0 + $0xb0] sm:$0xff]  ;;  %v111_v42 = vld [vmem:[%s16599_s0 + $0xb8] sm:$0xff] }
   0xa   :  { %10966 = vmatpush3.bf16.msra.mxu0 %v12842_v10  ;;  %10937 = vmatprep.mubr.msk.bf16.mxu0 %vm136_vm2, %v122_v14  ;;  %v130_v40 = vpack.c.bf16 %v109_v38, %v108_v37  ;;  %v112_v43 = vld [vmem:[%s16599_s0 + $0xc0] sm:$0xff]  ;;  %v113_v44 = vld [vmem:[%s16599_s0 + $0xc8] sm:$0xff]  ;;  %v131_v45 = vpack.c.bf16 %v111_v42, %v110_v41  ;;  %v114_v47 = vld [vmem:[%s16599_s0 + $0xd0] sm:$0xff] }
   0xb   :  { %10999 = vmatprep.subr.bf16.mxu0 %v12872_v22  ;;  %v132_v46 = vpack.c.bf16 %v113_v44, %v112_v43  ;;  %v115_v48 = vld [vmem:[%s16599_s0 + $0xd8] sm:$0xff]  ;;  %v116_v49 = vld [vmem:[%s16599_s0 + $0xe0] sm:$0xff]  ;;  %v117_v50 = vld [vmem:[%s16599_s0 + $0xe8] sm:$0xff] }
   0xc   :  { %v133_v51 = vpack.c.bf16 %v115_v48, %v114_v47  ;;  %v134_v52 = vpack.c.bf16 %v117_v50, %v116_v49  ;;  %v118_v53 = vld [vmem:[%s16599_s0 + $0xf0] sm:$0xff]  ;;  %v119_v54 = vld [vmem:[%s16599_s0 + $0xf8] sm:$0xff]  ;;  %v391_v55 = vld [vmem:[%s16600_s1] sm:$0xff] }
   0xd   :  { %v392_v56 = vld [vmem:[%s16600_s1 + $0x8] sm:$0xff]  ;;  %v135_v57 = vpack.c.bf16 %v119_v54, %v118_v53  ;;  %v393_v59 = vld [vmem:[%s16600_s1 + $0x10] sm:$0xff]  ;;  %v394_v60 = vld [vmem:[%s16600_s1 + $0x18] sm:$0xff] }
   0xe   :  { %v423_v58 = vpack.c.bf16 %v392_v56, %v391_v55  ;;  %v395_v61 = vld [vmem:[%s16600_s1 + $0x20] sm:$0xff]  ;;  %v396_v62 = vld [vmem:[%s16600_s1 + $0x28] sm:$0xff]  ;;  %v424_v63 = vpack.c.bf16 %v394_v60, %v393_v59  ;;  %v397_v2 = vld [vmem:[%s16600_s1 + $0x30] sm:$0xff] }
   0xf   :  { %v425_v0 = vpack.c.bf16 %v396_v62, %v395_v61  ;;  %v12976_v1 = vld [vmem:[%s16606_s7] sm:$0x1f]   ;;  %v398_v3 = vld [vmem:[%s16600_s1 + $0x38] sm:$0xff]  ;;  %v400_v5 = vld [vmem:[%s16600_s1 + $0x48] sm:$0xff] }
  0x10   :  { %v399_v4 = vld [vmem:[%s16600_s1 + $0x40] sm:$0xff]  ;;  %v426_v6 = vpack.c.bf16 %v398_v3, %v397_v2  ;;  %v401_v8 = vld [vmem:[%s16600_s1 + $0x50] sm:$0xff]  ;;  %v402_v11 = vld [vmem:[%s16600_s1 + $0x58] sm:$0xff]  ;;  %v13108_v55 = vsel %vm1081_vm4, %v12976_v1, 0 }
  0x11   :  { %10938 = vmatmul.mubr.msk.bf16.gmra.mrb[4].mxu0 %vm136_vm2, %v123_v19  ;;  %v427_v7 = vpack.c.bf16 %v400_v5, %v399_v4  ;;  %v403_v12 = vld [vmem:[%s16600_s1 + $0x60] sm:$0xff]  ;;  %v404_v13 = vld [vmem:[%s16600_s1 + $0x68] sm:$0xff]  ;;  %v428_v14 = vpack.c.bf16 %v402_v11, %v401_v8  ;;  %v405_v16 = vld [vmem:[%s16600_s1 + $0x70] sm:$0xff] }
  0x12   :  { %10941 = vmatprep.mubr.msk.bf16.mxu0 %vm136_vm2, %v124_v21  ;;  %v429_v15 = vpack.c.bf16 %v404_v13, %v403_v12  ;;  %v406_v17 = vld [vmem:[%s16600_s1 + $0x78] sm:$0xff]  ;;  %v407_v18 = vld [vmem:[%s16600_s1 + $0x80] sm:$0xff]  ;;  %v408_v19 = vld [vmem:[%s16600_s1 + $0x88] sm:$0xff] }
  0x13   :  { %v430_v20 = vpack.c.bf16 %v406_v17, %v405_v16  ;;  %v431_v21 = vpack.c.bf16 %v408_v19, %v407_v18  ;;  %v409_v23 = vld [vmem:[%s16600_s1 + $0x90] sm:$0xff]  ;;  %v410_v24 = vld [vmem:[%s16600_s1 + $0x98] sm:$0xff]  ;;  %v411_v25 = vld [vmem:[%s16600_s1 + $0xa0] sm:$0xff] }
  0x14   :  { %v412_v26 = vld [vmem:[%s16600_s1 + $0xa8] sm:$0xff]  ;;  %v413_v29 = vld [vmem:[%s16600_s1 + $0xb0] sm:$0xff]  ;;  %v414_v30 = vld [vmem:[%s16600_s1 + $0xb8] sm:$0xff] }
  0x15   :  { %v415_v31 = vld [vmem:[%s16600_s1 + $0xc0] sm:$0xff]  ;;  %v416_v32 = vld [vmem:[%s16600_s1 + $0xc8] sm:$0xff]  ;;  %v417_v35 = vld [vmem:[%s16600_s1 + $0xd0] sm:$0xff] }
  0x16   :  { %v418_v36 = vld [vmem:[%s16600_s1 + $0xd8] sm:$0xff]  ;;  %v419_v37 = vld [vmem:[%s16600_s1 + $0xe0] sm:$0xff]  ;;  %v420_v38 = vld [vmem:[%s16600_s1 + $0xe8] sm:$0xff] }
  0x17   :  { %v421_v41 = vld [vmem:[%s16600_s1 + $0xf0] sm:$0xff]  ;;  %v422_v42 = vld [vmem:[%s16600_s1 + $0xf8] sm:$0xff]  ;;  %v687_v43 = vld [vmem:[%s16601_s2] sm:$0xff] }
  0x18   :  { %v688_v44 = vld [vmem:[%s16601_s2 + $0x8] sm:$0xff]  ;;  %v13083_v47 = vld [vmem:[%s16608_s9] sm:$0xff]   ;;  %v689_v48 = vld [vmem:[%s16601_s2 + $0x10] sm:$0xff] }
  0x19   :  { %10942 = vmatmul.mubr.msk.bf16.gmra.mrb[8].mxu0 %vm136_vm2, %v125_v27  ;;  %v432_v27 = vpack.c.bf16 %v410_v24, %v409_v23  ;;  %v690_v49 = vld [vmem:[%s16601_s2 + $0x18] sm:$0xff]  ;;  %v691_v50 = vld [vmem:[%s16601_s2 + $0x20] sm:$0xff]  ;;  %12147 = vmatprep.subr.bf16.mxu1 %v13083_v47  ;;  %v13113_v56 = vld [vmem:[%s16608_s9 + $0x10] sm:$0xff]  }
  0x1a   :  { %10945 = vmatprep.mubr.msk.bf16.mxu0 %vm136_vm2, %v126_v28  ;;  %v433_v28 = vpack.c.bf16 %v412_v26, %v411_v25  ;;  %12152 = vmatpush3.bf16.msra.mxu1 %v13083_v47  ;;  %v720_v53 = vpack.c.bf16 %v690_v49, %v689_v48  ;;  %v694_v59 = vld [vmem:[%s16601_s2 + $0x38] sm:$0xff]  ;;  %v695_v60 = vld [vmem:[%s16601_s2 + $0x40] sm:$0xff]  ;;  %v696_v61 = vld [vmem:[%s16601_s2 + $0x48] sm:$0xff] }
  0x1b   :  { %v13139_v62 = vld [vmem:[%s16608_s9 + $0x18] sm:$0xff]   ;;  %v723_v3 = vpack.c.bf16 %v696_v61, %v695_v60  ;;  %v697_v5 = vld [vmem:[%s16601_s2 + $0x50] sm:$0xff]  ;;  %v700_v8 = vld [vmem:[%s16601_s2 + $0x68] sm:$0xff] }
  0x1c   :  { %v701_v13 = vld [vmem:[%s16601_s2 + $0x70] sm:$0xff]  ;;  %v704_v16 = vld [vmem:[%s16601_s2 + $0x88] sm:$0xff]  ;;  %v990_v60 = vld [vmem:[%s16602_s3 + $0x58] sm:$0xff] }
  0x1d   :  { %v705_v19 = vld [vmem:[%s16601_s2 + $0x90] sm:$0xff]  ;;  %v708_v23 = vld [vmem:[%s16601_s2 + $0xa8] sm:$0xff] }
  0x1e   :  { %v709_v26 = vld [vmem:[%s16601_s2 + $0xb0] sm:$0xff]  ;;  %v984_v48 = vld [vmem:[%s16602_s3 + $0x28] sm:$0xff] }
  0x1f   :  { %v992_v61 = vld [vmem:[%s16602_s3 + $0x68] sm:$0xff] }
  0x21   :  { %10946 = vmatmul.mubr.msk.bf16.gmra.mrb[12].mxu0 %vm136_vm2, %v127_v33  ;;  %v434_v33 = vpack.c.bf16 %v414_v30, %v413_v29  ;;  %v712_v29 = vld [vmem:[%s16601_s2 + $0xc8] sm:$0xff] }
  0x22   :  { %10949 = vmatprep.mubr.msk.bf16.mxu0 %vm136_vm2, %v128_v34  ;;  %v435_v34 = vpack.c.bf16 %v416_v32, %v415_v31  ;;  %v713_v32 = vld [vmem:[%s16601_s2 + $0xd0] sm:$0xff] }
  0x29   :  { %10950 = vmatmul.mubr.msk.bf16.gmra.mrb[16].mxu0 %vm136_vm2, %v129_v39  ;;  %v436_v39 = vpack.c.bf16 %v418_v36, %v417_v35  ;;  %v716_v35 = vld [vmem:[%s16601_s2 + $0xe8] sm:$0xff] }
  0x2a   :  { %10953 = vmatprep.mubr.msk.bf16.mxu0 %vm136_vm2, %v130_v40  ;;  %v437_v40 = vpack.c.bf16 %v420_v38, %v419_v37  ;;  %v717_v38 = vld [vmem:[%s16601_s2 + $0xf0] sm:$0xff] }
  0x31   :  { %10954 = vmatmul.mubr.msk.bf16.gmra.mrb[20].mxu0 %vm136_vm2, %v131_v45  ;;  %v438_v45 = vpack.c.bf16 %v422_v42, %v421_v41  ;;  %v980_v41 = vld [vmem:[%s16602_s3 + $0x8] sm:$0xff] }
  0x32   :  { %10957 = vmatprep.mubr.msk.bf16.mxu0 %vm136_vm2, %v132_v46  ;;  %v719_v46 = vpack.c.bf16 %v688_v44, %v687_v43  ;;  %v981_v44 = vld [vmem:[%s16602_s3 + $0x10] sm:$0xff] }
  0x39   :  { %10958 = vmatmul.mubr.msk.bf16.gmra.mrb[24].mxu0 %vm136_vm2, %v133_v51  ;;  %v692_v51 = vld [vmem:[%s16601_s2 + $0x28] sm:$0xff] }
  0x3a   :  { %10961 = vmatprep.mubr.msk.bf16.mxu0 %vm136_vm2, %v134_v52  ;;  %v13101_v52 = vld [vmem:[%s16608_s9 + $0x8] sm:$0xff]   ;;  %v721_v54 = vpack.c.bf16 %v692_v51, %v691_v50  ;;  %v985_v51 = vld [vmem:[%s16602_s3 + $0x30] sm:$0xff] }
  0x3b   :  { %12148 = vmatprep.subr.bf16.mxu1 %v13101_v52 }
  0x3c   :  { %12153 = vmatpush3.bf16.msra.mxu1 %v13101_v52 }
  0x3d   :  { %12149 = vmatprep.subr.bf16.mxu1 %v13113_v56 }
  0x40   :  { %12154 = vmatpush3.bf16.msra.mxu1 %v13113_v56 }
  0x41   :  { %10962 = vmatmul.mubr.msk.bf16.gmra.mrb[28].mxu0 %vm136_vm2, %v135_v57  ;;  %v12675_v57 = vld [vmem:[%s16608_s9 + $0x20] ss:$0 sps:$4 sm:$0x11]   ;;  %12150 = vmatprep.subr.bf16.mxu1 %v13139_v62 }
  0x42   :  { %10967 = vmatprep.mubr.msk.bf16.mxu0 %vm445_vm3, %v423_v58  ;;  %v693_v58 = vld [vmem:[%s16601_s2 + $0x30] sm:$0xff] }
  0x43   :  { %v722_v2 = vpack.c.bf16 %v694_v59, %v693_v58 }
  0x44   :  { %12155 = vmatpush3.bf16.msra.mxu1 %v13139_v62 }
  0x49   :  { %10968 = vmatmul.mubr.msk.bf16.vlgmr.msra.gmra.mrb[0].mxu0 %vm445_vm3, %v424_v63  ;;  %v12750_v63 = vmov 0  }
  0x4a   :  { %11000 = vmatpush3.bf16.msra.mxu0 %v12872_v22  ;;  %10971 = vmatprep.mubr.msk.bf16.mxu0 %vm445_vm3, %v425_v0  ;;  %v13143_v0 = vsel %vm185_vm0, 65535, %v12750_v63 }
  0x4b   :  { %12669 = vmatprep.subr.msk.bf16.mxu0 %vm1081_vm4, %v12976_v1  ;;  %v13148_v4 = vand.u32 %v12675_v57, %v13143_v0  ;;  %v988_v57 = vld [vmem:[%s16602_s3 + $0x48] sm:$0xff] }
  0x4d   :  { %12151 = vmatprep.subr.bf16.mxu1 %v13148_v4 }
  0x4e   :  { %12156 = vmatpush3.bf16.msra.mxu1 %v13148_v4 }
  0x51   :  { %10972 = vmatmul.mubr.msk.bf16.gmra.mrb[4].mxu0 %vm445_vm3, %v426_v6  ;;  %v698_v6 = vld [vmem:[%s16601_s2 + $0x58] sm:$0xff] }
  0x52   :  { %10975 = vmatprep.mubr.msk.bf16.mxu0 %vm445_vm3, %v427_v7  ;;  %v699_v7 = vld [vmem:[%s16601_s2 + $0x60] sm:$0xff]  ;;  %v724_v11 = vpack.c.bf16 %v698_v6, %v697_v5  ;;  %v994_v5 = vld [vmem:[%s16602_s3 + $0x78] sm:$0xff]  ;;  %v996_v6 = vld [vmem:[%s16602_s3 + $0x88] sm:$0xff] }
  0x53   :  { %v725_v12 = vpack.c.bf16 %v700_v8, %v699_v7 }
  0x59   :  { %10976 = vmatmul.mubr.msk.bf16.gmra.mrb[8].mxu0 %vm445_vm3, %v428_v14  ;;  %v702_v14 = vld [vmem:[%s16601_s2 + $0x78] sm:$0xff] }
  0x5a   :  { %10979 = vmatprep.mubr.msk.bf16.mxu0 %vm445_vm3, %v429_v15  ;;  %v703_v15 = vld [vmem:[%s16601_s2 + $0x80] sm:$0xff]  ;;  %v726_v17 = vpack.c.bf16 %v702_v14, %v701_v13  ;;  %v1000_v14 = vld [vmem:[%s16602_s3 + $0xa8] sm:$0xff] }
  0x5b   :  { %v727_v18 = vpack.c.bf16 %v704_v16, %v703_v15  ;;  %v999_v13 = vld [vmem:[%s16602_s3 + $0xa0] sm:$0xff] }
  0x5c   :  { %v1021_v16 = vpack.c.bf16 %v1000_v14, %v999_v13  ;;  %v12683_v13 = vld [vmem:[%s16609_s10 + $0x8] sm:$0xff]  }
  0x61   :  { %10980 = vmatmul.mubr.msk.bf16.gmra.mrb[12].mxu0 %vm445_vm3, %v430_v20  ;;  %v706_v20 = vld [vmem:[%s16601_s2 + $0x98] sm:$0xff] }
  0x62   :  { %10983 = vmatprep.mubr.msk.bf16.mxu0 %vm445_vm3, %v431_v21  ;;  %v707_v21 = vld [vmem:[%s16601_s2 + $0xa0] sm:$0xff]  ;;  %v728_v24 = vpack.c.bf16 %v706_v20, %v705_v19  ;;  %v1004_v20 = vld [vmem:[%s16602_s3 + $0xc8] sm:$0xff] }
  0x63   :  { %v729_v25 = vpack.c.bf16 %v708_v23, %v707_v21  ;;  %v1003_v19 = vld [vmem:[%s16602_s3 + $0xc0] sm:$0xff] }
  0x64   :  { %v1023_v23 = vpack.c.bf16 %v1004_v20, %v1003_v19  ;;  %v9561_v20 = vld [vmem:[%s16599_s0 + $0x130] sm:$0xff] }
  0x69   :  { %10984 = vmatmul.mubr.msk.bf16.gmra.mrb[16].mxu0 %vm445_vm3, %v432_v27  ;;  %v710_v27 = vld [vmem:[%s16601_s2 + $0xb8] sm:$0xff] }
  0x6a   :  { %10987 = vmatprep.mubr.msk.bf16.mxu0 %vm445_vm3, %v433_v28  ;;  %v711_v28 = vld [vmem:[%s16601_s2 + $0xc0] sm:$0xff]  ;;  %v730_v30 = vpack.c.bf16 %v710_v27, %v709_v26  ;;  %v1008_v27 = vld [vmem:[%s16602_s3 + $0xe8] sm:$0xff] }
  0x6b   :  { %v731_v31 = vpack.c.bf16 %v712_v29, %v711_v28  ;;  %v1007_v26 = vld [vmem:[%s16602_s3 + $0xe0] sm:$0xff] }
  0x6c   :  { %v1025_v29 = vpack.c.bf16 %v1008_v27, %v1007_v26  ;;  %v12684_v26 = vld [vmem:[%s16609_s10 + $0x10] sm:$0xff]  }
  0x71   :  { %10988 = vmatmul.mubr.msk.bf16.gmra.mrb[20].mxu0 %vm445_vm3, %v434_v33  ;;  %v714_v33 = vld [vmem:[%s16601_s2 + $0xd8] sm:$0xff] }
  0x72   :  { %10991 = vmatprep.mubr.msk.bf16.mxu0 %vm445_vm3, %v435_v34  ;;  %v715_v34 = vld [vmem:[%s16601_s2 + $0xe0] sm:$0xff]  ;;  %v732_v36 = vpack.c.bf16 %v714_v33, %v713_v32 }
  0x73   :  { %v733_v37 = vpack.c.bf16 %v716_v35, %v715_v34  ;;  %v12682_v33 = vld [vmem:[%s16609_s10] sm:$0xff]  }
  0x74   :  { %11109 = vmatprep.subr.bf16.mxu1 %v12682_v33  ;;  %v13360_v34 = vld [vmem:[%s16607_s8] ss:$0 sm:$0xff] }
  0x79   :  { %10992 = vmatmul.mubr.msk.bf16.gmra.mrb[24].mxu0 %vm445_vm3, %v436_v39  ;;  %v718_v39 = vld [vmem:[%s16601_s2 + $0xf8] sm:$0xff] }
  0x7a   :  { %10995 = vmatprep.mubr.msk.bf16.mxu0 %vm445_vm3, %v437_v40  ;;  %v979_v40 = vld [vmem:[%s16602_s3] sm:$0xff]  ;;  %v734_v42 = vpack.c.bf16 %v718_v39, %v717_v38 }
  0x7b   :  { %v1011_v43 = vpack.c.bf16 %v980_v41, %v979_v40 }
  0x81   :  { %10996 = vmatmul.mubr.msk.bf16.gmra.mrb[28].mxu0 %vm445_vm3, %v438_v45  ;;  %v982_v45 = vld [vmem:[%s16602_s3 + $0x18] sm:$0xff] }
  0x82   :  { %11001 = vmatprep.mubr.msk.bf16.mxu0 %vm136_vm2, %v719_v46  ;;  %v983_v46 = vld [vmem:[%s16602_s3 + $0x20] sm:$0xff]  ;;  %v1012_v49 = vpack.c.bf16 %v982_v45, %v981_v44  ;;  %v9556_v45 = vld [vmem:[%s16599_s0 + $0x108] sm:$0xff] }
  0x83   :  { %v1013_v50 = vpack.c.bf16 %v984_v48, %v983_v46  ;;  %v9555_v44 = vld [vmem:[%s16599_s0 + $0x100] sm:$0xff] }
  0x89   :  { %11002 = vmatmul.mubr.msk.bf16.vlgmr.msra.gmra.mrb[0].mxu0 %vm136_vm2, %v720_v53  ;;  %v986_v53 = vld [vmem:[%s16602_s3 + $0x38] sm:$0xff] }
  0x8a   :  { %11034 = vmatpush3.bf16.msra.mxu0 %v13108_v55  ;;  %11005 = vmatprep.mubr.msk.bf16.mxu0 %vm136_vm2, %v721_v54  ;;  %v987_v54 = vld [vmem:[%s16602_s3 + $0x40] sm:$0xff]  ;;  %v1014_v58 = vpack.c.bf16 %v986_v53, %v985_v51 }
  0x8b   :  { %11067 = vmatprep.subr.bf16.mxu0 %v13083_v47  ;;  %v1015_v59 = vpack.c.bf16 %v988_v57, %v987_v54 }
  0x91   :  { %11006 = vmatmul.mubr.msk.bf16.gmra.mrb[4].mxu0 %vm136_vm2, %v722_v2 }
  0x92   :  { %11009 = vmatprep.mubr.msk.bf16.mxu0 %vm136_vm2, %v723_v3 }
  0x99   :  { %11010 = vmatmul.mubr.msk.bf16.gmra.mrb[8].mxu0 %vm136_vm2, %v724_v11  ;;  %v997_v11 = vld [vmem:[%s16602_s3 + $0x90] sm:$0xff] }
  0x9a   :  { %11013 = vmatprep.mubr.msk.bf16.mxu0 %vm136_vm2, %v725_v12  ;;  %v998_v12 = vld [vmem:[%s16602_s3 + $0x98] sm:$0xff] }
  0x9b   :  { %v1020_v15 = vpack.c.bf16 %v998_v12, %v997_v11 }
  0xa1   :  { %11014 = vmatmul.mubr.msk.bf16.gmra.mrb[12].mxu0 %vm136_vm2, %v726_v17  ;;  %v1001_v17 = vld [vmem:[%s16602_s3 + $0xb0] sm:$0xff] }
  0xa2   :  { %11017 = vmatprep.mubr.msk.bf16.mxu0 %vm136_vm2, %v727_v18  ;;  %v1002_v18 = vld [vmem:[%s16602_s3 + $0xb8] sm:$0xff] }
  0xa3   :  { %v1022_v21 = vpack.c.bf16 %v1002_v18, %v1001_v17 }
  0xa9   :  { %11018 = vmatmul.mubr.msk.bf16.gmra.mrb[16].mxu0 %vm136_vm2, %v728_v24  ;;  %v1005_v24 = vld [vmem:[%s16602_s3 + $0xd0] sm:$0xff] }
  0xaa   :  { %11021 = vmatprep.mubr.msk.bf16.mxu0 %vm136_vm2, %v729_v25  ;;  %v1006_v25 = vld [vmem:[%s16602_s3 + $0xd8] sm:$0xff] }
  0xab   :  { %v1024_v28 = vpack.c.bf16 %v1006_v25, %v1005_v24  ;;  %v9563_v24 = vld [vmem:[%s16599_s0 + $0x140] sm:$0xff]  ;;  %v9564_v25 = vld [vmem:[%s16599_s0 + $0x148] sm:$0xff] }
  0xb1   :  { %11022 = vmatmul.mubr.msk.bf16.gmra.mrb[20].mxu0 %vm136_vm2, %v730_v30  ;;  %v1009_v30 = vld [vmem:[%s16602_s3 + $0xf0] sm:$0xff] }
  0xb2   :  { %11025 = vmatprep.mubr.msk.bf16.mxu0 %vm136_vm2, %v731_v31  ;;  %v1010_v31 = vld [vmem:[%s16602_s3 + $0xf8] sm:$0xff] }
  0xb3   :  { %v1026_v32 = vpack.c.bf16 %v1010_v31, %v1009_v30  ;;  %v2434_v31 = vpack.c.bf16 %v9564_v25, %v9563_v24  ;;  %v9574_v24 = vld [vmem:[%s16599_s0 + $0x198] sm:$0xff] }
  0xb9   :  { %11026 = vmatmul.mubr.msk.bf16.gmra.mrb[24].mxu0 %vm136_vm2, %v732_v36 }
  0xba   :  { %11029 = vmatprep.mubr.msk.bf16.mxu0 %vm136_vm2, %v733_v37 }
  0xc1   :  { %11030 = vmatmul.mubr.msk.bf16.gmra.mrb[28].mxu0 %vm136_vm2, %v734_v42 }
  0xc2   :  { %11035 = vmatprep.mubr.msk.bf16.mxu0 %vm1032_vm5, %v1011_v43 }
  0xc9   :  { %11036 = vmatmul.mubr.msk.bf16.vlgmr.msra.gmra.mrb[0].mxu0 %vm1032_vm5, %v1012_v49 }
  0xca   :  { %11039 = vmatprep.mubr.msk.bf16.mxu0 %vm1032_vm5, %v1013_v50  ;;  %11068 = vmatpush3.bf16.msra.mxu0 %v13083_v47  ;;  %v989_v47 = vld [vmem:[%s16602_s3 + $0x50] sm:$0xff]  ;;  %v2430_v50 = vpack.c.bf16 %v9556_v45, %v9555_v44  ;;  %v9567_v45 = vld [vmem:[%s16599_s0 + $0x160] sm:$0xff] }
  0xcb   :  { %11069 = vmatprep.subr.bf16.mxu0 %v13101_v52  ;;  %v1016_v2 = vpack.c.bf16 %v990_v60, %v989_v47 }
  0xce   :  { %11070 = vmatpush3.bf16.msra.mxu0 %v13101_v52  ;;  %v991_v52 = vld [vmem:[%s16602_s3 + $0x60] sm:$0xff] }
  0xcf   :  { %11071 = vmatprep.subr.bf16.mxu0 %v13113_v56  ;;  %v1017_v3 = vpack.c.bf16 %v992_v61, %v991_v52  ;;  %v9557_v52 = vld [vmem:[%s16599_s0 + $0x110] sm:$0xff]  ;;  %v9558_v61 = vld [vmem:[%s16599_s0 + $0x118] sm:$0xff] }
  0xd1   :  { %11040 = vmatmul.mubr.msk.bf16.gmra.mrb[4].mxu0 %vm1032_vm5, %v1014_v58 }
  0xd2   :  { %11043 = vmatprep.mubr.msk.bf16.mxu0 %vm1032_vm5, %v1015_v59  ;;  %11072 = vmatpush3.bf16.msra.mxu0 %v13113_v56  ;;  %v993_v56 = vld [vmem:[%s16602_s3 + $0x70] sm:$0xff] }
  0xd3   :  { %11073 = vmatprep.subr.bf16.mxu0 %v13139_v62  ;;  %v1018_v7 = vpack.c.bf16 %v994_v5, %v993_v56  ;;  %v9560_v56 = vld [vmem:[%s16599_s0 + $0x128] sm:$0xff] }
  0xd6   :  { %11074 = vmatpush3.bf16.msra.mxu0 %v13139_v62  ;;  %v995_v62 = vld [vmem:[%s16602_s3 + $0x80] sm:$0xff] }
  0xd7   :  { %11075 = vmatprep.subr.bf16.mxu0 %v13148_v4  ;;  %v1019_v8 = vpack.c.bf16 %v996_v6, %v995_v62  ;;  %v2431_v62 = vpack.c.bf16 %v9558_v61, %v9557_v52 }
  0xd9   :  { %11044 = vmatmul.mubr.msk.bf16.gmra.mrb[8].mxu0 %vm1032_vm5, %v1016_v2 }
  0xda   :  { %11047 = vmatprep.mubr.msk.bf16.mxu0 %vm1032_vm5, %v1017_v3  ;;  %11076 = vmatpush3.bf16.msra.mxu0 %v13148_v4  ;;  %v9559_v3 = vld [vmem:[%s16599_s0 + $0x120] sm:$0xff] }
  0xdb   :  { %11235 = vmatprep.subr.bf16.mxu0 %v12837_v9 }
  0xe1   :  { %11048 = vmatmul.mubr.msk.bf16.gmra.mrb[12].mxu0 %vm1032_vm5, %v1018_v7 }
  0xe2   :  { %11051 = vmatprep.mubr.msk.bf16.mxu0 %vm1032_vm5, %v1019_v8  ;;  %v2432_v8 = vpack.c.bf16 %v9560_v56, %v9559_v3  ;;  %v9569_v3 = vld [vmem:[%s16599_s0 + $0x170] sm:$0xff]  ;;  %v9570_v56 = vld [vmem:[%s16599_s0 + $0x178] sm:$0xff] }
  0xe9   :  { %11052 = vmatmul.mubr.msk.bf16.gmra.mrb[16].mxu0 %vm1032_vm5, %v1020_v15 }
  0xea   :  { %11055 = vmatprep.mubr.msk.bf16.mxu0 %vm1032_vm5, %v1021_v16 }
  0xf1   :  { %11056 = vmatmul.mubr.msk.bf16.gmra.mrb[20].mxu0 %vm1032_vm5, %v1022_v21  ;;  %v9562_v21 = vld [vmem:[%s16599_s0 + $0x138] sm:$0xff] }
  0xf2   :  { %11059 = vmatprep.mubr.msk.bf16.mxu0 %vm1032_vm5, %v1023_v23 }
  0xf9   :  { %11060 = vmatmul.mubr.msk.bf16.gmra.mrb[24].mxu0 %vm1032_vm5, %v1024_v28  ;;  %v2433_v28 = vpack.c.bf16 %v9562_v21, %v9561_v20 }
  0xfa   :  { %11063 = vmatprep.mubr.msk.bf16.mxu0 %vm1032_vm5, %v1025_v29 }
 0x101   :  { %11064 = vmatmul.mubr.msk.bf16.gmra.mrb[28].mxu0 %vm1032_vm5, %v1026_v32 }
 0x19c   :  { %v11037_v35 = vpop.f32.mrb[0].mxu0 }
 0x19d   :  { %v1119_v36 = vpop.f32.mrb[1].mxu0  ;;  %v12157_v38 = vadd.f32 %v11037_v35, %v13360_v34  ;;  %v12686_v35 = vld [vmem:[%s16609_s10 + $0x20] ss:$0 sps:$4 sm:$0x11]  }
 0x19e   :  { %v11038_v37 = vpop.f32.mrb[2].mxu0  ;;  %v12158_v41 = vadd.f32 %v13360_v34, %v1119_v36 }
 0x19f   :  { %v12159_v39 = vadd.f32 %v11038_v37, %v13360_v34  ;;  %v1122_v40 = vpop.f32.mrb[3].mxu0 }
 0x1a0   :  { %v12160_v42 = vadd.f32 %v13360_v34, %v1122_v40 }
 0x1a1   :  { %v1279_v43 = vpack.c.bf16 %v12159_v39, %v12157_v38 }
 0x1a2   :  { %v1278_v46 = vpack.c.bf16 %v12160_v42, %v12158_v41  ;;  %v9565_v42 = vld [vmem:[%s16599_s0 + $0x150] sm:$0xff] }
 0x1a3   :  { %v1295_v51 = vmax.bf16 %v12750_v63, %v1279_v43  ;;  %v9566_v43 = vld [vmem:[%s16599_s0 + $0x158] sm:$0xff] }
 0x1a4   :  { %v1294_v48 = vmax.bf16 %v12750_v63, %v1278_v46  ;;  %v11041_v49 = vpop.f32.mrb[4].mxu0  ;;  %v9568_v46 = vld [vmem:[%s16599_s0 + $0x168] sm:$0xff] }
 0x1a5   :  { %v1135_v53 = vpop.f32.mrb[5].mxu0  ;;  %v12161_v57 = vadd.f32 %v11041_v49, %v13360_v34 }
 0x1a6   :  { %v11042_v54 = vpop.f32.mrb[6].mxu0  ;;  %11077 = vmatprep.mubr.msk.bf16.mxu0 %vm1337_vm6, %v1294_v48  ;;  %v12162_v47 = vadd.f32 %v13360_v34, %v1135_v53  ;;  %v13454_v48 = vand.u32 %v12686_v35, %v13143_v0 }
 0x1a7   :  { %v12163_v58 = vadd.f32 %v11042_v54, %v13360_v34  ;;  %v1138_v59 = vpop.f32.mrb[7].mxu0  ;;  %11078 = vmatmul.mubr.msk.bf16.vlgmr.msra.gmra.mrb[32].mxu0 %vm1337_vm6, %v1295_v51  ;;  %v2436_v54 = vpack.c.bf16 %v9568_v46, %v9567_v45  ;;  %v9580_v45 = vld [vmem:[%s16599_s0 + $0x1c8] sm:$0xff] }
 0x1a8   :  { %v12164_v60 = vadd.f32 %v13360_v34, %v1138_v59  ;;  %11236 = vmatpush3.bf16.msra.mxu0 %v12837_v9  ;;  %11237 = vmatprep.mubr.msk.bf16.mxu0 %vm136_vm2, %v2430_v50  ;;  %v2435_v50 = vpack.c.bf16 %v9566_v43, %v9565_v42  ;;  %v9578_v42 = vld [vmem:[%s16599_s0 + $0x1b8] sm:$0xff] }
 0x1a9   :  { %v1281_v2 = vpack.c.bf16 %v12163_v58, %v12161_v57  ;;  %11269 = vmatprep.subr.bf16.mxu0 %v12842_v10 }
 0x1aa   :  { %v1280_v5 = vpack.c.bf16 %v12164_v60, %v12162_v47 }
 0x1ab   :  { %v1297_v11 = vmax.bf16 %v12750_v63, %v1281_v2 }
 0x1ac   :  { %v11045_v6 = vpop.f32.mrb[8].mxu0  ;;  %v1296_v7 = vmax.bf16 %v12750_v63, %v1280_v5 }
 0x1ad   :  { %v1151_v12 = vpop.f32.mrb[9].mxu0  ;;  %v12165_v15 = vadd.f32 %v11045_v6, %v13360_v34  ;;  %v9572_v6 = vld [vmem:[%s16599_s0 + $0x188] sm:$0xff] }
 0x1ae   :  { %v11046_v14 = vpop.f32.mrb[10].mxu0  ;;  %11081 = vmatprep.mubr.msk.bf16.mxu1 %vm1337_vm6, %v1296_v7  ;;  %v12166_v18 = vadd.f32 %v13360_v34, %v1151_v12 }
 0x1af   :  { %v12167_v16 = vadd.f32 %v11046_v14, %v13360_v34  ;;  %v1154_v17 = vpop.f32.mrb[11].mxu0  ;;  %11082 = vmatmul.mubr.msk.bf16.vlgmr.msra.gmra.mrb[0].mxu1 %vm1337_vm6, %v1297_v11  ;;  %11238 = vmatmul.mubr.msk.bf16.vlgmr.msra.gmra.mrb[36].mxu0 %vm136_vm2, %v2431_v62  ;;  %v9571_v62 = vld [vmem:[%s16599_s0 + $0x180] sm:$0xff] }
 0x1b0   :  { %v12168_v19 = vadd.f32 %v13360_v34, %v1154_v17  ;;  %11241 = vmatprep.mubr.msk.bf16.mxu0 %vm136_vm2, %v2432_v8  ;;  %11110 = vmatpush3.bf16.msra.mxu1 %v12682_v33  ;;  %v2437_v8 = vpack.c.bf16 %v9570_v56, %v9569_v3  ;;  %v9582_v3 = vld [vmem:[%s16599_s0 + $0x1d8] sm:$0xff] }
 0x1b1   :  { %v1283_v23 = vpack.c.bf16 %v12167_v16, %v12165_v15  ;;  %11111 = vmatprep.subr.bf16.mxu1 %v12683_v13  ;;  %11270 = vmatpush3.bf16.msra.mxu0 %v12842_v10  ;;  %v12685_v10 = vld [vmem:[%s16609_s10 + $0x18] sm:$0xff]  }
 0x1b2   :  { %v1282_v27 = vpack.c.bf16 %v12168_v19, %v12166_v18  ;;  %11303 = vmatprep.subr.bf16.mxu0 %v12872_v22 }
 0x1b3   :  { %v1299_v32 = vmax.bf16 %v12750_v63, %v1283_v23  ;;  %v9573_v23 = vld [vmem:[%s16599_s0 + $0x190] sm:$0xff] }
 0x1b4   :  { %v1298_v29 = vmax.bf16 %v12750_v63, %v1282_v27  ;;  %v11049_v30 = vpop.f32.mrb[12].mxu0  ;;  %11112 = vmatpush3.bf16.msra.mxu1 %v12683_v13  ;;  %v2438_v13 = vpack.c.bf16 %v9572_v6, %v9571_v62  ;;  %v9576_v27 = vld [vmem:[%s16599_s0 + $0x1a8] sm:$0xff] }
 0x1b5   :  { %v1167_v33 = vpop.f32.mrb[13].mxu0  ;;  %11113 = vmatprep.subr.bf16.mxu1 %v12684_v26  ;;  %v12169_v37 = vadd.f32 %v11049_v30, %v13360_v34  ;;  %v9584_v62 = vld [vmem:[%s16599_s0 + $0x1e8] sm:$0xff] }
 0x1b6   :  { %v11050_v36 = vpop.f32.mrb[14].mxu0  ;;  %11085 = vmatprep.mubr.msk.bf16.mxu1 %vm1337_vm6, %v1298_v29  ;;  %v12170_v40 = vadd.f32 %v13360_v34, %v1167_v33  ;;  %v2439_v29 = vpack.c.bf16 %v9574_v24, %v9573_v23  ;;  %v9608_v23 = vld [vmem:[%s16600_s1 + $0x128] sm:$0xff] }
 0x1b7   :  { %v12171_v38 = vadd.f32 %v11050_v36, %v13360_v34  ;;  %v1170_v39 = vpop.f32.mrb[15].mxu0  ;;  %11086 = vmatmul.mubr.msk.bf16.gmra.mrb[4].mxu1 %vm1337_vm6, %v1299_v32  ;;  %11242 = vmatmul.mubr.msk.bf16.gmra.mrb[40].mxu0 %vm136_vm2, %v2433_v28 }
 0x1b8   :  { %v12172_v41 = vadd.f32 %v13360_v34, %v1170_v39  ;;  %11245 = vmatprep.mubr.msk.bf16.mxu0 %vm136_vm2, %v2434_v31  ;;  %11114 = vmatpush3.bf16.msra.mxu1 %v12684_v26  ;;  %v9575_v26 = vld [vmem:[%s16599_s0 + $0x1a0] sm:$0xff] }
 0x1b9   :  { %v1285_v44 = vpack.c.bf16 %v12171_v38, %v12169_v37  ;;  %11115 = vmatprep.subr.bf16.mxu1 %v12685_v10  ;;  %v2440_v32 = vpack.c.bf16 %v9576_v27, %v9575_v26  ;;  %v9609_v26 = vld [vmem:[%s16600_s1 + $0x130] sm:$0xff]  ;;  %v9610_v27 = vld [vmem:[%s16600_s1 + $0x138] sm:$0xff] }
 0x1ba   :  { %v1284_v49 = vpack.c.bf16 %v12172_v41, %v12170_v40  ;;  %v9577_v41 = vld [vmem:[%s16599_s0 + $0x1b0] sm:$0xff] }
 0x1bb   :  { %v1301_v57 = vmax.bf16 %v12750_v63, %v1285_v44  ;;  %v9579_v44 = vld [vmem:[%s16599_s0 + $0x1c0] sm:$0xff] }
 0x1bc   :  { %v1300_v51 = vmax.bf16 %v12750_v63, %v1284_v49  ;;  %v11053_v53 = vpop.f32.mrb[16].mxu0  ;;  %11116 = vmatpush3.bf16.msra.mxu1 %v12685_v10  ;;  %v2441_v49 = vpack.c.bf16 %v9578_v42, %v9577_v41 }
 0x1bd   :  { %v1183_v58 = vpop.f32.mrb[17].mxu0  ;;  %11117 = vmatprep.subr.bf16.mxu1 %v13454_v48  ;;  %v12173_v47 = vadd.f32 %v11053_v53, %v13360_v34  ;;  %v2442_v53 = vpack.c.bf16 %v9580_v45, %v9579_v44  ;;  %v9622_v44 = vld [vmem:[%s16600_s1 + $0x198] sm:$0xff]  ;;  %v9623_v45 = vld [vmem:[%s16600_s1 + $0x1a0] sm:$0xff] }
 0x1be   :  { %v11054_v59 = vpop.f32.mrb[18].mxu0  ;;  %11089 = vmatprep.mubr.msk.bf16.mxu1 %vm1337_vm6, %v1300_v51  ;;  %v12174_v61 = vadd.f32 %v13360_v34, %v1183_v58 }
 0x1bf   :  { %v12175_v60 = vadd.f32 %v11054_v59, %v13360_v34  ;;  %v1186_v52 = vpop.f32.mrb[19].mxu0  ;;  %11090 = vmatmul.mubr.msk.bf16.gmra.mrb[8].mxu1 %vm1337_vm6, %v1301_v57  ;;  %11246 = vmatmul.mubr.msk.bf16.gmra.mrb[44].mxu0 %vm136_vm2, %v2435_v50 }
 0x1c0   :  { %v12176_v2 = vadd.f32 %v13360_v34, %v1186_v52  ;;  %11249 = vmatprep.mubr.msk.bf16.mxu0 %vm136_vm2, %v2436_v54  ;;  %11118 = vmatpush3.bf16.msra.mxu1 %v13454_v48 }
 0x1c1   :  { %v1287_v5 = vpack.c.bf16 %v12175_v60, %v12173_v47 }
 0x1c2   :  { %v1286_v7 = vpack.c.bf16 %v12176_v2, %v12174_v61  ;;  %v9581_v2 = vld [vmem:[%s16599_s0 + $0x1d0] sm:$0xff] }
 0x1c3   :  { %v1303_v14 = vmax.bf16 %v12750_v63, %v1287_v5  ;;  %v9583_v5 = vld [vmem:[%s16599_s0 + $0x1e0] sm:$0xff] }
 0x1c4   :  { %v1302_v11 = vmax.bf16 %v12750_v63, %v1286_v7  ;;  %v11057_v12 = vpop.f32.mrb[20].mxu0  ;;  %v2443_v7 = vpack.c.bf16 %v9582_v3, %v9581_v2 }
 0x1c5   :  { %v1199_v15 = vpop.f32.mrb[21].mxu0  ;;  %v12177_v17 = vadd.f32 %v11057_v12, %v13360_v34 }
 0x1c6   :  { %v11058_v16 = vpop.f32.mrb[22].mxu0  ;;  %11093 = vmatprep.mubr.msk.bf16.mxu1 %vm1337_vm6, %v1302_v11  ;;  %v12178_v20 = vadd.f32 %v13360_v34, %v1199_v15  ;;  %v2444_v11 = vpack.c.bf16 %v9584_v62, %v9583_v5  ;;  %v9603_v15 = vld [vmem:[%s16600_s1 + $0x100] sm:$0xff]  ;;  %v9634_v5 = vld [vmem:[%s16600_s1 + $0x1f8] sm:$0xff] }
 0x1c7   :  { %v12179_v18 = vadd.f32 %v11058_v16, %v13360_v34  ;;  %v1202_v19 = vpop.f32.mrb[23].mxu0  ;;  %11094 = vmatmul.mubr.msk.bf16.gmra.mrb[12].mxu1 %vm1337_vm6, %v1303_v14  ;;  %11250 = vmatmul.mubr.msk.bf16.gmra.mrb[48].mxu0 %vm136_vm2, %v2437_v8  ;;  %v9586_v14 = vld [vmem:[%s16599_s0 + $0x1f8] sm:$0xff]  ;;  %v9604_v16 = vld [vmem:[%s16600_s1 + $0x108] sm:$0xff]  ;;  %v9651_v62 = vld [vmem:[%s16601_s2 + $0x100] sm:$0xff] }
 0x1c8   :  { %v12180_v21 = vadd.f32 %v13360_v34, %v1202_v19  ;;  %11253 = vmatprep.mubr.msk.bf16.mxu0 %vm136_vm2, %v2438_v13  ;;  %v9585_v13 = vld [vmem:[%s16599_s0 + $0x1f0] sm:$0xff] }
 0x1c9   :  { %v1289_v25 = vpack.c.bf16 %v12179_v18, %v12177_v17  ;;  %v2445_v17 = vpack.c.bf16 %v9586_v14, %v9585_v13  ;;  %v2720_v18 = vpack.c.bf16 %v9604_v16, %v9603_v15  ;;  %v9605_v19 = vld [vmem:[%s16600_s1 + $0x110] sm:$0xff]  ;;  %v9655_v13 = vld [vmem:[%s16601_s2 + $0x120] sm:$0xff]  ;;  %v9656_v14 = vld [vmem:[%s16601_s2 + $0x128] sm:$0xff] }
 0x1ca   :  { %v1288_v28 = vpack.c.bf16 %v12180_v21, %v12178_v20  ;;  %v9606_v20 = vld [vmem:[%s16600_s1 + $0x118] sm:$0xff]  ;;  %v9607_v21 = vld [vmem:[%s16600_s1 + $0x120] sm:$0xff]  ;;  %v3012_v16 = vpack.c.bf16 %v9656_v14, %v9655_v13  ;;  %v9708_v13 = vld [vmem:[%s16602_s3 + $0x148] sm:$0xff] }
 0x1cb   :  { %v1305_v33 = vmax.bf16 %v12750_v63, %v1289_v25  ;;  %v2721_v24 = vpack.c.bf16 %v9606_v20, %v9605_v19  ;;  %v2722_v25 = vpack.c.bf16 %v9608_v23, %v9607_v21  ;;  %v9659_v19 = vld [vmem:[%s16601_s2 + $0x140] sm:$0xff]  ;;  %v9660_v20 = vld [vmem:[%s16601_s2 + $0x148] sm:$0xff] }
 0x1cc   :  { %v1304_v30 = vmax.bf16 %v12750_v63, %v1288_v28  ;;  %v11061_v31 = vpop.f32.mrb[24].mxu0  ;;  %v9611_v28 = vld [vmem:[%s16600_s1 + $0x140] sm:$0xff]  ;;  %v3014_v23 = vpack.c.bf16 %v9660_v20, %v9659_v19  ;;  %v9712_v20 = vld [vmem:[%s16602_s3 + $0x168] sm:$0xff] }
 0x1cd   :  { %v1215_v10 = vpop.f32.mrb[25].mxu0  ;;  %v12181_v36 = vadd.f32 %v11061_v31, %v13360_v34  ;;  %v13831_v14 = vld [vmem:[%s16604_s5] sm:$0xff]  }
 0x1ce   :  { %v11062_v35 = vpop.f32.mrb[26].mxu0  ;;  %11097 = vmatprep.mubr.msk.bf16.mxu1 %vm1337_vm6, %v1304_v30  ;;  %v12182_v39 = vadd.f32 %v13360_v34, %v1215_v10  ;;  %v2723_v30 = vpack.c.bf16 %v9610_v27, %v9609_v26  ;;  %v9615_v10 = vld [vmem:[%s16600_s1 + $0x160] sm:$0xff]  ;;  %v9664_v27 = vld [vmem:[%s16601_s2 + $0x168] sm:$0xff] }
 0x1cf   :  { %v12183_v37 = vadd.f32 %v11062_v35, %v13360_v34  ;;  %v1218_v38 = vpop.f32.mrb[27].mxu0  ;;  %11098 = vmatmul.mubr.msk.bf16.gmra.mrb[16].mxu1 %vm1337_vm6, %v1305_v33  ;;  %11254 = vmatmul.mubr.msk.bf16.gmra.mrb[52].mxu0 %vm136_vm2, %v2439_v29  ;;  %v9612_v29 = vld [vmem:[%s16600_s1 + $0x148] sm:$0xff]  ;;  %v9614_v33 = vld [vmem:[%s16600_s1 + $0x158] sm:$0xff]  ;;  %v9663_v26 = vld [vmem:[%s16601_s2 + $0x160] sm:$0xff] }
 0x1d0   :  { %v12184_v40 = vadd.f32 %v13360_v34, %v1218_v38  ;;  %11257 = vmatprep.mubr.msk.bf16.mxu0 %vm136_vm2, %v2440_v32  ;;  %v2724_v31 = vpack.c.bf16 %v9612_v29, %v9611_v28  ;;  %v9613_v32 = vld [vmem:[%s16600_s1 + $0x150] sm:$0xff]  ;;  %v9618_v38 = vld [vmem:[%s16600_s1 + $0x178] sm:$0xff]  ;;  %v3016_v29 = vpack.c.bf16 %v9664_v27, %v9663_v26  ;;  %v9711_v19 = vld [vmem:[%s16602_s3 + $0x160] sm:$0xff] }
 0x1d1   :  { %v1291_v43 = vpack.c.bf16 %v12183_v37, %v12181_v36  ;;  %v2725_v35 = vpack.c.bf16 %v9614_v33, %v9613_v32  ;;  %v9617_v37 = vld [vmem:[%s16600_s1 + $0x170] sm:$0xff]  ;;  %v9667_v32 = vld [vmem:[%s16601_s2 + $0x180] sm:$0xff]  ;;  %v9668_v33 = vld [vmem:[%s16601_s2 + $0x188] sm:$0xff]  ;;  %v3306_v26 = vpack.c.bf16 %v9712_v20, %v9711_v19 }
 0x1d2   :  { %v1290_v46 = vpack.c.bf16 %v12184_v40, %v12182_v39  ;;  %v9619_v39 = vld [vmem:[%s16600_s1 + $0x180] sm:$0xff]  ;;  %v9620_v40 = vld [vmem:[%s16600_s1 + $0x188] sm:$0xff]  ;;  %v2727_v41 = vpack.c.bf16 %v9618_v38, %v9617_v37 }
 0x1d3   :  { %v1307_v54 = vmax.bf16 %v12750_v63, %v1291_v43  ;;  %v2728_v42 = vpack.c.bf16 %v9620_v40, %v9619_v39  ;;  %v9621_v43 = vld [vmem:[%s16600_s1 + $0x190] sm:$0xff]  ;;  %v9671_v37 = vld [vmem:[%s16601_s2 + $0x1a0] sm:$0xff]  ;;  %v9672_v38 = vld [vmem:[%s16601_s2 + $0x1a8] sm:$0xff] }
 0x1d4   :  { %v1306_v50 = vmax.bf16 %v12750_v63, %v1290_v46  ;;  %v11065_v51 = vpop.f32.mrb[28].mxu0  ;;  %v9624_v46 = vld [vmem:[%s16600_s1 + $0x1a8] sm:$0xff]  ;;  %v13754_v39 = vld [vmem:[%s16610_s11] sm:$0xff]  }
 0x1d5   :  { %v1231_v57 = vpop.f32.mrb[29].mxu0  ;;  %v12185_v59 = vadd.f32 %v11065_v51, %v13360_v34  ;;  %v9625_v51 = vld [vmem:[%s16600_s1 + $0x1b0] sm:$0xff]  ;;  %11151 = vmatprep.subr.bf16.mxu1 %v13754_v39 }
 0x1d6   :  { %v11066_v58 = vpop.f32.mrb[30].mxu0  ;;  %11101 = vmatprep.mubr.msk.bf16.mxu1 %vm1337_vm6, %v1306_v50  ;;  %v12186_v52 = vadd.f32 %v13360_v34, %v1231_v57  ;;  %v2730_v50 = vpack.c.bf16 %v9624_v46, %v9623_v45  ;;  %v9628_v57 = vld [vmem:[%s16600_s1 + $0x1c8] sm:$0xff] }
 0x1d7   :  { %v12187_v47 = vadd.f32 %v11066_v58, %v13360_v34  ;;  %v1234_v60 = vpop.f32.mrb[31].mxu0  ;;  %11102 = vmatmul.mubr.msk.bf16.gmra.mrb[20].mxu1 %vm1337_vm6, %v1307_v54  ;;  %11258 = vmatmul.mubr.msk.bf16.gmra.mrb[56].mxu0 %vm136_vm2, %v2441_v49  ;;  %v2729_v49 = vpack.c.bf16 %v9622_v44, %v9621_v43  ;;  %v9627_v54 = vld [vmem:[%s16600_s1 + $0x1c0] sm:$0xff]  ;;  %v9674_v43 = vld [vmem:[%s16601_s2 + $0x1b8] sm:$0xff]  ;;  %v9676_v45 = vld [vmem:[%s16601_s2 + $0x1c8] sm:$0xff] }
 0x1d8   :  { %v12188_v61 = vadd.f32 %v13360_v34, %v1234_v60  ;;  %11261 = vmatprep.mubr.msk.bf16.mxu0 %vm136_vm2, %v2442_v53  ;;  %v9626_v53 = vld [vmem:[%s16600_s1 + $0x1b8] sm:$0xff]  ;;  %v9675_v44 = vld [vmem:[%s16601_s2 + $0x1c0] sm:$0xff] }
 0x1d9   :  { %v1293_v56 = vpack.c.bf16 %v12187_v47, %v12185_v59  ;;  %v2731_v58 = vpack.c.bf16 %v9626_v53, %v9625_v51  ;;  %v2732_v59 = vpack.c.bf16 %v9628_v57, %v9627_v54  ;;  %v9629_v47 = vld [vmem:[%s16600_s1 + $0x1d0] sm:$0xff]  ;;  %v9630_v60 = vld [vmem:[%s16600_s1 + $0x1d8] sm:$0xff]  ;;  %v9679_v53 = vld [vmem:[%s16601_s2 + $0x1e0] sm:$0xff] }
 0x1da   :  { %v1292_v6 = vpack.c.bf16 %v12188_v61, %v12186_v52  ;;  %v9631_v52 = vld [vmem:[%s16600_s1 + $0x1e0] sm:$0xff]  ;;  %v9632_v61 = vld [vmem:[%s16600_s1 + $0x1e8] sm:$0xff]  ;;  %v2733_v2 = vpack.c.bf16 %v9630_v60, %v9629_v47  ;;  %v9678_v51 = vld [vmem:[%s16601_s2 + $0x1d8] sm:$0xff] }
 0x1db   :  { %v1309_v12 = vmax.bf16 %v12750_v63, %v1293_v56  ;;  %v2734_v3 = vpack.c.bf16 %v9632_v61, %v9631_v52  ;;  %v9633_v56 = vld [vmem:[%s16600_s1 + $0x1f0] sm:$0xff]  ;;  %v9680_v54 = vld [vmem:[%s16601_s2 + $0x1e8] sm:$0xff]  ;;  %v9682_v47 = vld [vmem:[%s16601_s2 + $0x1f8] sm:$0xff] }
 0x1dc   :  { %v1308_v8 = vmax.bf16 %v12750_v63, %v1292_v6  ;;  %v9652_v6 = vld [vmem:[%s16601_s2 + $0x108] sm:$0xff]  ;;  %v9699_v60 = vld [vmem:[%s16602_s3 + $0x100] sm:$0xff] }
 0x1dd   :  { %v9700_v52 = vld [vmem:[%s16602_s3 + $0x108] sm:$0xff] }
 0x1de   :  { %11105 = vmatprep.mubr.msk.bf16.mxu1 %vm1337_vm6, %v1308_v8  ;;  %v3010_v8 = vpack.c.bf16 %v9652_v6, %v9651_v62  ;;  %v9704_v62 = vld [vmem:[%s16602_s3 + $0x128] sm:$0xff] }
 0x1df   :  { %11106 = vmatmul.mubr.msk.bf16.gmra.mrb[24].mxu1 %vm1337_vm6, %v1309_v12  ;;  %11262 = vmatmul.mubr.msk.bf16.gmra.mrb[60].mxu0 %vm136_vm2, %v2443_v7  ;;  %v2735_v7 = vpack.c.bf16 %v9634_v5, %v9633_v56  ;;  %v9654_v12 = vld [vmem:[%s16601_s2 + $0x118] sm:$0xff]  ;;  %v9703_v5 = vld [vmem:[%s16602_s3 + $0x120] sm:$0xff] }
 0x1e0   :  { %11265 = vmatprep.mubr.msk.bf16.mxu0 %vm136_vm2, %v2444_v11  ;;  %v9653_v11 = vld [vmem:[%s16601_s2 + $0x110] sm:$0xff]  ;;  %v9702_v56 = vld [vmem:[%s16602_s3 + $0x118] sm:$0xff] }
 0x1e1   :  { %v3011_v15 = vpack.c.bf16 %v9654_v12, %v9653_v11  ;;  %v9706_v11 = vld [vmem:[%s16602_s3 + $0x138] sm:$0xff]  ;;  %v9707_v12 = vld [vmem:[%s16602_s3 + $0x140] sm:$0xff] }
 0x1e7   :  { %11266 = vmatmul.mubr.msk.bf16.gmra.mrb[64].mxu0 %vm136_vm2, %v2445_v17  ;;  %v9657_v17 = vld [vmem:[%s16601_s2 + $0x130] sm:$0xff] }
 0x1e8   :  { %11271 = vmatprep.mubr.msk.bf16.mxu0 %vm445_vm3, %v2720_v18  ;;  %v9658_v18 = vld [vmem:[%s16601_s2 + $0x138] sm:$0xff] }
 0x1e9   :  { %v3013_v21 = vpack.c.bf16 %v9658_v18, %v9657_v17  ;;  %v9709_v17 = vld [vmem:[%s16602_s3 + $0x150] sm:$0xff]  ;;  %v9710_v18 = vld [vmem:[%s16602_s3 + $0x158] sm:$0xff] }
 0x1ef   :  { %11272 = vmatmul.mubr.msk.bf16.vlgmr.msra.gmra.mrb[36].mxu0 %vm445_vm3, %v2721_v24  ;;  %v9661_v24 = vld [vmem:[%s16601_s2 + $0x150] sm:$0xff] }
 0x1f0   :  { %11275 = vmatprep.mubr.msk.bf16.mxu0 %vm445_vm3, %v2722_v25  ;;  %11304 = vmatpush3.bf16.msra.mxu0 %v12872_v22  ;;  %v9662_v25 = vld [vmem:[%s16601_s2 + $0x158] sm:$0xff] }
 0x1f1   :  { %12670 = vmatprep.subr.msk.bf16.mxu0 %vm1081_vm4, %v12976_v1  ;;  %v9616_v1 = vld [vmem:[%s16600_s1 + $0x168] sm:$0xff]  ;;  %v3015_v28 = vpack.c.bf16 %v9662_v25, %v9661_v24  ;;  %v3305_v24 = vpack.c.bf16 %v9710_v18, %v9709_v17 }
 0x1f2   :  { %v2726_v36 = vpack.c.bf16 %v9616_v1, %v9615_v10  ;;  %v3018_v1 = vpack.c.bf16 %v9668_v33, %v9667_v32  ;;  %v9714_v32 = vld [vmem:[%s16602_s3 + $0x178] sm:$0xff] }
 0x1f7   :  { %11276 = vmatmul.mubr.msk.bf16.gmra.mrb[40].mxu0 %vm445_vm3, %v2723_v30  ;;  %v9665_v30 = vld [vmem:[%s16601_s2 + $0x170] sm:$0xff] }
 0x1f8   :  { %11279 = vmatprep.mubr.msk.bf16.mxu0 %vm445_vm3, %v2724_v31  ;;  %v9666_v31 = vld [vmem:[%s16601_s2 + $0x178] sm:$0xff] }
 0x1f9   :  { %v3017_v10 = vpack.c.bf16 %v9666_v31, %v9665_v30  ;;  %v9713_v31 = vld [vmem:[%s16602_s3 + $0x170] sm:$0xff] }
 0x1ff   :  { %11280 = vmatmul.mubr.msk.bf16.gmra.mrb[44].mxu0 %vm445_vm3, %v2725_v35  ;;  %v9669_v35 = vld [vmem:[%s16601_s2 + $0x190] sm:$0xff] }
 0x200   :  { %11283 = vmatprep.mubr.msk.bf16.mxu0 %vm445_vm3, %v2726_v36  ;;  %v9670_v36 = vld [vmem:[%s16601_s2 + $0x198] sm:$0xff] }
 0x201   :  { %v3019_v40 = vpack.c.bf16 %v9670_v36, %v9669_v35  ;;  %v12688_v35 = vld [vmem:[%s16610_s11 + $0x8] sm:$0xff]  }
 0x207   :  { %11284 = vmatmul.mubr.msk.bf16.gmra.mrb[48].mxu0 %vm445_vm3, %v2727_v41  ;;  %v3020_v41 = vpack.c.bf16 %v9672_v38, %v9671_v37  ;;  %v3307_v38 = vpack.c.bf16 %v9714_v32, %v9713_v31 }
 0x208   :  { %11287 = vmatprep.mubr.msk.bf16.mxu0 %vm445_vm3, %v2728_v42  ;;  %v9673_v42 = vld [vmem:[%s16601_s2 + $0x1b0] sm:$0xff] }
 0x209   :  { %v3021_v46 = vpack.c.bf16 %v9674_v43, %v9673_v42 }
 0x20f   :  { %11288 = vmatmul.mubr.msk.bf16.gmra.mrb[52].mxu0 %vm445_vm3, %v2729_v49  ;;  %v3022_v49 = vpack.c.bf16 %v9676_v45, %v9675_v44  ;;  %v12689_v44 = vld [vmem:[%s16610_s11 + $0x10] sm:$0xff]  }
 0x210   :  { %11291 = vmatprep.mubr.msk.bf16.mxu0 %vm445_vm3, %v2730_v50  ;;  %v9677_v50 = vld [vmem:[%s16601_s2 + $0x1d0] sm:$0xff] }
 0x211   :  { %v3023_v57 = vpack.c.bf16 %v9678_v51, %v9677_v50  ;;  %v9719_v50 = vld [vmem:[%s16602_s3 + $0x1a0] sm:$0xff] }
 0x217   :  { %11292 = vmatmul.mubr.msk.bf16.gmra.mrb[56].mxu0 %vm445_vm3, %v2731_v58  ;;  %v3024_v58 = vpack.c.bf16 %v9680_v54, %v9679_v53  ;;  %v9720_v53 = vld [vmem:[%s16602_s3 + $0x1a8] sm:$0xff]  ;;  %v12690_v54 = vld [vmem:[%s16610_s11 + $0x18] sm:$0xff]  }
 0x218   :  { %11295 = vmatprep.mubr.msk.bf16.mxu0 %vm445_vm3, %v2732_v59  ;;  %v9681_v59 = vld [vmem:[%s16601_s2 + $0x1f0] sm:$0xff] }
 0x219   :  { %v3025_v61 = vpack.c.bf16 %v9682_v47, %v9681_v59 }
 0x21f   :  { %11296 = vmatmul.mubr.msk.bf16.gmra.mrb[60].mxu0 %vm445_vm3, %v2733_v2  ;;  %v3300_v2 = vpack.c.bf16 %v9700_v52, %v9699_v60  ;;  %v3310_v52 = vpack.c.bf16 %v9720_v53, %v9719_v50 }
 0x220   :  { %11299 = vmatprep.mubr.msk.bf16.mxu0 %vm445_vm3, %v2734_v3  ;;  %v9701_v3 = vld [vmem:[%s16602_s3 + $0x110] sm:$0xff] }
 0x221   :  { %v3301_v6 = vpack.c.bf16 %v9702_v56, %v9701_v3 }
 0x227   :  { %11300 = vmatmul.mubr.msk.bf16.gmra.mrb[64].mxu0 %vm445_vm3, %v2735_v7  ;;  %v3302_v7 = vpack.c.bf16 %v9704_v62, %v9703_v5  ;;  %v9721_v62 = vld [vmem:[%s16602_s3 + $0x1b0] sm:$0xff] }
 0x228   :  { %11305 = vmatprep.mubr.msk.bf16.mxu0 %vm136_vm2, %v3010_v8  ;;  %v9705_v8 = vld [vmem:[%s16602_s3 + $0x130] sm:$0xff] }
 0x22f   :  { %11306 = vmatmul.mubr.msk.bf16.vlgmr.msra.gmra.mrb[36].mxu0 %vm136_vm2, %v3011_v15  ;;  %v3303_v15 = vpack.c.bf16 %v9706_v11, %v9705_v8  ;;  %v9723_v8 = vld [vmem:[%s16602_s3 + $0x1c0] sm:$0xff]  ;;  %v9724_v11 = vld [vmem:[%s16602_s3 + $0x1c8] sm:$0xff] }
 0x230   :  { %11309 = vmatprep.mubr.msk.bf16.mxu0 %vm136_vm2, %v3012_v16  ;;  %11338 = vmatpush3.bf16.msra.mxu0 %v13108_v55  ;;  %v3304_v16 = vpack.c.bf16 %v9708_v13, %v9707_v12  ;;  %v3312_v17 = vpack.c.bf16 %v9724_v11, %v9723_v8 }
 0x231   :  { %11539 = vmatprep.subr.bf16.mxu0 %v12837_v9 }
 0x237   :  { %11310 = vmatmul.mubr.msk.bf16.gmra.mrb[40].mxu0 %vm136_vm2, %v3013_v21 }
 0x238   :  { %11313 = vmatprep.mubr.msk.bf16.mxu0 %vm136_vm2, %v3014_v23 }
 0x23f   :  { %11314 = vmatmul.mubr.msk.bf16.gmra.mrb[44].mxu0 %vm136_vm2, %v3015_v28 }
 0x240   :  { %11317 = vmatprep.mubr.msk.bf16.mxu0 %vm136_vm2, %v3016_v29 }
 0x247   :  { %11318 = vmatmul.mubr.msk.bf16.gmra.mrb[48].mxu0 %vm136_vm2, %v3017_v10  ;;  %v9715_v10 = vld [vmem:[%s16602_s3 + $0x180] sm:$0xff] }
 0x248   :  { %11321 = vmatprep.mubr.msk.bf16.mxu0 %vm136_vm2, %v3018_v1  ;;  %v9716_v1 = vld [vmem:[%s16602_s3 + $0x188] sm:$0xff] }
 0x24f   :  { %11322 = vmatmul.mubr.msk.bf16.gmra.mrb[52].mxu0 %vm136_vm2, %v3019_v40 }
 0x250   :  { %11325 = vmatprep.mubr.msk.bf16.mxu0 %vm136_vm2, %v3020_v41  ;;  %v3308_v41 = vpack.c.bf16 %v9716_v1, %v9715_v10 }
 0x257   :  { %11326 = vmatmul.mubr.msk.bf16.gmra.mrb[56].mxu0 %vm136_vm2, %v3021_v46 }
 0x258   :  { %11329 = vmatprep.mubr.msk.bf16.mxu0 %vm136_vm2, %v3022_v49  ;;  %v9717_v49 = vld [vmem:[%s16602_s3 + $0x190] sm:$0xff] }
 0x25f   :  { %11330 = vmatmul.mubr.msk.bf16.gmra.mrb[60].mxu0 %vm136_vm2, %v3023_v57  ;;  %v12691_v57 = vld [vmem:[%s16610_s11 + $0x20] ss:$0 sps:$4 sm:$0x11]  }
 0x260   :  { %11333 = vmatprep.mubr.msk.bf16.mxu0 %vm136_vm2, %v3024_v58  ;;  %v13898_v3 = vand.u32 %v12691_v57, %v13143_v0 }
 0x267   :  { %11334 = vmatmul.mubr.msk.bf16.gmra.mrb[64].mxu0 %vm136_vm2, %v3025_v61 }
 0x268   :  { %11339 = vmatprep.mubr.msk.bf16.mxu0 %vm1032_vm5, %v3300_v2 }
 0x26f   :  { %11340 = vmatmul.mubr.msk.bf16.vlgmr.msra.gmra.mrb[36].mxu0 %vm1032_vm5, %v3301_v6  ;;  %v9722_v6 = vld [vmem:[%s16602_s3 + $0x1b8] sm:$0xff] }
 0x270   :  { %11343 = vmatprep.mubr.msk.bf16.mxu0 %vm1032_vm5, %v3302_v7  ;;  %11540 = vmatpush3.bf16.msra.mxu0 %v12837_v9 }
 0x271   :  { %11573 = vmatprep.subr.bf16.mxu0 %v13831_v14 }
 0x277   :  { %11344 = vmatmul.mubr.msk.bf16.gmra.mrb[40].mxu0 %vm1032_vm5, %v3303_v15  ;;  %v3311_v15 = vpack.c.bf16 %v9722_v6, %v9721_v62 }
 0x278   :  { %11347 = vmatprep.mubr.msk.bf16.mxu0 %vm1032_vm5, %v3304_v16 }
 0x27a   :  { %v11079_v21 = vpop.f32.mrb[32].mxu0 }
 0x27b   :  { %v1425_v23 = vpop.f32.mrb[33].mxu0 }
 0x27c   :  { %v11080_v25 = vpop.f32.mrb[34].mxu0 }
 0x27d   :  { %v1553_v27 = vpack.c.bf16 %v11080_v25, %v11079_v21  ;;  %v1428_v28 = vpop.f32.mrb[35].mxu0 }
 0x27e   :  { %v1552_v29 = vpack.c.bf16 %v1428_v28, %v1425_v23  ;;  %v9725_v23 = vld [vmem:[%s16602_s3 + $0x1d0] sm:$0xff] }
 0x27f   :  { %11348 = vmatmul.mubr.msk.bf16.gmra.mrb[44].mxu0 %vm1032_vm5, %v3305_v24  ;;  %v1569_v33 = vmax.bf16 %v12750_v63, %v1553_v27  ;;  %v9726_v24 = vld [vmem:[%s16602_s3 + $0x1d8] sm:$0xff]  ;;  %v9728_v27 = vld [vmem:[%s16602_s3 + $0x1e8] sm:$0xff] }
 0x280   :  { %v1568_v30 = vmax.bf16 %v12750_v63, %v1552_v29  ;;  %11351 = vmatprep.mubr.msk.bf16.mxu0 %vm1032_vm5, %v3306_v26  ;;  %v9727_v26 = vld [vmem:[%s16602_s3 + $0x1e0] sm:$0xff] }
 0x281   :  { %v3314_v32 = vpack.c.bf16 %v9728_v27, %v9727_v26 }
 0x282   :  { %v11083_v36 = vpop.f32.mrb[0].mxu1  ;;  %11119 = vmatprep.mubr.msk.bf16.mxu1 %vm1337_vm6, %v1568_v30  ;;  %v3313_v30 = vpack.c.bf16 %v9726_v24, %v9725_v23 }
 0x283   :  { %v1441_v37 = vpop.f32.mrb[1].mxu1  ;;  %11120 = vmatmul.mubr.msk.bf16.vlgmr.msra.gmra.mrb[28].mxu1 %vm1337_vm6, %v1569_v33 }
 0x284   :  { %v11084_v40 = vpop.f32.mrb[2].mxu1  ;;  %11152 = vmatpush3.bf16.msra.mxu1 %v13754_v39  ;;  %v9718_v39 = vld [vmem:[%s16602_s3 + $0x198] sm:$0xff] }
 0x285   :  { %v1555_v42 = vpack.c.bf16 %v11084_v40, %v11083_v36  ;;  %v1444_v43 = vpop.f32.mrb[3].mxu1  ;;  %11153 = vmatprep.subr.bf16.mxu1 %v12688_v35  ;;  %v3309_v47 = vpack.c.bf16 %v9718_v39, %v9717_v49  ;;  %v9729_v36 = vld [vmem:[%s16602_s3 + $0x1f0] sm:$0xff] }
 0x286   :  { %v1554_v45 = vpack.c.bf16 %v1444_v43, %v1441_v37  ;;  %v9730_v37 = vld [vmem:[%s16602_s3 + $0x1f8] sm:$0xff] }
 0x287   :  { %11352 = vmatmul.mubr.msk.bf16.gmra.mrb[48].mxu0 %vm1032_vm5, %v3307_v38  ;;  %v1571_v51 = vmax.bf16 %v12750_v63, %v1555_v42  ;;  %v3315_v42 = vpack.c.bf16 %v9730_v37, %v9729_v36 }
 0x288   :  { %v1570_v46 = vmax.bf16 %v12750_v63, %v1554_v45  ;;  %11355 = vmatprep.mubr.msk.bf16.mxu0 %vm1032_vm5, %v3308_v41  ;;  %11154 = vmatpush3.bf16.msra.mxu1 %v12688_v35 }
 0x289   :  { %11155 = vmatprep.subr.bf16.mxu1 %v12689_v44 }
 0x28a   :  { %v11087_v58 = vpop.f32.mrb[4].mxu1  ;;  %11123 = vmatprep.mubr.msk.bf16.mxu1 %vm1337_vm6, %v1570_v46 }
 0x28b   :  { %v1457_v59 = vpop.f32.mrb[5].mxu1  ;;  %11124 = vmatmul.mubr.msk.bf16.gmra.mrb[32].mxu1 %vm1337_vm6, %v1571_v51 }
 0x28c   :  { %v11088_v60 = vpop.f32.mrb[6].mxu1  ;;  %11156 = vmatpush3.bf16.msra.mxu1 %v12689_v44 }
 0x28d   :  { %v1557_v61 = vpack.c.bf16 %v11088_v60, %v11087_v58  ;;  %v1460_v2 = vpop.f32.mrb[7].mxu1  ;;  %11157 = vmatprep.subr.bf16.mxu1 %v12690_v54 }
 0x28e   :  { %v1556_v56 = vpack.c.bf16 %v1460_v2, %v1457_v59 }
 0x28f   :  { %11356 = vmatmul.mubr.msk.bf16.gmra.mrb[52].mxu0 %vm1032_vm5, %v3309_v47  ;;  %v1573_v7 = vmax.bf16 %v12750_v63, %v1557_v61 }
 0x290   :  { %v1572_v5 = vmax.bf16 %v12750_v63, %v1556_v56  ;;  %11359 = vmatprep.mubr.msk.bf16.mxu0 %vm1032_vm5, %v3310_v52  ;;  %11158 = vmatpush3.bf16.msra.mxu1 %v12690_v54 }
 0x291   :  { %11159 = vmatprep.subr.bf16.mxu1 %v13898_v3 }
 0x292   :  { %v11091_v12 = vpop.f32.mrb[8].mxu1  ;;  %11127 = vmatprep.mubr.msk.bf16.mxu1 %vm1337_vm6, %v1572_v5 }
 0x293   :  { %v1473_v13 = vpop.f32.mrb[9].mxu1  ;;  %11128 = vmatmul.mubr.msk.bf16.gmra.mrb[36].mxu1 %vm1337_vm6, %v1573_v7  ;;  %v12692_v7 = vld [vmem:[%s16611_s12] sm:$0xff]  }
 0x294   :  { %v11092_v16 = vpop.f32.mrb[10].mxu1  ;;  %11160 = vmatpush3.bf16.msra.mxu1 %v13898_v3 }
 0x295   :  { %v1559_v18 = vpack.c.bf16 %v11092_v16, %v11091_v12  ;;  %v1476_v19 = vpop.f32.mrb[11].mxu1  ;;  %11193 = vmatprep.subr.bf16.mxu1 %v12692_v7 }
 0x296   :  { %v1558_v20 = vpack.c.bf16 %v1476_v19, %v1473_v13 }
 0x297   :  { %11360 = vmatmul.mubr.msk.bf16.gmra.mrb[56].mxu0 %vm1032_vm5, %v3311_v15  ;;  %v1575_v25 = vmax.bf16 %v12750_v63, %v1559_v18 }
 0x298   :  { %v1574_v21 = vmax.bf16 %v12750_v63, %v1558_v20  ;;  %11363 = vmatprep.mubr.msk.bf16.mxu0 %vm1032_vm5, %v3312_v17 }
 0x29a   :  { %v11095_v28 = vpop.f32.mrb[12].mxu1  ;;  %11131 = vmatprep.mubr.msk.bf16.mxu1 %vm1337_vm6, %v1574_v21 }
 0x29b   :  { %v1489_v29 = vpop.f32.mrb[13].mxu1  ;;  %11132 = vmatmul.mubr.msk.bf16.gmra.mrb[40].mxu1 %vm1337_vm6, %v1575_v25 }
 0x29c   :  { %v11096_v31 = vpop.f32.mrb[14].mxu1 }
 0x29d   :  { %v1561_v33 = vpack.c.bf16 %v11096_v31, %v11095_v28  ;;  %v1492_v10 = vpop.f32.mrb[15].mxu1 }
 0x29e   :  { %v1560_v1 = vpack.c.bf16 %v1492_v10, %v1489_v29 }
 0x29f   :  { %11364 = vmatmul.mubr.msk.bf16.gmra.mrb[60].mxu0 %vm1032_vm5, %v3313_v30  ;;  %v1577_v38 = vmax.bf16 %v12750_v63, %v1561_v33  ;;  %v14001_v33 = vld [vmem:[%s16607_s8] ss:$0 sm:$0xff] }
 0x2a0   :  { %v1576_v35 = vmax.bf16 %v12750_v63, %v1560_v1  ;;  %11367 = vmatprep.mubr.msk.bf16.mxu0 %vm1032_vm5, %v3314_v32 }
 0x2a2   :  { %v11099_v40 = vpop.f32.mrb[16].mxu1  ;;  %11135 = vmatprep.mubr.msk.bf16.mxu1 %vm1337_vm6, %v1576_v35 }
 0x2a3   :  { %v1505_v41 = vpop.f32.mrb[17].mxu1  ;;  %11136 = vmatmul.mubr.msk.bf16.gmra.mrb[44].mxu1 %vm1337_vm6, %v1577_v38 }
 0x2a4   :  { %v11100_v43 = vpop.f32.mrb[18].mxu1 }
 0x2a5   :  { %v1563_v44 = vpack.c.bf16 %v11100_v43, %v11099_v40  ;;  %v1508_v45 = vpop.f32.mrb[19].mxu1 }
 0x2a6   :  { %v1562_v46 = vpack.c.bf16 %v1508_v45, %v1505_v41 }
 0x2a7   :  { %11368 = vmatmul.mubr.msk.bf16.gmra.mrb[64].mxu0 %vm1032_vm5, %v3315_v42  ;;  %v1579_v39 = vmax.bf16 %v12750_v63, %v1563_v44 }
 0x2a8   :  { %v1578_v49 = vmax.bf16 %v12750_v63, %v1562_v46 }
 0x2aa   :  { %v11103_v50 = vpop.f32.mrb[20].mxu1  ;;  %11139 = vmatprep.mubr.msk.bf16.mxu1 %vm1337_vm6, %v1578_v49 }
 0x2ab   :  { %v1521_v51 = vpop.f32.mrb[21].mxu1  ;;  %11140 = vmatmul.mubr.msk.bf16.gmra.mrb[48].mxu1 %vm1337_vm6, %v1579_v39 }
 0x2ac   :  { %v11104_v53 = vpop.f32.mrb[22].mxu1 }
 0x2ad   :  { %v1565_v54 = vpack.c.bf16 %v11104_v53, %v11103_v50  ;;  %v1524_v57 = vpop.f32.mrb[23].mxu1 }
 0x2ae   :  { %v1564_v58 = vpack.c.bf16 %v1524_v57, %v1521_v51 }
 0x2af   :  { %v1581_v47 = vmax.bf16 %v12750_v63, %v1565_v54 }
 0x2b0   :  { %v1580_v59 = vmax.bf16 %v12750_v63, %v1564_v58 }
 0x2b2   :  { %v11107_v60 = vpop.f32.mrb[24].mxu1  ;;  %11143 = vmatprep.mubr.msk.bf16.mxu1 %vm1337_vm6, %v1580_v59 }
 0x2b3   :  { %v1537_v52 = vpop.f32.mrb[25].mxu1  ;;  %11144 = vmatmul.mubr.msk.bf16.gmra.mrb[52].mxu1 %vm1337_vm6, %v1581_v47 }
 0x2b4   :  { %v11108_v61 = vpop.f32.mrb[26].mxu1 }
 0x2b5   :  { %v1567_v2 = vpack.c.bf16 %v11108_v61, %v11107_v60  ;;  %v1540_v56 = vpop.f32.mrb[27].mxu1  ;;  %v12693_v60 = vld [vmem:[%s16611_s12 + $0x8] sm:$0xff]  }
 0x2b6   :  { %v1566_v5 = vpack.c.bf16 %v1540_v56, %v1537_v52 }
 0x2b7   :  { %v1583_v6 = vmax.bf16 %v12750_v63, %v1567_v2 }
 0x2b8   :  { %v1582_v62 = vmax.bf16 %v12750_v63, %v1566_v5 }
 0x2ba   :  { %11147 = vmatprep.mubr.msk.bf16.mxu1 %vm1337_vm6, %v1582_v62 }
 0x2bb   :  { %11148 = vmatmul.mubr.msk.bf16.gmra.mrb[56].mxu1 %vm1337_vm6, %v1583_v6 }
 0x342   :  { %v11341_v8 = vpop.f32.mrb[36].mxu0 }
 0x343   :  { %v13967_v11 = vadd.f32 %v11341_v8, %v13360_v34  ;;  %v3398_v12 = vpop.f32.mrb[37].mxu0 }
 0x344   :  { %v13970_v13 = vadd.f32 %v13360_v34, %v3398_v12  ;;  %v11342_v15 = vpop.f32.mrb[38].mxu0  ;;  %v12694_v12 = vld [vmem:[%s16611_s12 + $0x10] sm:$0xff]  }
 0x345   :  { %v13973_v16 = vadd.f32 %v11342_v15, %v13360_v34  ;;  %v3401_v17 = vpop.f32.mrb[39].mxu0 }
 0x346   :  { %v13976_v18 = vadd.f32 %v13360_v34, %v3401_v17 }
 0x347   :  { %v3558_v19 = vpack.c.bf16 %v13973_v16, %v13967_v11  ;;  %v12705_v16 = vld [vmem:[%s16609_s10 + $0x10] sm:$0xff]  }
 0x348   :  { %v3557_v20 = vpack.c.bf16 %v13976_v18, %v13970_v13  ;;  %v12704_v13 = vld [vmem:[%s16609_s10 + $0x8] sm:$0xff]  }
 0x34a   :  { %v11345_v21 = vpop.f32.mrb[40].mxu0 }
 0x34b   :  { %v13983_v23 = vadd.f32 %v11345_v21, %v13360_v34  ;;  %v3414_v24 = vpop.f32.mrb[41].mxu0 }
 0x34c   :  { %v13986_v25 = vadd.f32 %v13360_v34, %v3414_v24  ;;  %v11346_v26 = vpop.f32.mrb[42].mxu0 }
 0x34d   :  { %v13989_v27 = vadd.f32 %v11346_v26, %v13360_v34  ;;  %v3417_v28 = vpop.f32.mrb[43].mxu0 }
 0x34e   :  { %v13992_v29 = vadd.f32 %v13360_v34, %v3417_v28 }
 0x34f   :  { %v3560_v30 = vpack.c.bf16 %v13989_v27, %v13983_v23  ;;  %v9827_v27 = vld [vmem:[%s16599_s0 + $0x280] sm:$0xff] }
 0x350   :  { %v3559_v31 = vpack.c.bf16 %v13992_v29, %v13986_v25  ;;  %v9828_v29 = vld [vmem:[%s16599_s0 + $0x288] sm:$0xff] }
 0x351   :  { %v3576_v11 = vmax.bf16 %v12750_v63, %v3560_v30  ;;  %v4595_v30 = vpack.c.bf16 %v9828_v29, %v9827_v27  ;;  %v9868_v27 = vld [vmem:[%s16600_s1 + $0x248] sm:$0xff] }
 0x352   :  { %v11349_v32 = vpop.f32.mrb[44].mxu0 }
 0x353   :  { %v14004_v10 = vadd.f32 %v14001_v33, %v11349_v32  ;;  %v3430_v1 = vpop.f32.mrb[45].mxu0 }
 0x354   :  { %v14007_v35 = vadd.f32 %v14001_v33, %v3430_v1  ;;  %v11350_v34 = vpop.f32.mrb[46].mxu0 }
 0x355   :  { %v14010_v36 = vadd.f32 %v14001_v33, %v11350_v34  ;;  %v3433_v37 = vpop.f32.mrb[47].mxu0 }
 0x356   :  { %v11121_v38 = vpop.f32.mrb[28].mxu1  ;;  %v14013_v40 = vadd.f32 %v14001_v33, %v3433_v37  ;;  %v12695_v37 = vld [vmem:[%s16611_s12 + $0x18] sm:$0xff]  }
 0x357   :  { %v1696_v41 = vpop.f32.mrb[29].mxu1  ;;  %v3562_v42 = vpack.c.bf16 %v14010_v36, %v14004_v10  ;;  %v9830_v10 = vld [vmem:[%s16599_s0 + $0x298] sm:$0xff]  ;;  %v14321_v36 = vld [vmem:[%s16610_s11] sm:$0xff]  }
 0x358   :  { %v11122_v43 = vpop.f32.mrb[30].mxu1  ;;  %v3561_v44 = vpack.c.bf16 %v14013_v40, %v14007_v35 }
 0x359   :  { %v1824_v45 = vpack.c.bf16 %v11122_v43, %v11121_v38  ;;  %v1699_v46 = vpop.f32.mrb[31].mxu1  ;;  %v12696_v38 = vld [vmem:[%s16611_s12 + $0x20] ss:$0 sps:$4 sm:$0x11]  }
 0x35a   :  { %v1823_v49 = vpack.c.bf16 %v1699_v46, %v1696_v41  ;;  %v11353_v39 = vpop.f32.mrb[48].mxu0  ;;  %v3577_v18 = vmax.bf16 %v12750_v63, %v3561_v44 }
 0x35b   :  { %v14020_v50 = vadd.f32 %v14001_v33, %v11353_v39  ;;  %v3446_v51 = vpop.f32.mrb[49].mxu0  ;;  %v1840_v58 = vmax.bf16 %v12750_v63, %v1824_v45 }
 0x35c   :  { %v1839_v53 = vmax.bf16 %v12750_v63, %v1823_v49  ;;  %v14024_v54 = vadd.f32 %v14001_v33, %v3446_v51  ;;  %v11354_v57 = vpop.f32.mrb[50].mxu0 }
 0x35d   :  { %v14028_v59 = vadd.f32 %v14001_v33, %v11354_v57  ;;  %v3449_v47 = vpop.f32.mrb[51].mxu0  ;;  %v14072_v57 = vand.u32 %v12696_v38, %v13143_v0  ;;  %v14099_v38 = vld [vmem:[%s16608_s9] sm:$0xff]  }
 0x35e   :  { %v11125_v52 = vpop.f32.mrb[32].mxu1  ;;  %11161 = vmatprep.mubr.msk.bf16.mxu1 %vm1337_vm6, %v1839_v53  ;;  %v14035_v61 = vadd.f32 %v14001_v33, %v3449_v47 }
 0x35f   :  { %v1712_v2 = vpop.f32.mrb[33].mxu1  ;;  %11162 = vmatmul.mubr.msk.bf16.vlgmr.msra.gmra.mrb[60].mxu1 %vm1337_vm6, %v1840_v58  ;;  %v16614_v40 = vpack.c.bf16 %v14028_v59, %v14020_v50  ;;  %v9833_v50 = vld [vmem:[%s16599_s0 + $0x2b0] sm:$0xff]  ;;  %v9834_v59 = vld [vmem:[%s16599_s0 + $0x2b8] sm:$0xff] }
 0x360   :  { %v11126_v5 = vpop.f32.mrb[34].mxu1  ;;  %11194 = vmatpush3.bf16.msra.mxu1 %v12692_v7  ;;  %v16613_v23 = vpack.c.bf16 %v14035_v61, %v14024_v54  ;;  %v9831_v61 = vld [vmem:[%s16599_s0 + $0x2a0] sm:$0xff] }
 0x361   :  { %v1826_v6 = vpack.c.bf16 %v11126_v5, %v11125_v52  ;;  %v1715_v8 = vpop.f32.mrb[35].mxu1  ;;  %11195 = vmatprep.subr.bf16.mxu1 %v12693_v60 }
 0x362   :  { %v1825_v15 = vpack.c.bf16 %v1715_v8, %v1712_v2  ;;  %v11357_v17 = vpop.f32.mrb[52].mxu0  ;;  %v3579_v25 = vmax.bf16 %v12750_v63, %v16613_v23  ;;  %v9865_v23 = vld [vmem:[%s16600_s1 + $0x230] sm:$0xff] }
 0x363   :  { %v14046_v21 = vadd.f32 %v14001_v33, %v11357_v17  ;;  %v3462_v24 = vpop.f32.mrb[53].mxu0  ;;  %v1842_v7 = vmax.bf16 %v12750_v63, %v1826_v6 }
 0x364   :  { %v1841_v26 = vmax.bf16 %v12750_v63, %v1825_v15  ;;  %v14050_v28 = vadd.f32 %v14001_v33, %v3462_v24  ;;  %v11358_v32 = vpop.f32.mrb[54].mxu0  ;;  %11196 = vmatpush3.bf16.msra.mxu1 %v12693_v60 }
 0x365   :  { %v14054_v1 = vadd.f32 %v14001_v33, %v11358_v32  ;;  %v3465_v34 = vpop.f32.mrb[55].mxu0  ;;  %11197 = vmatprep.subr.bf16.mxu1 %v12694_v12 }
 0x366   :  { %v11129_v41 = vpop.f32.mrb[36].mxu1  ;;  %11165 = vmatprep.mubr.msk.bf16.mxu1 %vm1337_vm6, %v1841_v26  ;;  %v14064_v43 = vadd.f32 %v14001_v33, %v3465_v34 }
 0x367   :  { %v1728_v45 = vpop.f32.mrb[37].mxu1  ;;  %11166 = vmatmul.mubr.msk.bf16.gmra.mrb[64].mxu1 %vm1337_vm6, %v1842_v7 }
 0x368   :  { %v11130_v49 = vpop.f32.mrb[38].mxu1  ;;  %11198 = vmatpush3.bf16.msra.mxu1 %v12694_v12  ;;  %v16615_v44 = vpack.c.bf16 %v14064_v43, %v14050_v28  ;;  %v4598_v28 = vpack.c.bf16 %v9834_v59, %v9833_v50  ;;  %v16616_v43 = vpack.c.bf16 %v14054_v1, %v14046_v21  ;;  %v9837_v21 = vld [vmem:[%s16599_s0 + $0x2d0] sm:$0xff]  ;;  %v9838_v1 = vld [vmem:[%s16599_s0 + $0x2d8] sm:$0xff] }
 0x369   :  { %v1828_v51 = vpack.c.bf16 %v11130_v49, %v11129_v41  ;;  %v1731_v53 = vpop.f32.mrb[39].mxu1  ;;  %11199 = vmatprep.subr.bf16.mxu1 %v12695_v37  ;;  %v9877_v59 = vld [vmem:[%s16600_s1 + $0x290] sm:$0xff] }
 0x36a   :  { %v1827_v58 = vpack.c.bf16 %v1731_v53, %v1728_v45  ;;  %v11361_v47 = vpop.f32.mrb[56].mxu0  ;;  %v3581_v54 = vmax.bf16 %v12750_v63, %v16615_v44  ;;  %v9873_v44 = vld [vmem:[%s16600_s1 + $0x270] sm:$0xff] }
 0x36b   :  { %v14075_v60 = vadd.f32 %v14001_v33, %v11361_v47  ;;  %v3478_v52 = vpop.f32.mrb[57].mxu0  ;;  %v1844_v8 = vmax.bf16 %v12750_v63, %v1828_v51 }
 0x36c   :  { %v1843_v2 = vmax.bf16 %v12750_v63, %v1827_v58  ;;  %v14079_v5 = vadd.f32 %v14001_v33, %v3478_v52  ;;  %v11362_v6 = vpop.f32.mrb[58].mxu0  ;;  %11200 = vmatpush3.bf16.msra.mxu1 %v12695_v37 }
 0x36d   :  { %v14083_v12 = vadd.f32 %v14001_v33, %v11362_v6  ;;  %v3481_v0 = vpop.f32.mrb[59].mxu0  ;;  %11201 = vmatprep.subr.bf16.mxu1 %v14072_v57 }
 0x36e   :  { %v11133_v15 = vpop.f32.mrb[40].mxu1  ;;  %11169 = vmatprep.mubr.msk.bf16.mxu1 %vm1337_vm6, %v1843_v2  ;;  %v14088_v17 = vadd.f32 %v14001_v33, %v3481_v0 }
 0x36f   :  { %v1744_v24 = vpop.f32.mrb[41].mxu1  ;;  %11170 = vmatmul.mubr.msk.bf16.gmra.mrb[68].mxu1 %vm1337_vm6, %v1844_v8 }
 0x370   :  { %v11134_v32 = vpop.f32.mrb[42].mxu1  ;;  %11202 = vmatpush3.bf16.msra.mxu1 %v14072_v57 }
 0x371   :  { %v1830_v34 = vpack.c.bf16 %v11134_v32, %v11133_v15  ;;  %v1747_v37 = vpop.f32.mrb[43].mxu1  ;;  %11371 = vmatprep.subr.bf16.mxu1 %v14099_v38 }
 0x372   :  { %v1829_v41 = vpack.c.bf16 %v1747_v37, %v1744_v24  ;;  %v11365_v45 = vpop.f32.mrb[60].mxu0 }
 0x373   :  { %v14103_v49 = vadd.f32 %v14001_v33, %v11365_v45  ;;  %v3494_v51 = vpop.f32.mrb[61].mxu0  ;;  %v1846_v52 = vmax.bf16 %v12750_v63, %v1830_v34 }
 0x374   :  { %v1845_v53 = vmax.bf16 %v12750_v63, %v1829_v41  ;;  %v14107_v58 = vadd.f32 %v14001_v33, %v3494_v51  ;;  %v11366_v47 = vpop.f32.mrb[62].mxu0 }
 0x375   :  { %v14111_v2 = vadd.f32 %v14001_v33, %v11366_v47  ;;  %v3497_v6 = vpop.f32.mrb[63].mxu0 }
 0x376   :  { %v11137_v8 = vpop.f32.mrb[44].mxu1  ;;  %11173 = vmatprep.mubr.msk.bf16.mxu1 %vm1337_vm6, %v1845_v53  ;;  %v14115_v0 = vadd.f32 %v14001_v33, %v3497_v6 }
 0x377   :  { %v1760_v15 = vpop.f32.mrb[45].mxu1  ;;  %11174 = vmatmul.mubr.msk.bf16.gmra.mrb[72].mxu1 %vm1337_vm6, %v1846_v52 }
 0x378   :  { %v11138_v32 = vpop.f32.mrb[46].mxu1 }
 0x379   :  { %v1832_v37 = vpack.c.bf16 %v11138_v32, %v11137_v8  ;;  %v1763_v41 = vpop.f32.mrb[47].mxu1 }
 0x37a   :  { %v1831_v45 = vpack.c.bf16 %v1763_v41, %v1760_v15  ;;  %v11369_v51 = vpop.f32.mrb[64].mxu0 }
 0x37b   :  { %v14123_v47 = vadd.f32 %v14001_v33, %v11369_v51  ;;  %v3510_v53 = vpop.f32.mrb[65].mxu0  ;;  %v1848_v24 = vmax.bf16 %v12750_v63, %v1832_v37 }
 0x37c   :  { %v1847_v6 = vmax.bf16 %v12750_v63, %v1831_v45  ;;  %v14127_v26 = vadd.f32 %v14001_v33, %v3510_v53  ;;  %v11370_v52 = vpop.f32.mrb[66].mxu0 }
 0x37d   :  { %v14131_v7 = vadd.f32 %v14001_v33, %v11370_v52  ;;  %v3513_v34 = vpop.f32.mrb[67].mxu0 }
 0x37e   :  { %v11141_v8 = vpop.f32.mrb[48].mxu1  ;;  %11177 = vmatprep.mubr.msk.bf16.mxu1 %vm1337_vm6, %v1847_v6  ;;  %v14135_v15 = vadd.f32 %v14001_v33, %v3513_v34 }
 0x37f   :  { %v1776_v32 = vpop.f32.mrb[49].mxu1  ;;  %11178 = vmatmul.mubr.msk.bf16.gmra.mrb[76].mxu1 %vm1337_vm6, %v1848_v24 }
 0x380   :  { %v11142_v45 = vpop.f32.mrb[50].mxu1  ;;  %v3571_v37 = vpack.c.bf16 %v14135_v15, %v14127_v26  ;;  %v9862_v26 = vld [vmem:[%s16600_s1 + $0x218] sm:$0xff]  ;;  %v12708_v15 = vld [vmem:[%s16606_s7] sm:$0x1f]  }
 0x381   :  { %v1834_v51 = vpack.c.bf16 %v11142_v45, %v11141_v8  ;;  %v1779_v53 = vpop.f32.mrb[51].mxu1 }
 0x382   :  { %v1833_v52 = vpack.c.bf16 %v1779_v53, %v1776_v32 }
 0x383   :  { %v1850_v6 = vmax.bf16 %v12750_v63, %v1834_v51 }
 0x384   :  { %v1849_v46 = vmax.bf16 %v12750_v63, %v1833_v52 }
 0x386   :  { %v11145_v39 = vpop.f32.mrb[52].mxu1  ;;  %11181 = vmatprep.mubr.msk.bf16.mxu1 %vm1337_vm6, %v1849_v46 }
 0x387   :  { %v1792_v33 = vpop.f32.mrb[53].mxu1  ;;  %11182 = vmatmul.mubr.msk.bf16.gmra.mrb[80].mxu1 %vm1337_vm6, %v1850_v6 }
 0x388   :  { %v11146_v24 = vpop.f32.mrb[54].mxu1 }
 0x389   :  { %v1836_v34 = vpack.c.bf16 %v11146_v24, %v11145_v39  ;;  %v1795_v41 = vpop.f32.mrb[55].mxu1  ;;  %v9813_v24 = vld [vmem:[%s16599_s0 + $0x210] sm:$0xff] }
 0x38a   :  { %v1835_v56 = vpack.c.bf16 %v1795_v41, %v1792_v33  ;;  %v9812_v33 = vld [vmem:[%s16599_s0 + $0x208] sm:$0xff] }
 0x38b   :  { %v1852_v8 = vmax.bf16 %v12750_v63, %v1836_v34 }
 0x38c   :  { %v1851_v62 = vmax.bf16 %v12750_v63, %v1835_v56 }
 0x38e   :  { %v11149_v45 = vpop.f32.mrb[56].mxu1  ;;  %11185 = vmatprep.mubr.msk.bf16.mxu1 %vm1337_vm6, %v1851_v62  ;;  %v9811_v62 = vld [vmem:[%s16599_s0 + $0x200] sm:$0xff] }
 0x38f   :  { %v1808_v32 = vpop.f32.mrb[57].mxu1  ;;  %11186 = vmatmul.mubr.msk.bf16.gmra.mrb[84].mxu1 %vm1337_vm6, %v1852_v8  ;;  %v4587_v8 = vpack.c.bf16 %v9812_v33, %v9811_v62  ;;  %v9817_v33 = vld [vmem:[%s16599_s0 + $0x230] sm:$0xff] }
 0x390   :  { %v11150_v51 = vpop.f32.mrb[58].mxu1 }
 0x391   :  { %v1838_v53 = vpack.c.bf16 %v11150_v51, %v11149_v45  ;;  %v1811_v46 = vpop.f32.mrb[59].mxu1  ;;  %v9814_v45 = vld [vmem:[%s16599_s0 + $0x218] sm:$0xff]  ;;  %v9816_v51 = vld [vmem:[%s16599_s0 + $0x228] sm:$0xff]  ;;  %11541 = vmatprep.mubr.msk.bf16.mxu0 %vm136_vm2, %v4587_v8 }
 0x392   :  { %v1837_v52 = vpack.c.bf16 %v1811_v46, %v1808_v32  ;;  %v9815_v32 = vld [vmem:[%s16599_s0 + $0x220] sm:$0xff] }
 0x393   :  { %v1854_v39 = vmax.bf16 %v12750_v63, %v1838_v53 }
 0x394   :  { %v1853_v6 = vmax.bf16 %v12750_v63, %v1837_v52  ;;  %v4588_v52 = vpack.c.bf16 %v9814_v45, %v9813_v24  ;;  %v9819_v24 = vld [vmem:[%s16599_s0 + $0x240] sm:$0xff] }
 0x396   :  { %11189 = vmatprep.mubr.msk.bf16.mxu1 %vm1337_vm6, %v1853_v6  ;;  %v4589_v6 = vpack.c.bf16 %v9816_v51, %v9815_v32  ;;  %11542 = vmatmul.mubr.msk.bf16.vlgmr.msra.gmra.mrb[68].mxu0 %vm136_vm2, %v4588_v52  ;;  %v12700_v52 = vld [vmem:[%s16608_s9 + $0x8] sm:$0xff]  }
 0x397   :  { %11190 = vmatmul.mubr.msk.bf16.gmra.mrb[88].mxu1 %vm1337_vm6, %v1854_v39  ;;  %11574 = vmatpush3.bf16.msra.mxu0 %v13831_v14 }
 0x398   :  { %11545 = vmatprep.mubr.msk.bf16.mxu0 %vm136_vm2, %v4589_v6  ;;  %11607 = vmatprep.subr.bf16.mxu0 %v12872_v22 }
 0x432   :  { %v11163_v56 = vpop.f32.mrb[60].mxu1 }
 0x433   :  { %v1967_v41 = vpop.f32.mrb[61].mxu1 }
 0x434   :  { %v11164_v34 = vpop.f32.mrb[62].mxu1 }
 0x435   :  { %v2095_v53 = vpack.c.bf16 %v11164_v34, %v11163_v56  ;;  %v1970_v46 = vpop.f32.mrb[63].mxu1  ;;  %v9818_v56 = vld [vmem:[%s16599_s0 + $0x238] sm:$0xff]  ;;  %v9820_v34 = vld [vmem:[%s16599_s0 + $0x248] sm:$0xff] }
 0x436   :  { %v2094_v39 = vpack.c.bf16 %v1970_v46, %v1967_v41  ;;  %v4590_v32 = vpack.c.bf16 %v9818_v56, %v9817_v33  ;;  %v4591_v51 = vpack.c.bf16 %v9820_v34, %v9819_v24  ;;  %v12701_v56 = vld [vmem:[%s16608_s9 + $0x10] sm:$0xff]   ;;  %v9824_v24 = vld [vmem:[%s16599_s0 + $0x268] sm:$0xff] }
 0x437   :  { %v2111_v41 = vmax.bf16 %v12750_v63, %v2095_v53 }
 0x438   :  { %v2110_v62 = vmax.bf16 %v12750_v63, %v2094_v39  ;;  %11546 = vmatmul.mubr.msk.bf16.gmra.mrb[72].mxu0 %vm136_vm2, %v4590_v32 }
 0x439   :  { %11549 = vmatprep.mubr.msk.bf16.mxu0 %vm136_vm2, %v4591_v51 }
 0x43a   :  { %v11167_v8 = vpop.f32.mrb[64].mxu1  ;;  %11203 = vmatprep.mubr.msk.bf16.mxu1 %vm1337_vm6, %v2110_v62  ;;  %v9822_v62 = vld [vmem:[%s16599_s0 + $0x258] sm:$0xff] }
 0x43b   :  { %v1983_v45 = vpop.f32.mrb[65].mxu1  ;;  %11204 = vmatmul.mubr.msk.bf16.vlgmr.msra.gmra.mrb[92].mxu1 %vm1337_vm6, %v2111_v41  ;;  %v9823_v41 = vld [vmem:[%s16599_s0 + $0x260] sm:$0xff] }
 0x43c   :  { %v11168_v14 = vpop.f32.mrb[66].mxu1  ;;  %11372 = vmatpush3.bf16.msra.mxu1 %v14099_v38  ;;  %v9821_v38 = vld [vmem:[%s16599_s0 + $0x250] sm:$0xff] }
 0x43d   :  { %v2097_v53 = vpack.c.bf16 %v11168_v14, %v11167_v8  ;;  %v1986_v46 = vpop.f32.mrb[67].mxu1  ;;  %11373 = vmatprep.subr.bf16.mxu1 %v12700_v52  ;;  %v4593_v14 = vpack.c.bf16 %v9824_v24, %v9823_v41 }
 0x43e   :  { %v2096_v6 = vpack.c.bf16 %v1986_v46, %v1983_v45  ;;  %v4592_v45 = vpack.c.bf16 %v9822_v62, %v9821_v38  ;;  %v12702_v46 = vld [vmem:[%s16608_s9 + $0x18] sm:$0xff]  }
 0x43f   :  { %v2113_v33 = vmax.bf16 %v12750_v63, %v2097_v53  ;;  %v9826_v38 = vld [vmem:[%s16599_s0 + $0x278] sm:$0xff] }
 0x440   :  { %v2112_v39 = vmax.bf16 %v12750_v63, %v2096_v6  ;;  %11374 = vmatpush3.bf16.msra.mxu1 %v12700_v52  ;;  %11550 = vmatmul.mubr.msk.bf16.gmra.mrb[76].mxu0 %vm136_vm2, %v4592_v45  ;;  %v12703_v45 = vld [vmem:[%s16609_s10] sm:$0xff]  }
 0x441   :  { %11375 = vmatprep.subr.bf16.mxu1 %v12701_v56  ;;  %11553 = vmatprep.mubr.msk.bf16.mxu0 %vm136_vm2, %v4593_v14 }
 0x442   :  { %v11171_v34 = vpop.f32.mrb[68].mxu1  ;;  %11207 = vmatprep.mubr.msk.bf16.mxu1 %vm1337_vm6, %v2112_v39  ;;  %v9825_v39 = vld [vmem:[%s16599_s0 + $0x270] sm:$0xff] }
 0x443   :  { %v1999_v8 = vpop.f32.mrb[69].mxu1  ;;  %11208 = vmatmul.mubr.msk.bf16.gmra.mrb[96].mxu1 %vm1337_vm6, %v2113_v33  ;;  %v4594_v41 = vpack.c.bf16 %v9826_v38, %v9825_v39 }
 0x444   :  { %v11172_v32 = vpop.f32.mrb[70].mxu1  ;;  %11376 = vmatpush3.bf16.msra.mxu1 %v12701_v56 }
 0x445   :  { %v2099_v51 = vpack.c.bf16 %v11172_v32, %v11171_v34  ;;  %v2002_v53 = vpop.f32.mrb[71].mxu1  ;;  %11377 = vmatprep.subr.bf16.mxu1 %v12702_v46 }
 0x446   :  { %v2098_v52 = vpack.c.bf16 %v2002_v53, %v1999_v8 }
 0x447   :  { %v2115_v62 = vmax.bf16 %v12750_v63, %v2099_v51 }
 0x448   :  { %v2114_v6 = vmax.bf16 %v12750_v63, %v2098_v52  ;;  %11378 = vmatpush3.bf16.msra.mxu1 %v12702_v46  ;;  %11554 = vmatmul.mubr.msk.bf16.gmra.mrb[80].mxu0 %vm136_vm2, %v4594_v41 }
 0x449   :  { %11379 = vmatprep.subr.bf16.mxu1 %v13148_v4  ;;  %11557 = vmatprep.mubr.msk.bf16.mxu0 %vm136_vm2, %v4595_v30  ;;  %v9869_v30 = vld [vmem:[%s16600_s1 + $0x250] sm:$0xff] }
 0x44a   :  { %v11175_v33 = vpop.f32.mrb[72].mxu1  ;;  %11211 = vmatprep.mubr.msk.bf16.mxu1 %vm1337_vm6, %v2114_v6 }
 0x44b   :  { %v2015_v56 = vpop.f32.mrb[73].mxu1  ;;  %11212 = vmatmul.mubr.msk.bf16.gmra.mrb[100].mxu1 %vm1337_vm6, %v2115_v62 }
 0x44c   :  { %v11176_v24 = vpop.f32.mrb[74].mxu1  ;;  %11380 = vmatpush3.bf16.msra.mxu1 %v13148_v4 }
 0x44d   :  { %v2101_v34 = vpack.c.bf16 %v11176_v24, %v11175_v33  ;;  %v2018_v8 = vpop.f32.mrb[75].mxu1  ;;  %11413 = vmatprep.subr.bf16.mxu1 %v12703_v45 }
 0x44e   :  { %v2100_v32 = vpack.c.bf16 %v2018_v8, %v2015_v56 }
 0x44f   :  { %v2117_v51 = vmax.bf16 %v12750_v63, %v2101_v34 }
 0x450   :  { %v2116_v14 = vmax.bf16 %v12750_v63, %v2100_v32 }
 0x452   :  { %v11179_v53 = vpop.f32.mrb[76].mxu1  ;;  %11215 = vmatprep.mubr.msk.bf16.mxu1 %vm1337_vm6, %v2116_v14 }
 0x453   :  { %v2031_v46 = vpop.f32.mrb[77].mxu1  ;;  %11216 = vmatmul.mubr.msk.bf16.gmra.mrb[104].mxu1 %vm1337_vm6, %v2117_v51 }
 0x454   :  { %v11180_v52 = vpop.f32.mrb[78].mxu1 }
 0x455   :  { %v2103_v6 = vpack.c.bf16 %v11180_v52, %v11179_v53  ;;  %v2034_v39 = vpop.f32.mrb[79].mxu1 }
 0x456   :  { %v2102_v38 = vpack.c.bf16 %v2034_v39, %v2031_v46 }
 0x457   :  { %v2119_v33 = vmax.bf16 %v12750_v63, %v2103_v6 }
 0x458   :  { %v2118_v62 = vmax.bf16 %v12750_v63, %v2102_v38 }
 0x45a   :  { %v11183_v56 = vpop.f32.mrb[80].mxu1  ;;  %11219 = vmatprep.mubr.msk.bf16.mxu1 %vm1337_vm6, %v2118_v62 }
 0x45b   :  { %v2047_v41 = vpop.f32.mrb[81].mxu1  ;;  %11220 = vmatmul.mubr.msk.bf16.gmra.mrb[108].mxu1 %vm1337_vm6, %v2119_v33 }
 0x45c   :  { %v11184_v24 = vpop.f32.mrb[82].mxu1 }
 0x45d   :  { %v2105_v34 = vpack.c.bf16 %v11184_v24, %v11183_v56  ;;  %v2050_v8 = vpop.f32.mrb[83].mxu1 }
 0x45e   :  { %v2104_v32 = vpack.c.bf16 %v2050_v8, %v2047_v41 }
 0x45f   :  { %v2121_v51 = vmax.bf16 %v12750_v63, %v2105_v34 }
 0x460   :  { %v2120_v14 = vmax.bf16 %v12750_v63, %v2104_v32 }
 0x462   :  { %v11187_v53 = vpop.f32.mrb[84].mxu1  ;;  %11223 = vmatprep.mubr.msk.bf16.mxu1 %vm1337_vm6, %v2120_v14 }
 0x463   :  { %v2063_v46 = vpop.f32.mrb[85].mxu1  ;;  %11224 = vmatmul.mubr.msk.bf16.gmra.mrb[112].mxu1 %vm1337_vm6, %v2121_v51 }
 0x464   :  { %v11188_v52 = vpop.f32.mrb[86].mxu1 }
 0x465   :  { %v2107_v6 = vpack.c.bf16 %v11188_v52, %v11187_v53  ;;  %v2066_v39 = vpop.f32.mrb[87].mxu1  ;;  %v3573_v53 = vmax.bf16 %v12750_v63, %v3557_v20  ;;  %v3575_v52 = vmax.bf16 %v12750_v63, %v3559_v31  ;;  %v3578_v20 = vmax.bf16 %v12750_v63, %v3562_v42  ;;  %v9829_v31 = vld [vmem:[%s16599_s0 + $0x290] sm:$0xff] }
 0x466   :  { %v2106_v38 = vpack.c.bf16 %v2066_v39, %v2063_v46  ;;  %v3574_v46 = vmax.bf16 %v12750_v63, %v3558_v19  ;;  %v12706_v19 = vld [vmem:[%s16609_s10 + $0x18] sm:$0xff]   ;;  %v4596_v35 = vpack.c.bf16 %v9830_v10, %v9829_v31  ;;  %v3580_v42 = vmax.bf16 %v12750_v63, %v16614_v40  ;;  %v9872_v40 = vld [vmem:[%s16600_s1 + $0x268] sm:$0xff] }
 0x467   :  { %v2123_v33 = vmax.bf16 %v12750_v63, %v2107_v6  ;;  %v3582_v39 = vmax.bf16 %v12750_v63, %v16616_v43  ;;  %v9870_v31 = vld [vmem:[%s16600_s1 + $0x258] sm:$0xff] }
 0x468   :  { %v2122_v62 = vmax.bf16 %v12750_v63, %v2106_v38  ;;  %11558 = vmatmul.mubr.msk.bf16.gmra.mrb[84].mxu0 %vm136_vm2, %v4596_v35  ;;  %v16617_v38 = vpack.c.bf16 %v14088_v17, %v14079_v5  ;;  %v4600_v5 = vpack.c.bf16 %v9838_v1, %v9837_v21  ;;  %v16618_v17 = vpack.c.bf16 %v14083_v12, %v14075_v60  ;;  %v9841_v60 = vld [vmem:[%s16599_s0 + $0x2f0] sm:$0xff]  ;;  %v9842_v12 = vld [vmem:[%s16599_s0 + $0x2f8] sm:$0xff]  ;;  %v9871_v35 = vld [vmem:[%s16600_s1 + $0x260] sm:$0xff] }
 0x469   :  { %v4882_v10 = vpack.c.bf16 %v9870_v31, %v9869_v30  ;;  %v9883_v21 = vld [vmem:[%s16600_s1 + $0x2c0] sm:$0xff]  ;;  %v9884_v1 = vld [vmem:[%s16600_s1 + $0x2c8] sm:$0xff]  ;;  %v9922_v30 = vld [vmem:[%s16601_s2 + $0x278] sm:$0xff] }
 0x46a   :  { %v11191_v56 = vpop.f32.mrb[88].mxu1  ;;  %11227 = vmatprep.mubr.msk.bf16.mxu1 %vm1337_vm6, %v2122_v62  ;;  %v3583_v62 = vmax.bf16 %v12750_v63, %v16617_v38  ;;  %v9880_v38 = vld [vmem:[%s16600_s1 + $0x2a8] sm:$0xff] }
 0x46b   :  { %v2079_v41 = vpop.f32.mrb[89].mxu1  ;;  %11228 = vmatmul.mubr.msk.bf16.gmra.mrb[116].mxu1 %vm1337_vm6, %v2123_v33  ;;  %v9835_v33 = vld [vmem:[%s16599_s0 + $0x2c0] sm:$0xff] }
 0x46c   :  { %v11192_v24 = vpop.f32.mrb[90].mxu1 }
 0x46d   :  { %v2109_v34 = vpack.c.bf16 %v11192_v24, %v11191_v56  ;;  %v2082_v8 = vpop.f32.mrb[91].mxu1  ;;  %v9836_v56 = vld [vmem:[%s16599_s0 + $0x2c8] sm:$0xff]  ;;  %v3584_v24 = vmax.bf16 %v12750_v63, %v16618_v17  ;;  %v9885_v17 = vld [vmem:[%s16600_s1 + $0x2d0] sm:$0xff] }
 0x46e   :  { %v2108_v32 = vpack.c.bf16 %v2082_v8, %v2079_v41  ;;  %v4599_v41 = vpack.c.bf16 %v9836_v56, %v9835_v33  ;;  %v9881_v33 = vld [vmem:[%s16600_s1 + $0x2b0] sm:$0xff]  ;;  %v9882_v56 = vld [vmem:[%s16600_s1 + $0x2b8] sm:$0xff] }
 0x46f   :  { %v2125_v51 = vmax.bf16 %v12750_v63, %v2109_v34  ;;  %v16619_v34 = vpack.c.bf16 %v14115_v0, %v14107_v58  ;;  %v4602_v58 = vpack.c.bf16 %v9842_v12, %v9841_v60  ;;  %v16620_v0 = vpack.c.bf16 %v14111_v2, %v14103_v49  ;;  %v9861_v49 = vld [vmem:[%s16600_s1 + $0x210] sm:$0xff]  ;;  %v9890_v60 = vld [vmem:[%s16600_s1 + $0x2f8] sm:$0xff] }
 0x470   :  { %v2124_v14 = vmax.bf16 %v12750_v63, %v2108_v32  ;;  %v9839_v32 = vld [vmem:[%s16599_s0 + $0x2e0] sm:$0xff]  ;;  %v4878_v2 = vpack.c.bf16 %v9862_v26, %v9861_v49  ;;  %v9912_v49 = vld [vmem:[%s16601_s2 + $0x228] sm:$0xff] }
 0x471   :  { %v3585_v8 = vmax.bf16 %v12750_v63, %v16619_v34 }
 0x472   :  { %11231 = vmatprep.mubr.msk.bf16.mxu1 %vm1337_vm6, %v2124_v14  ;;  %v9840_v14 = vld [vmem:[%s16599_s0 + $0x2e8] sm:$0xff] }
 0x473   :  { %11232 = vmatmul.mubr.msk.bf16.gmra.mrb[120].mxu1 %vm1337_vm6, %v2125_v51  ;;  %v4601_v51 = vpack.c.bf16 %v9840_v14, %v9839_v32  ;;  %v9888_v32 = vld [vmem:[%s16600_s1 + $0x2e8] sm:$0xff] }
 0x474   :  { %11381 = vmatprep.mubr.msk.bf16.mxu1 %vm1337_vm6, %v3573_v53  ;;  %v3586_v53 = vmax.bf16 %v12750_v63, %v16620_v0  ;;  %v9908_v0 = vld [vmem:[%s16601_s2 + $0x208] sm:$0xff] }
 0x47b   :  { %11382 = vmatmul.mubr.msk.bf16.vlgmr.msra.gmra.mrb[124].mxu1 %vm1337_vm6, %v3574_v46  ;;  %v3587_v46 = vmax.bf16 %v12750_v63, %v3571_v37  ;;  %v16621_v37 = vpack.c.bf16 %v14131_v7, %v14123_v47  ;;  %v9866_v7 = vld [vmem:[%s16600_s1 + $0x238] sm:$0xff] }
 0x47c   :  { %11385 = vmatprep.mubr.msk.bf16.mxu1 %vm1337_vm6, %v3575_v52  ;;  %11414 = vmatpush3.bf16.msra.mxu1 %v12703_v45  ;;  %v9832_v45 = vld [vmem:[%s16599_s0 + $0x2a8] sm:$0xff]  ;;  %v9859_v52 = vld [vmem:[%s16600_s1 + $0x200] sm:$0xff]  ;;  %v4880_v47 = vpack.c.bf16 %v9866_v7, %v9865_v23  ;;  %v9918_v23 = vld [vmem:[%s16601_s2 + $0x258] sm:$0xff] }
 0x47d   :  { %11415 = vmatprep.subr.bf16.mxu1 %v12704_v13  ;;  %v4597_v6 = vpack.c.bf16 %v9832_v45, %v9831_v61  ;;  %v9875_v45 = vld [vmem:[%s16600_s1 + $0x280] sm:$0xff] }
 0x47f   :  { %11561 = vmatprep.mubr.msk.bf16.mxu0 %vm136_vm2, %v4597_v6  ;;  %v9876_v6 = vld [vmem:[%s16600_s1 + $0x288] sm:$0xff] }
 0x480   :  { %11416 = vmatpush3.bf16.msra.mxu1 %v12704_v13  ;;  %11562 = vmatmul.mubr.msk.bf16.gmra.mrb[88].mxu0 %vm136_vm2, %v4598_v28  ;;  %v9860_v13 = vld [vmem:[%s16600_s1 + $0x208] sm:$0xff]  ;;  %v4885_v50 = vpack.c.bf16 %v9876_v6, %v9875_v45  ;;  %v9878_v28 = vld [vmem:[%s16600_s1 + $0x298] sm:$0xff]  ;;  %v9927_v6 = vld [vmem:[%s16601_s2 + $0x2a0] sm:$0xff] }
 0x481   :  { %11417 = vmatprep.subr.bf16.mxu1 %v12705_v16  ;;  %11565 = vmatprep.mubr.msk.bf16.mxu0 %vm136_vm2, %v4599_v41  ;;  %v4886_v43 = vpack.c.bf16 %v9878_v28, %v9877_v59  ;;  %v4888_v41 = vpack.c.bf16 %v9882_v56, %v9881_v33  ;;  %v9929_v59 = vld [vmem:[%s16601_s2 + $0x2b0] sm:$0xff] }
 0x483   :  { %11386 = vmatmul.mubr.msk.bf16.gmra.mrb[128].mxu1 %vm1337_vm6, %v3576_v11  ;;  %v4877_v11 = vpack.c.bf16 %v9860_v13, %v9859_v52  ;;  %v9910_v52 = vld [vmem:[%s16601_s2 + $0x218] sm:$0xff] }
 0x484   :  { %11389 = vmatprep.mubr.msk.bf16.mxu1 %vm1337_vm6, %v3577_v18  ;;  %11418 = vmatpush3.bf16.msra.mxu1 %v12705_v16  ;;  %v3588_v16 = vmax.bf16 %v12750_v63, %v16621_v37  ;;  %v9863_v18 = vld [vmem:[%s16600_s1 + $0x220] sm:$0xff] }
 0x485   :  { %11419 = vmatprep.subr.bf16.mxu1 %v12706_v19 }
 0x488   :  { %11420 = vmatpush3.bf16.msra.mxu1 %v12706_v19  ;;  %11566 = vmatmul.mubr.msk.bf16.gmra.mrb[92].mxu0 %vm136_vm2, %v4600_v5  ;;  %v9864_v19 = vld [vmem:[%s16600_s1 + $0x228] sm:$0xff]  ;;  %v4889_v5 = vpack.c.bf16 %v9884_v1, %v9883_v21 }
 0x489   :  { %11421 = vmatprep.subr.bf16.mxu1 %v13454_v48  ;;  %11569 = vmatprep.mubr.msk.bf16.mxu0 %vm136_vm2, %v4601_v51  ;;  %v9889_v51 = vld [vmem:[%s16600_s1 + $0x2f0] sm:$0xff] }
 0x48a   :  { %v4892_v12 = vpack.c.bf16 %v9890_v60, %v9889_v51  ;;  %v9936_v51 = vld [vmem:[%s16601_s2 + $0x2e8] sm:$0xff] }
 0x48b   :  { %11390 = vmatmul.mubr.msk.bf16.gmra.mrb[132].mxu1 %vm1337_vm6, %v3578_v20  ;;  %v4879_v20 = vpack.c.bf16 %v9864_v19, %v9863_v18  ;;  %v9916_v18 = vld [vmem:[%s16601_s2 + $0x248] sm:$0xff] }
 0x48c   :  { %11393 = vmatprep.mubr.msk.bf16.mxu1 %vm1337_vm6, %v3579_v25  ;;  %11422 = vmatpush3.bf16.msra.mxu1 %v13454_v48  ;;  %v9867_v25 = vld [vmem:[%s16600_s1 + $0x240] sm:$0xff] }
 0x48d   :  { %11455 = vmatprep.subr.bf16.mxu1 %v14321_v36  ;;  %v4881_v29 = vpack.c.bf16 %v9868_v27, %v9867_v25  ;;  %v9920_v25 = vld [vmem:[%s16601_s2 + $0x268] sm:$0xff] }
 0x490   :  { %11570 = vmatmul.mubr.msk.bf16.gmra.mrb[96].mxu0 %vm136_vm2, %v4602_v58  ;;  %v9907_v58 = vld [vmem:[%s16601_s2 + $0x200] sm:$0xff] }
 0x491   :  { %11575 = vmatprep.mubr.msk.bf16.mxu0 %vm445_vm3, %v4877_v11  ;;  %v9911_v11 = vld [vmem:[%s16601_s2 + $0x220] sm:$0xff] }
 0x492   :  { %v5169_v26 = vpack.c.bf16 %v9912_v49, %v9911_v11  ;;  %v9937_v11 = vld [vmem:[%s16601_s2 + $0x2f0] sm:$0xff]  ;;  %v9938_v49 = vld [vmem:[%s16601_s2 + $0x2f8] sm:$0xff] }
 0x493   :  { %11394 = vmatmul.mubr.msk.bf16.gmra.mrb[136].mxu1 %vm1337_vm6, %v3580_v42  ;;  %v4883_v42 = vpack.c.bf16 %v9872_v40, %v9871_v35  ;;  %v9924_v35 = vld [vmem:[%s16601_s2 + $0x288] sm:$0xff] }
 0x494   :  { %11397 = vmatprep.mubr.msk.bf16.mxu1 %vm1337_vm6, %v3581_v54  ;;  %v9874_v54 = vld [vmem:[%s16600_s1 + $0x278] sm:$0xff] }
 0x495   :  { %v4884_v61 = vpack.c.bf16 %v9874_v54, %v9873_v44  ;;  %v9926_v44 = vld [vmem:[%s16601_s2 + $0x298] sm:$0xff] }
 0x498   :  { %11576 = vmatmul.mubr.msk.bf16.vlgmr.msra.gmra.mrb[68].mxu0 %vm445_vm3, %v4878_v2  ;;  %v9913_v2 = vld [vmem:[%s16601_s2 + $0x230] sm:$0xff] }
 0x499   :  { %11608 = vmatpush3.bf16.msra.mxu0 %v12872_v22  ;;  %11579 = vmatprep.mubr.msk.bf16.mxu0 %vm445_vm3, %v4879_v20  ;;  %v9917_v20 = vld [vmem:[%s16601_s2 + $0x250] sm:$0xff] }
 0x49a   :  { %12671 = vmatprep.subr.msk.bf16.mxu0 %vm1081_vm4, %v12708_v15  ;;  %v9914_v15 = vld [vmem:[%s16601_s2 + $0x238] sm:$0xff]  ;;  %v5172_v7 = vpack.c.bf16 %v9918_v23, %v9917_v20 }
 0x49b   :  { %11398 = vmatmul.mubr.msk.bf16.gmra.mrb[140].mxu1 %vm1337_vm6, %v3582_v39  ;;  %v9879_v39 = vld [vmem:[%s16600_s1 + $0x2a0] sm:$0xff]  ;;  %v5170_v37 = vpack.c.bf16 %v9914_v15, %v9913_v2 }
 0x49c   :  { %11401 = vmatprep.mubr.msk.bf16.mxu1 %vm1337_vm6, %v3583_v62  ;;  %v4887_v62 = vpack.c.bf16 %v9880_v38, %v9879_v39  ;;  %v9930_v39 = vld [vmem:[%s16601_s2 + $0x2b8] sm:$0xff]  ;;  %v9931_v38 = vld [vmem:[%s16601_s2 + $0x2c0] sm:$0xff] }
 0x49d   :  { %v5178_v56 = vpack.c.bf16 %v9930_v39, %v9929_v59  ;;  %v9955_v15 = vld [vmem:[%s16602_s3 + $0x200] sm:$0xff]  ;;  %v9961_v59 = vld [vmem:[%s16602_s3 + $0x230] sm:$0xff] }
 0x4a0   :  { %11580 = vmatmul.mubr.msk.bf16.gmra.mrb[72].mxu0 %vm445_vm3, %v4880_v47  ;;  %v9919_v47 = vld [vmem:[%s16601_s2 + $0x260] sm:$0xff] }
 0x4a1   :  { %11583 = vmatprep.mubr.msk.bf16.mxu0 %vm445_vm3, %v4881_v29  ;;  %v5173_v27 = vpack.c.bf16 %v9920_v25, %v9919_v47  ;;  %v9921_v29 = vld [vmem:[%s16601_s2 + $0x270] sm:$0xff] }
 0x4a2   :  { %v5174_v31 = vpack.c.bf16 %v9922_v30, %v9921_v29  ;;  %v9958_v29 = vld [vmem:[%s16602_s3 + $0x218] sm:$0xff] }
 0x4a3   :  { %11402 = vmatmul.mubr.msk.bf16.gmra.mrb[144].mxu1 %vm1337_vm6, %v3584_v24  ;;  %v9886_v24 = vld [vmem:[%s16600_s1 + $0x2d8] sm:$0xff] }
 0x4a4   :  { %11405 = vmatprep.mubr.msk.bf16.mxu1 %vm1337_vm6, %v3585_v8  ;;  %v4890_v34 = vpack.c.bf16 %v9886_v24, %v9885_v17  ;;  %v9887_v8 = vld [vmem:[%s16600_s1 + $0x2e0] sm:$0xff]  ;;  %v9933_v24 = vld [vmem:[%s16601_s2 + $0x2d0] sm:$0xff] }
 0x4a5   :  { %v4891_v14 = vpack.c.bf16 %v9888_v32, %v9887_v8 }
 0x4a8   :  { %11584 = vmatmul.mubr.msk.bf16.gmra.mrb[76].mxu0 %vm445_vm3, %v4882_v10  ;;  %v9923_v10 = vld [vmem:[%s16601_s2 + $0x280] sm:$0xff] }
 0x4a9   :  { %11587 = vmatprep.mubr.msk.bf16.mxu0 %vm445_vm3, %v4883_v42  ;;  %v5175_v40 = vpack.c.bf16 %v9924_v35, %v9923_v10  ;;  %v9925_v42 = vld [vmem:[%s16601_s2 + $0x290] sm:$0xff]  ;;  %v9959_v10 = vld [vmem:[%s16602_s3 + $0x220] sm:$0xff]  ;;  %v9960_v35 = vld [vmem:[%s16602_s3 + $0x228] sm:$0xff] }
 0x4aa   :  { %v5176_v54 = vpack.c.bf16 %v9926_v44, %v9925_v42 }
 0x4ab   :  { %11406 = vmatmul.mubr.msk.bf16.gmra.mrb[148].mxu1 %vm1337_vm6, %v3586_v53  ;;  %v5167_v53 = vpack.c.bf16 %v9908_v0, %v9907_v58 }
 0x4ac   :  { %11409 = vmatprep.mubr.msk.bf16.mxu1 %vm1337_vm6, %v3587_v46  ;;  %v9909_v46 = vld [vmem:[%s16601_s2 + $0x210] sm:$0xff] }
 0x4ad   :  { %v5168_v13 = vpack.c.bf16 %v9910_v52, %v9909_v46 }
 0x4b0   :  { %11588 = vmatmul.mubr.msk.bf16.gmra.mrb[80].mxu0 %vm445_vm3, %v4884_v61 }
 0x4b1   :  { %11591 = vmatprep.mubr.msk.bf16.mxu0 %vm445_vm3, %v4885_v50  ;;  %v9928_v50 = vld [vmem:[%s16601_s2 + $0x2a8] sm:$0xff] }
 0x4b3   :  { %11410 = vmatmul.mubr.msk.bf16.gmra.mrb[152].mxu1 %vm1337_vm6, %v3588_v16  ;;  %v9915_v16 = vld [vmem:[%s16601_s2 + $0x240] sm:$0xff] }
 0x4b4   :  { %v5171_v19 = vpack.c.bf16 %v9916_v18, %v9915_v16 }
 0x4b8   :  { %11592 = vmatmul.mubr.msk.bf16.gmra.mrb[84].mxu0 %vm445_vm3, %v4886_v43  ;;  %v5177_v43 = vpack.c.bf16 %v9928_v50, %v9927_v6 }
 0x4b9   :  { %11595 = vmatprep.mubr.msk.bf16.mxu0 %vm445_vm3, %v4887_v62  ;;  %v9932_v62 = vld [vmem:[%s16601_s2 + $0x2c8] sm:$0xff] }
 0x4c0   :  { %11596 = vmatmul.mubr.msk.bf16.gmra.mrb[88].mxu0 %vm445_vm3, %v4888_v41  ;;  %v5179_v41 = vpack.c.bf16 %v9932_v62, %v9931_v38  ;;  %v9963_v38 = vld [vmem:[%s16602_s3 + $0x240] sm:$0xff]  ;;  %v9964_v62 = vld [vmem:[%s16602_s3 + $0x248] sm:$0xff] }
 0x4c1   :  { %11599 = vmatprep.mubr.msk.bf16.mxu0 %vm445_vm3, %v4889_v5 }
 0x4c8   :  { %11600 = vmatmul.mubr.msk.bf16.gmra.mrb[92].mxu0 %vm445_vm3, %v4890_v34  ;;  %v9934_v34 = vld [vmem:[%s16601_s2 + $0x2d8] sm:$0xff] }
 0x4c9   :  { %11603 = vmatprep.mubr.msk.bf16.mxu0 %vm445_vm3, %v4891_v14  ;;  %v9935_v14 = vld [vmem:[%s16601_s2 + $0x2e0] sm:$0xff]  ;;  %v5180_v58 = vpack.c.bf16 %v9934_v34, %v9933_v24  ;;  %v9965_v34 = vld [vmem:[%s16602_s3 + $0x250] sm:$0xff] }
 0x4ca   :  { %v5181_v0 = vpack.c.bf16 %v9936_v51, %v9935_v14  ;;  %v9967_v51 = vld [vmem:[%s16602_s3 + $0x260] sm:$0xff] }
 0x4d0   :  { %11604 = vmatmul.mubr.msk.bf16.gmra.mrb[96].mxu0 %vm445_vm3, %v4892_v12 }
 0x4d1   :  { %11609 = vmatprep.mubr.msk.bf16.mxu0 %vm136_vm2, %v5167_v53 }
 0x4d8   :  { %11610 = vmatmul.mubr.msk.bf16.vlgmr.msra.gmra.mrb[68].mxu0 %vm136_vm2, %v5168_v13 }
 0x4d9   :  { %11642 = vmatpush3.bf16.msra.mxu0 %v13108_v55  ;;  %11613 = vmatprep.mubr.msk.bf16.mxu0 %vm136_vm2, %v5169_v26 }
 0x4da   :  { %11843 = vmatprep.subr.bf16.mxu0 %v12837_v9 }
 0x4e0   :  { %11614 = vmatmul.mubr.msk.bf16.gmra.mrb[72].mxu0 %vm136_vm2, %v5170_v37  ;;  %v9956_v37 = vld [vmem:[%s16602_s3 + $0x208] sm:$0xff] }
 0x4e1   :  { %11617 = vmatprep.mubr.msk.bf16.mxu0 %vm136_vm2, %v5171_v19  ;;  %v5182_v19 = vpack.c.bf16 %v9938_v49, %v9937_v11  ;;  %v5457_v20 = vpack.c.bf16 %v9956_v37, %v9955_v15  ;;  %v9969_v49 = vld [vmem:[%s16602_s3 + $0x270] sm:$0xff]  ;;  %v9971_v37 = vld [vmem:[%s16602_s3 + $0x280] sm:$0xff] }
 0x4e8   :  { %11618 = vmatmul.mubr.msk.bf16.gmra.mrb[76].mxu0 %vm136_vm2, %v5172_v7 }
 0x4e9   :  { %11621 = vmatprep.mubr.msk.bf16.mxu0 %vm136_vm2, %v5173_v27  ;;  %v9957_v27 = vld [vmem:[%s16602_s3 + $0x210] sm:$0xff] }
 0x4ea   :  { %v5458_v44 = vpack.c.bf16 %v9958_v29, %v9957_v27  ;;  %v9973_v29 = vld [vmem:[%s16602_s3 + $0x290] sm:$0xff] }
 0x4f0   :  { %11622 = vmatmul.mubr.msk.bf16.gmra.mrb[80].mxu0 %vm136_vm2, %v5174_v31 }
 0x4f1   :  { %11625 = vmatprep.mubr.msk.bf16.mxu0 %vm136_vm2, %v5175_v40 }
 0x4f8   :  { %11626 = vmatmul.mubr.msk.bf16.gmra.mrb[84].mxu0 %vm136_vm2, %v5176_v54  ;;  %v5459_v54 = vpack.c.bf16 %v9960_v35, %v9959_v10  ;;  %v9975_v35 = vld [vmem:[%s16602_s3 + $0x2a0] sm:$0xff] }
 0x4f9   :  { %11629 = vmatprep.mubr.msk.bf16.mxu0 %vm136_vm2, %v5177_v43 }
 0x500   :  { %11630 = vmatmul.mubr.msk.bf16.gmra.mrb[88].mxu0 %vm136_vm2, %v5178_v56 }
 0x501   :  { %11633 = vmatprep.mubr.msk.bf16.mxu0 %vm136_vm2, %v5179_v41 }
 0x508   :  { %11634 = vmatmul.mubr.msk.bf16.gmra.mrb[92].mxu0 %vm136_vm2, %v5180_v58 }
 0x509   :  { %11637 = vmatprep.mubr.msk.bf16.mxu0 %vm136_vm2, %v5181_v0 }
 0x50e   :  { %v11205_v61 = vpop.f32.mrb[92].mxu1 }
 0x50f   :  { %2367 = vst.msk [vmem:[#allocation2 + $0x10] sm:$0xff] %vm136_vm2, %v11205_v61  ;;  %v2238_v45 = vpop.f32.mrb[93].mxu1 }
 0x510   :  { %2365 = vst.msk [vmem:[#allocation2] sm:$0xff] %vm136_vm2, %v2238_v45  ;;  %v11206_v28 = vpop.f32.mrb[94].mxu1  ;;  %11638 = vmatmul.mubr.msk.bf16.gmra.mrb[96].mxu0 %vm136_vm2, %v5182_v19 }
 0x511   :  { %2368 = vst.msk [vmem:[#allocation2 + $0x18] sm:$0xff] %vm136_vm2, %v11206_v28  ;;  %v2241_v33 = vpop.f32.mrb[95].mxu1  ;;  %11643 = vmatprep.mubr.msk.bf16.mxu0 %vm1032_vm5, %v5457_v20  ;;  %v9962_v28 = vld [vmem:[%s16602_s3 + $0x238] sm:$0xff] }
 0x512   :  { %2366 = vst.msk [vmem:[#allocation2 + $0x8] sm:$0xff] %vm136_vm2, %v2241_v33  ;;  %v5460_v41 = vpack.c.bf16 %v9962_v28, %v9961_v59  ;;  %v9977_v28 = vld [vmem:[%s16602_s3 + $0x2b0] sm:$0xff] }
 0x516   :  { %v9149_v21 = vld [vmem:[#allocation2 + $0x10] sm:$0xff]  ;;  %v11209_v1 = vpop.f32.mrb[96].mxu1 }
 0x517   :  { %9150 = vst [vmem:[%s16612_s13 + $0x10] sm:$0xff] %v9149_v21  ;;  %v9145_v5 = vld [vmem:[#allocation2] sm:$0xff]  ;;  %2371 = vst.msk [vmem:[#allocation2 + $0x30] sm:$0xff] %vm136_vm2, %v11209_v1  ;;  %v2254_v17 = vpop.f32.mrb[97].mxu1  ;;  %v5461_v21 = vpack.c.bf16 %v9964_v62, %v9963_v38 }
 0x518   :  { %9146 = vst [vmem:[%s16612_s13] sm:$0xff] %v9145_v5  ;;  %v9151_v8 = vld [vmem:[#allocation2 + $0x18] sm:$0xff]  ;;  %2369 = vst.msk [vmem:[#allocation2 + $0x20] sm:$0xff] %vm136_vm2, %v2254_v17  ;;  %v11210_v32 = vpop.f32.mrb[98].mxu1  ;;  %11644 = vmatmul.mubr.msk.bf16.vlgmr.msra.gmra.mrb[68].mxu0 %vm1032_vm5, %v5458_v44  ;;  %v9979_v62 = vld [vmem:[%s16602_s3 + $0x2c0] sm:$0xff] }
 0x519   :  { %9152 = vst [vmem:[%s16612_s13 + $0x18] sm:$0xff] %v9151_v8  ;;  %v9147_v60 = vld [vmem:[#allocation2 + $0x8] sm:$0xff]  ;;  %2372 = vst.msk [vmem:[#allocation2 + $0x38] sm:$0xff] %vm136_vm2, %v11210_v32  ;;  %v2257_v12 = vpop.f32.mrb[99].mxu1  ;;  %11647 = vmatprep.mubr.msk.bf16.mxu0 %vm1032_vm5, %v5459_v54  ;;  %11844 = vmatpush3.bf16.msra.mxu0 %v12837_v9  ;;  %v14740_v9 = vld [vmem:[%s16604_s5] sm:$0xff]  }
 0x51a   :  { %9148 = vst [vmem:[%s16612_s13 + $0x8] sm:$0xff] %v9147_v60  ;;  %2370 = vst.msk [vmem:[#allocation2 + $0x28] sm:$0xff] %vm136_vm2, %v2257_v12  ;;  %11877 = vmatprep.subr.bf16.mxu0 %v14740_v9  ;;  %v9966_v8 = vld [vmem:[%s16602_s3 + $0x258] sm:$0xff]  ;;  %v9968_v60 = vld [vmem:[%s16602_s3 + $0x268] sm:$0xff] }
 0x51b   :  { %v5462_v0 = vpack.c.bf16 %v9966_v8, %v9965_v34 }
 0x51e   :  { %v9157_v53 = vld [vmem:[#allocation2 + $0x30] sm:$0xff]  ;;  %v11213_v46 = vpop.f32.mrb[100].mxu1 }
 0x51f   :  { %9158 = vst [vmem:[%s16612_s13 + $0x30] sm:$0xff] %v9157_v53  ;;  %v9153_v52 = vld [vmem:[#allocation2 + $0x20] sm:$0xff]  ;;  %2375 = vst.msk [vmem:[#allocation2 + $0x50] sm:$0xff] %vm136_vm2, %v11213_v46  ;;  %v2270_v13 = vpop.f32.mrb[101].mxu1  ;;  %v5463_v53 = vpack.c.bf16 %v9968_v60, %v9967_v51  ;;  %v9982_v51 = vld [vmem:[%s16602_s3 + $0x2d8] sm:$0xff] }
 0x520   :  { %9154 = vst [vmem:[%s16612_s13 + $0x20] sm:$0xff] %v9153_v52  ;;  %v9159_v26 = vld [vmem:[#allocation2 + $0x38] sm:$0xff]  ;;  %2373 = vst.msk [vmem:[#allocation2 + $0x40] sm:$0xff] %vm136_vm2, %v2270_v13  ;;  %v11214_v2 = vpop.f32.mrb[102].mxu1  ;;  %11648 = vmatmul.mubr.msk.bf16.gmra.mrb[72].mxu0 %vm1032_vm5, %v5460_v41 }
 0x521   :  { %9160 = vst [vmem:[%s16612_s13 + $0x38] sm:$0xff] %v9159_v26  ;;  %v9155_v16 = vld [vmem:[#allocation2 + $0x28] sm:$0xff]  ;;  %2376 = vst.msk [vmem:[#allocation2 + $0x58] sm:$0xff] %vm136_vm2, %v11214_v2  ;;  %v2273_v18 = vpop.f32.mrb[103].mxu1  ;;  %11651 = vmatprep.mubr.msk.bf16.mxu0 %vm1032_vm5, %v5461_v21  ;;  %v9970_v26 = vld [vmem:[%s16602_s3 + $0x278] sm:$0xff] }
 0x522   :  { %9156 = vst [vmem:[%s16612_s13 + $0x28] sm:$0xff] %v9155_v16  ;;  %2374 = vst.msk [vmem:[#allocation2 + $0x48] sm:$0xff] %vm136_vm2, %v2273_v18  ;;  %v9972_v16 = vld [vmem:[%s16602_s3 + $0x288] sm:$0xff]  ;;  %v5464_v20 = vpack.c.bf16 %v9970_v26, %v9969_v49 }
 0x526   :  { %v9165_v23 = vld [vmem:[#allocation2 + $0x50] sm:$0xff]  ;;  %v11217_v7 = vpop.f32.mrb[104].mxu1 }
 0x527   :  { %9166 = vst [vmem:[%s16612_s13 + $0x50] sm:$0xff] %v9165_v23  ;;  %v9161_v47 = vld [vmem:[#allocation2 + $0x40] sm:$0xff]  ;;  %2379 = vst.msk [vmem:[#allocation2 + $0x70] sm:$0xff] %vm136_vm2, %v11217_v7  ;;  %v2286_v25 = vpop.f32.mrb[105].mxu1  ;;  %v5465_v23 = vpack.c.bf16 %v9972_v16, %v9971_v37  ;;  %v9985_v37 = vld [vmem:[%s16602_s3 + $0x2f0] sm:$0xff] }
 0x528   :  { %9162 = vst [vmem:[%s16612_s13 + $0x40] sm:$0xff] %v9161_v47  ;;  %v9167_v30 = vld [vmem:[#allocation2 + $0x58] sm:$0xff]  ;;  %2377 = vst.msk [vmem:[#allocation2 + $0x60] sm:$0xff] %vm136_vm2, %v2286_v25  ;;  %v11218_v31 = vpop.f32.mrb[106].mxu1  ;;  %11652 = vmatmul.mubr.msk.bf16.gmra.mrb[76].mxu0 %vm1032_vm5, %v5462_v0 }
 0x529   :  { %9168 = vst [vmem:[%s16612_s13 + $0x58] sm:$0xff] %v9167_v30  ;;  %v9163_v40 = vld [vmem:[#allocation2 + $0x48] sm:$0xff]  ;;  %2380 = vst.msk [vmem:[#allocation2 + $0x78] sm:$0xff] %vm136_vm2, %v11218_v31  ;;  %v2289_v42 = vpop.f32.mrb[107].mxu1  ;;  %11655 = vmatprep.mubr.msk.bf16.mxu0 %vm1032_vm5, %v5463_v53  ;;  %v9974_v30 = vld [vmem:[%s16602_s3 + $0x298] sm:$0xff] }
 0x52a   :  { %9164 = vst [vmem:[%s16612_s13 + $0x48] sm:$0xff] %v9163_v40  ;;  %2378 = vst.msk [vmem:[#allocation2 + $0x68] sm:$0xff] %vm136_vm2, %v2289_v42  ;;  %v9976_v40 = vld [vmem:[%s16602_s3 + $0x2a8] sm:$0xff]  ;;  %v5466_v54 = vpack.c.bf16 %v9974_v30, %v9973_v29  ;;  %v9986_v16 = vld [vmem:[%s16602_s3 + $0x2f8] sm:$0xff] }
 0x52e   :  { %v9173_v61 = vld [vmem:[#allocation2 + $0x70] sm:$0xff]  ;;  %v11221_v45 = vpop.f32.mrb[108].mxu1 }
 0x52f   :  { %9174 = vst [vmem:[%s16612_s13 + $0x70] sm:$0xff] %v9173_v61  ;;  %v9169_v6 = vld [vmem:[#allocation2 + $0x60] sm:$0xff]  ;;  %2383 = vst.msk [vmem:[#allocation2 + $0x90] sm:$0xff] %vm136_vm2, %v11221_v45  ;;  %v2302_v50 = vpop.f32.mrb[109].mxu1  ;;  %v5467_v61 = vpack.c.bf16 %v9976_v40, %v9975_v35 }
 0x530   :  { %9170 = vst [vmem:[%s16612_s13 + $0x60] sm:$0xff] %v9169_v6  ;;  %v9175_v43 = vld [vmem:[#allocation2 + $0x78] sm:$0xff]  ;;  %2381 = vst.msk [vmem:[#allocation2 + $0x80] sm:$0xff] %vm136_vm2, %v2302_v50  ;;  %v11222_v39 = vpop.f32.mrb[110].mxu1  ;;  %11656 = vmatmul.mubr.msk.bf16.gmra.mrb[80].mxu0 %vm1032_vm5, %v5464_v20  ;;  %v14917_v40 = vld [vmem:[%s16611_s12] sm:$0xff]  }
 0x531   :  { %9176 = vst [vmem:[%s16612_s13 + $0x78] sm:$0xff] %v9175_v43  ;;  %v9171_v33 = vld [vmem:[#allocation2 + $0x68] sm:$0xff]  ;;  %2384 = vst.msk [vmem:[#allocation2 + $0x98] sm:$0xff] %vm136_vm2, %v11222_v39  ;;  %v2305_v56 = vpop.f32.mrb[111].mxu1  ;;  %11659 = vmatprep.mubr.msk.bf16.mxu0 %vm1032_vm5, %v5465_v23  ;;  %v9978_v43 = vld [vmem:[%s16602_s3 + $0x2b8] sm:$0xff] }
 0x532   :  { %9172 = vst [vmem:[%s16612_s13 + $0x68] sm:$0xff] %v9171_v33  ;;  %2382 = vst.msk [vmem:[#allocation2 + $0x88] sm:$0xff] %vm136_vm2, %v2305_v56  ;;  %v9980_v33 = vld [vmem:[%s16602_s3 + $0x2c8] sm:$0xff]  ;;  %v12712_v23 = vld [vmem:[%s16610_s11 + $0x18] sm:$0xff]  }
 0x536   :  { %v9181_v1 = vld [vmem:[#allocation2 + $0x90] sm:$0xff]  ;;  %v11225_v5 = vpop.f32.mrb[112].mxu1 }
 0x537   :  { %9182 = vst [vmem:[%s16612_s13 + $0x90] sm:$0xff] %v9181_v1  ;;  %v9177_v17 = vld [vmem:[#allocation2 + $0x80] sm:$0xff]  ;;  %2387 = vst.msk [vmem:[#allocation2 + $0xb0] sm:$0xff] %vm136_vm2, %v11225_v5  ;;  %v2318_v24 = vpop.f32.mrb[113].mxu1  ;;  %v5468_v5 = vpack.c.bf16 %v9978_v43, %v9977_v28 }
 0x538   :  { %9178 = vst [vmem:[%s16612_s13 + $0x80] sm:$0xff] %v9177_v17  ;;  %v9183_v32 = vld [vmem:[#allocation2 + $0x98] sm:$0xff]  ;;  %2385 = vst.msk [vmem:[#allocation2 + $0xa0] sm:$0xff] %vm136_vm2, %v2318_v24  ;;  %v11226_v14 = vpop.f32.mrb[114].mxu1  ;;  %11660 = vmatmul.mubr.msk.bf16.gmra.mrb[84].mxu0 %vm1032_vm5, %v5466_v54  ;;  %v5469_v17 = vpack.c.bf16 %v9980_v33, %v9979_v62 }
 0x539   :  { %9184 = vst [vmem:[%s16612_s13 + $0x98] sm:$0xff] %v9183_v32  ;;  %v9179_v12 = vld [vmem:[#allocation2 + $0x88] sm:$0xff]  ;;  %2388 = vst.msk [vmem:[#allocation2 + $0xb8] sm:$0xff] %vm136_vm2, %v11226_v14  ;;  %v2321_v58 = vpop.f32.mrb[115].mxu1  ;;  %11663 = vmatprep.mubr.msk.bf16.mxu0 %vm1032_vm5, %v5467_v61  ;;  %v9981_v14 = vld [vmem:[%s16602_s3 + $0x2d0] sm:$0xff] }
 0x53a   :  { %9180 = vst [vmem:[%s16612_s13 + $0x88] sm:$0xff] %v9179_v12  ;;  %2386 = vst.msk [vmem:[#allocation2 + $0xa8] sm:$0xff] %vm136_vm2, %v2321_v58  ;;  %v9983_v12 = vld [vmem:[%s16602_s3 + $0x2e0] sm:$0xff]  ;;  %v9984_v58 = vld [vmem:[%s16602_s3 + $0x2e8] sm:$0xff] }
 0x53e   :  { %v9189_v46 = vld [vmem:[#allocation2 + $0xb0] sm:$0xff]  ;;  %v11229_v52 = vpop.f32.mrb[116].mxu1 }
 0x53f   :  { %9190 = vst [vmem:[%s16612_s13 + $0xb0] sm:$0xff] %v9189_v46  ;;  %v9185_v13 = vld [vmem:[#allocation2 + $0xa0] sm:$0xff]  ;;  %2391 = vst.msk [vmem:[#allocation2 + $0xd0] sm:$0xff] %vm136_vm2, %v11229_v52  ;;  %v2334_v11 = vpop.f32.mrb[117].mxu1  ;;  %v12710_v46 = vld [vmem:[%s16610_s11 + $0x8] sm:$0xff]  }
 0x540   :  { %9186 = vst [vmem:[%s16612_s13 + $0xa0] sm:$0xff] %v9185_v13  ;;  %v9191_v2 = vld [vmem:[#allocation2 + $0xb8] sm:$0xff]  ;;  %2389 = vst.msk [vmem:[#allocation2 + $0xc0] sm:$0xff] %vm136_vm2, %v2334_v11  ;;  %v11230_v15 = vpop.f32.mrb[118].mxu1  ;;  %11664 = vmatmul.mubr.msk.bf16.gmra.mrb[88].mxu0 %vm1032_vm5, %v5468_v5  ;;  %v5470_v13 = vpack.c.bf16 %v9982_v51, %v9981_v14  ;;  %v5471_v11 = vpack.c.bf16 %v9984_v58, %v9983_v12 }
 0x541   :  { %9192 = vst [vmem:[%s16612_s13 + $0xb8] sm:$0xff] %v9191_v2  ;;  %v9187_v18 = vld [vmem:[#allocation2 + $0xa8] sm:$0xff]  ;;  %2392 = vst.msk [vmem:[#allocation2 + $0xd8] sm:$0xff] %vm136_vm2, %v11230_v15  ;;  %v2337_v19 = vpop.f32.mrb[119].mxu1  ;;  %11667 = vmatprep.mubr.msk.bf16.mxu0 %vm1032_vm5, %v5469_v17  ;;  %v12711_v2 = vld [vmem:[%s16610_s11 + $0x10] sm:$0xff]  }
 0x542   :  { %9188 = vst [vmem:[%s16612_s13 + $0xa8] sm:$0xff] %v9187_v18  ;;  %2390 = vst.msk [vmem:[#allocation2 + $0xc8] sm:$0xff] %vm136_vm2, %v2337_v19 }
 0x546   :  { %v9197_v7 = vld [vmem:[#allocation2 + $0xd0] sm:$0xff]  ;;  %v11233_v47 = vpop.f32.mrb[120].mxu1 }
 0x547   :  { %9198 = vst [vmem:[%s16612_s13 + $0xd0] sm:$0xff] %v9197_v7  ;;  %v9193_v25 = vld [vmem:[#allocation2 + $0xc0] sm:$0xff]  ;;  %2395 = vst.msk [vmem:[#allocation2 + $0xf0] sm:$0xff] %vm136_vm2, %v11233_v47  ;;  %v2350_v27 = vpop.f32.mrb[121].mxu1  ;;  %v5472_v47 = vpack.c.bf16 %v9986_v16, %v9985_v37 }
 0x548   :  { %9194 = vst [vmem:[%s16612_s13 + $0xc0] sm:$0xff] %v9193_v25  ;;  %v9199_v31 = vld [vmem:[#allocation2 + $0xd8] sm:$0xff]  ;;  %2393 = vst.msk [vmem:[#allocation2 + $0xe0] sm:$0xff] %vm136_vm2, %v2350_v27  ;;  %v11234_v10 = vpop.f32.mrb[122].mxu1  ;;  %11668 = vmatmul.mubr.msk.bf16.gmra.mrb[92].mxu0 %vm1032_vm5, %v5470_v13 }
 0x549   :  { %9200 = vst [vmem:[%s16612_s13 + $0xd8] sm:$0xff] %v9199_v31  ;;  %v9195_v42 = vld [vmem:[#allocation2 + $0xc8] sm:$0xff]  ;;  %2396 = vst.msk [vmem:[#allocation2 + $0xf8] sm:$0xff] %vm136_vm2, %v11234_v10  ;;  %v2353_v44 = vpop.f32.mrb[123].mxu1  ;;  %11671 = vmatprep.mubr.msk.bf16.mxu0 %vm1032_vm5, %v5471_v11 }
 0x54a   :  { %9196 = vst [vmem:[%s16612_s13 + $0xc8] sm:$0xff] %v9195_v42  ;;  %2394 = vst.msk [vmem:[#allocation2 + $0xe8] sm:$0xff] %vm136_vm2, %v2353_v44 }
 0x54e   :  { %v9205_v45 = vld [vmem:[#allocation2 + $0xf0] sm:$0xff]  ;;  %v11383_v6 = vpop.f32.mrb[124].mxu1 }
 0x54f   :  { %9206 = vst [vmem:[%s16612_s13 + $0xf0] sm:$0xff] %v9205_v45  ;;  %v9201_v50 = vld [vmem:[#allocation2 + $0xe0] sm:$0xff]  ;;  %v3671_v59 = vpop.f32.mrb[125].mxu1 }
 0x550   :  { %9202 = vst [vmem:[%s16612_s13 + $0xe0] sm:$0xff] %v9201_v50  ;;  %v9207_v39 = vld [vmem:[#allocation2 + $0xf8] sm:$0xff]  ;;  %v11384_v38 = vpop.f32.mrb[126].mxu1  ;;  %11672 = vmatmul.mubr.msk.bf16.gmra.mrb[96].mxu0 %vm1032_vm5, %v5472_v47 }
 0x551   :  { %9208 = vst [vmem:[%s16612_s13 + $0xf8] sm:$0xff] %v9207_v39  ;;  %v9203_v56 = vld [vmem:[#allocation2 + $0xe8] sm:$0xff]  ;;  %v3799_v41 = vpack.c.bf16 %v11384_v38, %v11383_v6  ;;  %v3674_v21 = vpop.f32.mrb[127].mxu1 }
 0x552   :  { %9204 = vst [vmem:[%s16612_s13 + $0xe8] sm:$0xff] %v9203_v56  ;;  %v3798_v1 = vpack.c.bf16 %v3674_v21, %v3671_v59 }
 0x553   :  { %v3815_v34 = vmax.bf16 %v12750_v63, %v3799_v41 }
 0x554   :  { %v3814_v24 = vmax.bf16 %v12750_v63, %v3798_v1 }
 0x556   :  { %v11387_v8 = vpop.f32.mrb[128].mxu1  ;;  %11423 = vmatprep.mubr.msk.bf16.mxu1 %vm1337_vm6, %v3814_v24 }
 0x557   :  { %v3687_v32 = vpop.f32.mrb[129].mxu1  ;;  %11424 = vmatmul.mubr.msk.bf16.vlgmr.msra.gmra.mrb[156].mxu1 %vm1337_vm6, %v3815_v34 }
 0x558   :  { %v11388_v60 = vpop.f32.mrb[130].mxu1  ;;  %11456 = vmatpush3.bf16.msra.mxu1 %v14321_v36 }
 0x559   :  { %v3801_v0 = vpack.c.bf16 %v11388_v60, %v11387_v8  ;;  %v3690_v53 = vpop.f32.mrb[131].mxu1  ;;  %11457 = vmatprep.subr.bf16.mxu1 %v12710_v46 }
 0x55a   :  { %v3800_v52 = vpack.c.bf16 %v3690_v53, %v3687_v32 }
 0x55b   :  { %v3817_v26 = vmax.bf16 %v12750_v63, %v3801_v0 }
 0x55c   :  { %v3816_v49 = vmax.bf16 %v12750_v63, %v3800_v52  ;;  %11458 = vmatpush3.bf16.msra.mxu1 %v12710_v46 }
 0x55d   :  { %11459 = vmatprep.subr.bf16.mxu1 %v12711_v2 }
 0x55e   :  { %v11391_v36 = vpop.f32.mrb[132].mxu1  ;;  %11427 = vmatprep.mubr.msk.bf16.mxu1 %vm1337_vm6, %v3816_v49 }
 0x55f   :  { %v3703_v15 = vpop.f32.mrb[133].mxu1  ;;  %11428 = vmatmul.mubr.msk.bf16.gmra.mrb[160].mxu1 %vm1337_vm6, %v3817_v26  ;;  %v14943_v26 = vld [vmem:[%s16607_s8] ss:$0 sm:$0xff] }
 0x560   :  { %v11392_v18 = vpop.f32.mrb[134].mxu1  ;;  %11460 = vmatpush3.bf16.msra.mxu1 %v12711_v2 }
 0x561   :  { %v3803_v19 = vpack.c.bf16 %v11392_v18, %v11391_v36  ;;  %v3706_v20 = vpop.f32.mrb[135].mxu1  ;;  %11461 = vmatprep.subr.bf16.mxu1 %v12712_v23 }
 0x562   :  { %v3802_v7 = vpack.c.bf16 %v3706_v20, %v3703_v15 }
 0x563   :  { %v3819_v27 = vmax.bf16 %v12750_v63, %v3803_v19 }
 0x564   :  { %v3818_v25 = vmax.bf16 %v12750_v63, %v3802_v7  ;;  %11462 = vmatpush3.bf16.msra.mxu1 %v12712_v23 }
 0x565   :  { %11463 = vmatprep.subr.bf16.mxu1 %v13898_v3 }
 0x566   :  { %v11395_v29 = vpop.f32.mrb[136].mxu1  ;;  %11431 = vmatprep.mubr.msk.bf16.mxu1 %vm1337_vm6, %v3818_v25 }
 0x567   :  { %v3719_v30 = vpop.f32.mrb[137].mxu1  ;;  %11432 = vmatmul.mubr.msk.bf16.gmra.mrb[164].mxu1 %vm1337_vm6, %v3819_v27 }
 0x568   :  { %v11396_v31 = vpop.f32.mrb[138].mxu1  ;;  %11464 = vmatpush3.bf16.msra.mxu1 %v13898_v3 }
 0x569   :  { %v3805_v10 = vpack.c.bf16 %v11396_v31, %v11395_v29  ;;  %v3722_v35 = vpop.f32.mrb[139].mxu1  ;;  %11497 = vmatprep.subr.bf16.mxu1 %v14917_v40 }
 0x56a   :  { %v3804_v42 = vpack.c.bf16 %v3722_v35, %v3719_v30 }
 0x56b   :  { %v3821_v54 = vmax.bf16 %v12750_v63, %v3805_v10 }
 0x56c   :  { %v3820_v44 = vmax.bf16 %v12750_v63, %v3804_v42 }
 0x56e   :  { %v11399_v61 = vpop.f32.mrb[140].mxu1  ;;  %11435 = vmatprep.mubr.msk.bf16.mxu1 %vm1337_vm6, %v3820_v44 }
 0x56f   :  { %v3735_v45 = vpop.f32.mrb[141].mxu1  ;;  %11436 = vmatmul.mubr.msk.bf16.gmra.mrb[168].mxu1 %vm1337_vm6, %v3821_v54 }
 0x570   :  { %v11400_v6 = vpop.f32.mrb[142].mxu1 }
 0x571   :  { %v3807_v50 = vpack.c.bf16 %v11400_v6, %v11399_v61  ;;  %v3738_v59 = vpop.f32.mrb[143].mxu1 }
 0x572   :  { %v3806_v28 = vpack.c.bf16 %v3738_v59, %v3735_v45 }
 0x573   :  { %v3823_v39 = vmax.bf16 %v12750_v63, %v3807_v50 }
 0x574   :  { %v3822_v43 = vmax.bf16 %v12750_v63, %v3806_v28 }
 0x576   :  { %v11403_v38 = vpop.f32.mrb[144].mxu1  ;;  %11439 = vmatprep.mubr.msk.bf16.mxu1 %vm1337_vm6, %v3822_v43 }
 0x577   :  { %v3751_v62 = vpop.f32.mrb[145].mxu1  ;;  %11440 = vmatmul.mubr.msk.bf16.gmra.mrb[172].mxu1 %vm1337_vm6, %v3823_v39 }
 0x578   :  { %v11404_v33 = vpop.f32.mrb[146].mxu1 }
 0x579   :  { %v3809_v56 = vpack.c.bf16 %v11404_v33, %v11403_v38  ;;  %v3754_v41 = vpop.f32.mrb[147].mxu1 }
 0x57a   :  { %v3808_v21 = vpack.c.bf16 %v3754_v41, %v3751_v62 }
 0x57b   :  { %v3825_v5 = vmax.bf16 %v12750_v63, %v3809_v56 }
 0x57c   :  { %v3824_v1 = vmax.bf16 %v12750_v63, %v3808_v21 }
 0x57e   :  { %v11407_v17 = vpop.f32.mrb[148].mxu1  ;;  %11443 = vmatprep.mubr.msk.bf16.mxu1 %vm1337_vm6, %v3824_v1 }
 0x57f   :  { %v3767_v24 = vpop.f32.mrb[149].mxu1  ;;  %11444 = vmatmul.mubr.msk.bf16.gmra.mrb[176].mxu1 %vm1337_vm6, %v3825_v5 }
 0x580   :  { %v11408_v34 = vpop.f32.mrb[150].mxu1 }
 0x581   :  { %v3811_v8 = vpack.c.bf16 %v11408_v34, %v11407_v17  ;;  %v3770_v32 = vpop.f32.mrb[151].mxu1 }
 0x582   :  { %v3810_v14 = vpack.c.bf16 %v3770_v32, %v3767_v24 }
 0x583   :  { %v3827_v60 = vmax.bf16 %v12750_v63, %v3811_v8 }
 0x584   :  { %v3826_v51 = vmax.bf16 %v12750_v63, %v3810_v14 }
 0x586   :  { %v11411_v12 = vpop.f32.mrb[152].mxu1  ;;  %11447 = vmatprep.mubr.msk.bf16.mxu1 %vm1337_vm6, %v3826_v51 }
 0x587   :  { %v3783_v58 = vpop.f32.mrb[153].mxu1  ;;  %11448 = vmatmul.mubr.msk.bf16.gmra.mrb[180].mxu1 %vm1337_vm6, %v3827_v60 }
 0x588   :  { %v11412_v0 = vpop.f32.mrb[154].mxu1 }
 0x589   :  { %v3813_v53 = vpack.c.bf16 %v11412_v0, %v11411_v12  ;;  %v3786_v46 = vpop.f32.mrb[155].mxu1 }
 0x58a   :  { %v3812_v52 = vpack.c.bf16 %v3786_v46, %v3783_v58 }
 0x58b   :  { %v3829_v11 = vmax.bf16 %v12750_v63, %v3813_v53 }
 0x58c   :  { %v3828_v13 = vmax.bf16 %v12750_v63, %v3812_v52 }
 0x58e   :  { %11451 = vmatprep.mubr.msk.bf16.mxu1 %vm1337_vm6, %v3828_v13 }
 0x58f   :  { %11452 = vmatmul.mubr.msk.bf16.gmra.mrb[184].mxu1 %vm1337_vm6, %v3829_v11 }
 0x5eb   :  { %v11645_v49 = vpop.f32.mrb[68].mxu0 }
 0x5ec   :  { %v14946_v2 = vadd.f32 %v14943_v26, %v11645_v49  ;;  %v5555_v36 = vpop.f32.mrb[69].mxu0 }
 0x5ed   :  { %v14949_v15 = vadd.f32 %v14943_v26, %v5555_v36  ;;  %v11646_v37 = vpop.f32.mrb[70].mxu0 }
 0x5ee   :  { %v14952_v16 = vadd.f32 %v14943_v26, %v11646_v37  ;;  %v5558_v18 = vpop.f32.mrb[71].mxu0 }
 0x5ef   :  { %v14955_v19 = vadd.f32 %v14943_v26, %v5558_v18 }
 0x5f0   :  { %v5715_v20 = vpack.c.bf16 %v14952_v16, %v14946_v2  ;;  %v12724_v16 = vld [vmem:[%s16609_s10 + $0x10] sm:$0xff]  }
 0x5f1   :  { %v5714_v23 = vpack.c.bf16 %v14955_v19, %v14949_v15  ;;  %v12723_v15 = vld [vmem:[%s16609_s10 + $0x8] sm:$0xff]  }
 0x5f3   :  { %v11649_v7 = vpop.f32.mrb[72].mxu0 }
 0x5f4   :  { %v14962_v47 = vadd.f32 %v14943_v26, %v11649_v7  ;;  %v5571_v25 = vpop.f32.mrb[73].mxu0 }
 0x5f5   :  { %v14965_v27 = vadd.f32 %v14943_v26, %v5571_v25  ;;  %v11650_v29 = vpop.f32.mrb[74].mxu0 }
 0x5f6   :  { %v14968_v30 = vadd.f32 %v14943_v26, %v11650_v29  ;;  %v5574_v31 = vpop.f32.mrb[75].mxu0 }
 0x5f7   :  { %v14971_v10 = vadd.f32 %v14943_v26, %v5574_v31 }
 0x5f8   :  { %v5717_v35 = vpack.c.bf16 %v14968_v30, %v14962_v47  ;;  %v10084_v30 = vld [vmem:[%s16599_s0 + $0x388] sm:$0xff] }
 0x5f9   :  { %v5716_v42 = vpack.c.bf16 %v14971_v10, %v14965_v27  ;;  %v10083_v27 = vld [vmem:[%s16599_s0 + $0x380] sm:$0xff] }
 0x5fa   :  { %v5733_v2 = vmax.bf16 %v12750_v63, %v5717_v35  ;;  %v6752_v10 = vpack.c.bf16 %v10084_v30, %v10083_v27  ;;  %v10085_v35 = vld [vmem:[%s16599_s0 + $0x390] sm:$0xff]  ;;  %v10126_v30 = vld [vmem:[%s16600_s1 + $0x358] sm:$0xff] }
 0x5fb   :  { %v11653_v44 = vpop.f32.mrb[76].mxu0  ;;  %v10125_v27 = vld [vmem:[%s16600_s1 + $0x350] sm:$0xff] }
 0x5fc   :  { %v14978_v54 = vadd.f32 %v14943_v26, %v11653_v44  ;;  %v5587_v61 = vpop.f32.mrb[77].mxu0 }
 0x5fd   :  { %v14981_v45 = vadd.f32 %v14943_v26, %v5587_v61  ;;  %v11654_v6 = vpop.f32.mrb[78].mxu0 }
 0x5fe   :  { %v14984_v50 = vadd.f32 %v14943_v26, %v11654_v6  ;;  %v5590_v59 = vpop.f32.mrb[79].mxu0 }
 0x5ff   :  { %v14987_v28 = vadd.f32 %v14943_v26, %v5590_v59 }
 0x600   :  { %v5719_v43 = vpack.c.bf16 %v14984_v50, %v14978_v54 }
 0x601   :  { %v5718_v39 = vpack.c.bf16 %v14987_v28, %v14981_v45  ;;  %v15290_v45 = vld [vmem:[%s16610_s11] sm:$0xff]  }
 0x603   :  { %v11657_v38 = vpop.f32.mrb[80].mxu0  ;;  %v5734_v19 = vmax.bf16 %v12750_v63, %v5718_v39  ;;  %v10087_v39 = vld [vmem:[%s16599_s0 + $0x3a0] sm:$0xff] }
 0x604   :  { %v14994_v62 = vadd.f32 %v14943_v26, %v11657_v38  ;;  %v5603_v33 = vpop.f32.mrb[81].mxu0 }
 0x605   :  { %v14997_v56 = vadd.f32 %v14943_v26, %v5603_v33  ;;  %v11658_v41 = vpop.f32.mrb[82].mxu0 }
 0x606   :  { %v15000_v21 = vadd.f32 %v14943_v26, %v11658_v41  ;;  %v5606_v1 = vpop.f32.mrb[83].mxu0 }
 0x607   :  { %v15003_v5 = vadd.f32 %v14943_v26, %v5606_v1 }
 0x608   :  { %v5721_v17 = vpack.c.bf16 %v15000_v21, %v14994_v62  ;;  %v10089_v62 = vld [vmem:[%s16599_s0 + $0x3b0] sm:$0xff]  ;;  %v10090_v21 = vld [vmem:[%s16599_s0 + $0x3b8] sm:$0xff] }
 0x609   :  { %v5720_v24 = vpack.c.bf16 %v15003_v5, %v14997_v56  ;;  %v10088_v56 = vld [vmem:[%s16599_s0 + $0x3a8] sm:$0xff] }
 0x60a   :  { %v5737_v50 = vmax.bf16 %v12750_v63, %v5721_v17  ;;  %v6754_v5 = vpack.c.bf16 %v10088_v56, %v10087_v39  ;;  %v6755_v17 = vpack.c.bf16 %v10090_v21, %v10089_v62  ;;  %v10131_v39 = vld [vmem:[%s16600_s1 + $0x380] sm:$0xff]  ;;  %v10132_v56 = vld [vmem:[%s16600_s1 + $0x388] sm:$0xff]  ;;  %v10133_v62 = vld [vmem:[%s16600_s1 + $0x390] sm:$0xff] }
 0x60b   :  { %v11661_v34 = vpop.f32.mrb[84].mxu0  ;;  %v5736_v47 = vmax.bf16 %v12750_v63, %v5720_v24  ;;  %v10134_v21 = vld [vmem:[%s16600_s1 + $0x398] sm:$0xff] }
 0x60c   :  { %v15010_v8 = vadd.f32 %v14943_v26, %v11661_v34  ;;  %v5619_v32 = vpop.f32.mrb[85].mxu0 }
 0x60d   :  { %v15013_v14 = vadd.f32 %v14943_v26, %v5619_v32  ;;  %v11662_v51 = vpop.f32.mrb[86].mxu0 }
 0x60e   :  { %v15016_v60 = vadd.f32 %v14943_v26, %v11662_v51  ;;  %v5622_v12 = vpop.f32.mrb[87].mxu0 }
 0x60f   :  { %v15019_v58 = vadd.f32 %v14943_v26, %v5622_v12 }
 0x610   :  { %v16623_v24 = vpack.c.bf16 %v15016_v60, %v15010_v8  ;;  %v10093_v8 = vld [vmem:[%s16599_s0 + $0x3d0] sm:$0xff]  ;;  %v10094_v60 = vld [vmem:[%s16599_s0 + $0x3d8] sm:$0xff] }
 0x611   :  { %v16622_v28 = vpack.c.bf16 %v15019_v58, %v15013_v14 }
 0x612   :  { %v5739_v14 = vmax.bf16 %v12750_v63, %v16623_v24  ;;  %v10135_v24 = vld [vmem:[%s16600_s1 + $0x3a0] sm:$0xff] }
 0x613   :  { %v11665_v46 = vpop.f32.mrb[88].mxu0 }
 0x614   :  { %v15026_v13 = vadd.f32 %v14943_v26, %v11665_v46  ;;  %v5635_v11 = vpop.f32.mrb[89].mxu0 }
 0x615   :  { %v15029_v36 = vadd.f32 %v14943_v26, %v5635_v11  ;;  %v11666_v37 = vpop.f32.mrb[90].mxu0 }
 0x616   :  { %v15032_v7 = vadd.f32 %v14943_v26, %v11666_v37  ;;  %v5638_v25 = vpop.f32.mrb[91].mxu0 }
 0x617   :  { %v15035_v44 = vadd.f32 %v14943_v26, %v5638_v25 }
 0x619   :  { %v16624_v58 = vpack.c.bf16 %v15035_v44, %v15029_v36  ;;  %v6757_v36 = vpack.c.bf16 %v10094_v60, %v10093_v8  ;;  %v16625_v44 = vpack.c.bf16 %v15032_v7, %v15026_v13  ;;  %v10097_v13 = vld [vmem:[%s16599_s0 + $0x3f0] sm:$0xff]  ;;  %v10098_v7 = vld [vmem:[%s16599_s0 + $0x3f8] sm:$0xff]  ;;  %v10140_v8 = vld [vmem:[%s16600_s1 + $0x3c8] sm:$0xff] }
 0x61b   :  { %v11669_v41 = vpop.f32.mrb[92].mxu0 }
 0x61c   :  { %v15045_v34 = vadd.f32 %v14943_v26, %v11669_v41  ;;  %v5651_v32 = vpop.f32.mrb[93].mxu0 }
 0x61d   :  { %v15049_v12 = vadd.f32 %v14943_v26, %v5651_v32  ;;  %v11670_v46 = vpop.f32.mrb[94].mxu0 }
 0x61e   :  { %v15052_v11 = vadd.f32 %v14943_v26, %v11670_v46 }
 0x62a   :  { %v11425_v52 = vpop.f32.mrb[156].mxu1 }
 0x62b   :  { %v3912_v49 = vpop.f32.mrb[157].mxu1 }
 0x62c   :  { %v11426_v18 = vpop.f32.mrb[158].mxu1 }
 0x62d   :  { %v4040_v29 = vpack.c.bf16 %v11426_v18, %v11425_v52  ;;  %v3915_v31 = vpop.f32.mrb[159].mxu1 }
 0x62e   :  { %v4039_v61 = vpack.c.bf16 %v3915_v31, %v3912_v49  ;;  %v5654_v49 = vpop.f32.mrb[95].mxu0 }
 0x62f   :  { %v4056_v33 = vmax.bf16 %v12750_v63, %v4040_v29  ;;  %v15056_v25 = vadd.f32 %v14943_v26, %v5654_v49  ;;  %v12715_v29 = vld [vmem:[%s16611_s12 + $0x8] sm:$0xff]   ;;  %v11673_v41 = vpop.f32.mrb[96].mxu0 }
 0x630   :  { %v4055_v38 = vmax.bf16 %v12750_v63, %v4039_v61  ;;  %v5667_v46 = vpop.f32.mrb[97].mxu0 }
 0x631   :  { %v15076_v49 = vadd.f32 %v14943_v26, %v5667_v46 }
 0x632   :  { %v11429_v1 = vpop.f32.mrb[160].mxu1  ;;  %11465 = vmatprep.mubr.msk.bf16.mxu1 %vm1337_vm6, %v4055_v38 }
 0x633   :  { %v3928_v51 = vpop.f32.mrb[161].mxu1  ;;  %11466 = vmatmul.mubr.msk.bf16.vlgmr.msra.gmra.mrb[188].mxu1 %vm1337_vm6, %v4056_v33 }
 0x634   :  { %v11430_v52 = vpop.f32.mrb[162].mxu1  ;;  %11498 = vmatpush3.bf16.msra.mxu1 %v14917_v40 }
 0x635   :  { %v4042_v37 = vpack.c.bf16 %v11430_v52, %v11429_v1  ;;  %v3931_v18 = vpop.f32.mrb[163].mxu1  ;;  %11499 = vmatprep.subr.bf16.mxu1 %v12715_v29  ;;  %v12716_v1 = vld [vmem:[%s16611_s12 + $0x10] sm:$0xff]  }
 0x636   :  { %v4041_v31 = vpack.c.bf16 %v3931_v18, %v3928_v51  ;;  %v15072_v51 = vadd.f32 %v14943_v26, %v11673_v41  ;;  %v12717_v41 = vld [vmem:[%s16611_s12 + $0x18] sm:$0xff]  }
 0x637   :  { %v4058_v40 = vmax.bf16 %v12750_v63, %v4042_v37  ;;  %v11674_v37 = vpop.f32.mrb[98].mxu0 }
 0x638   :  { %v4057_v33 = vmax.bf16 %v12750_v63, %v4041_v31  ;;  %11500 = vmatpush3.bf16.msra.mxu1 %v12715_v29  ;;  %v15079_v29 = vadd.f32 %v14943_v26, %v11674_v37  ;;  %v5670_v31 = vpop.f32.mrb[99].mxu0 }
 0x639   :  { %11501 = vmatprep.subr.bf16.mxu1 %v12716_v1 }
 0x63a   :  { %v11433_v32 = vpop.f32.mrb[164].mxu1  ;;  %11469 = vmatprep.mubr.msk.bf16.mxu1 %vm1337_vm6, %v4057_v33  ;;  %v15082_v33 = vadd.f32 %v14943_v26, %v5670_v31  ;;  %v15100_v31 = vld [vmem:[%s16608_s9] sm:$0xff]  }
 0x63b   :  { %v3944_v52 = vpop.f32.mrb[165].mxu1  ;;  %11470 = vmatmul.mubr.msk.bf16.gmra.mrb[192].mxu1 %vm1337_vm6, %v4058_v40 }
 0x63c   :  { %v11434_v18 = vpop.f32.mrb[166].mxu1  ;;  %11502 = vmatpush3.bf16.msra.mxu1 %v12716_v1 }
 0x63d   :  { %v4044_v61 = vpack.c.bf16 %v11434_v18, %v11433_v32  ;;  %v3947_v38 = vpop.f32.mrb[167].mxu1  ;;  %11503 = vmatprep.subr.bf16.mxu1 %v12717_v41 }
 0x63e   :  { %v4043_v40 = vpack.c.bf16 %v3947_v38, %v3944_v52 }
 0x63f   :  { %v4060_v1 = vmax.bf16 %v12750_v63, %v4044_v61 }
 0x640   :  { %v4059_v6 = vmax.bf16 %v12750_v63, %v4043_v40  ;;  %11504 = vmatpush3.bf16.msra.mxu1 %v12717_v41 }
 0x641   :  { %11505 = vmatprep.subr.bf16.mxu1 %v14072_v57 }
 0x642   :  { %v11437_v26 = vpop.f32.mrb[168].mxu1  ;;  %11473 = vmatprep.mubr.msk.bf16.mxu1 %vm1337_vm6, %v4059_v6 }
 0x643   :  { %v3960_v32 = vpop.f32.mrb[169].mxu1  ;;  %11474 = vmatmul.mubr.msk.bf16.gmra.mrb[196].mxu1 %vm1337_vm6, %v4060_v1 }
 0x644   :  { %v11438_v38 = vpop.f32.mrb[170].mxu1  ;;  %11506 = vmatpush3.bf16.msra.mxu1 %v14072_v57 }
 0x645   :  { %v4046_v52 = vpack.c.bf16 %v11438_v38, %v11437_v26  ;;  %v3963_v18 = vpop.f32.mrb[171].mxu1  ;;  %11675 = vmatprep.subr.bf16.mxu1 %v15100_v31 }
 0x646   :  { %v4045_v61 = vpack.c.bf16 %v3963_v18, %v3960_v32 }
 0x647   :  { %v4062_v6 = vmax.bf16 %v12750_v63, %v4046_v52 }
 0x648   :  { %v4061_v41 = vmax.bf16 %v12750_v63, %v4045_v61 }
 0x64a   :  { %v11441_v40 = vpop.f32.mrb[172].mxu1  ;;  %11477 = vmatprep.mubr.msk.bf16.mxu1 %vm1337_vm6, %v4061_v41 }
 0x64b   :  { %v3976_v1 = vpop.f32.mrb[173].mxu1  ;;  %11478 = vmatmul.mubr.msk.bf16.gmra.mrb[200].mxu1 %vm1337_vm6, %v4062_v6 }
 0x64c   :  { %v11442_v26 = vpop.f32.mrb[174].mxu1 }
 0x64d   :  { %v4048_v38 = vpack.c.bf16 %v11442_v26, %v11441_v40  ;;  %v3979_v46 = vpop.f32.mrb[175].mxu1 }
 0x64e   :  { %v4047_v37 = vpack.c.bf16 %v3979_v46, %v3976_v1 }
 0x64f   :  { %v4064_v0 = vmax.bf16 %v12750_v63, %v4048_v38 }
 0x650   :  { %v4063_v59 = vmax.bf16 %v12750_v63, %v4047_v37 }
 0x652   :  { %v11445_v53 = vpop.f32.mrb[176].mxu1  ;;  %11481 = vmatprep.mubr.msk.bf16.mxu1 %vm1337_vm6, %v4063_v59 }
 0x653   :  { %v3992_v32 = vpop.f32.mrb[177].mxu1  ;;  %11482 = vmatmul.mubr.msk.bf16.gmra.mrb[204].mxu1 %vm1337_vm6, %v4064_v0 }
 0x654   :  { %v11446_v52 = vpop.f32.mrb[178].mxu1 }
 0x655   :  { %v4050_v18 = vpack.c.bf16 %v11446_v52, %v11445_v53  ;;  %v3995_v61 = vpop.f32.mrb[179].mxu1 }
 0x656   :  { %v4049_v41 = vpack.c.bf16 %v3995_v61, %v3992_v32 }
 0x657   :  { %v4066_v40 = vmax.bf16 %v12750_v63, %v4050_v18 }
 0x658   :  { %v4065_v6 = vmax.bf16 %v12750_v63, %v4049_v41 }
 0x65a   :  { %v11449_v26 = vpop.f32.mrb[180].mxu1  ;;  %11485 = vmatprep.mubr.msk.bf16.mxu1 %vm1337_vm6, %v4065_v6 }
 0x65b   :  { %v4008_v46 = vpop.f32.mrb[181].mxu1  ;;  %11486 = vmatmul.mubr.msk.bf16.gmra.mrb[208].mxu1 %vm1337_vm6, %v4066_v40 }
 0x65c   :  { %v11450_v37 = vpop.f32.mrb[182].mxu1 }
 0x65d   :  { %v4052_v1 = vpack.c.bf16 %v11450_v37, %v11449_v26  ;;  %v4011_v59 = vpop.f32.mrb[183].mxu1 }
 0x65e   :  { %v4051_v38 = vpack.c.bf16 %v4011_v59, %v4008_v46  ;;  %v10068_v59 = vld [vmem:[%s16599_s0 + $0x308] sm:$0xff] }
 0x65f   :  { %v4068_v53 = vmax.bf16 %v12750_v63, %v4052_v1  ;;  %v10067_v1 = vld [vmem:[%s16599_s0 + $0x300] sm:$0xff] }
 0x660   :  { %v4067_v0 = vmax.bf16 %v12750_v63, %v4051_v38  ;;  %v10069_v38 = vld [vmem:[%s16599_s0 + $0x310] sm:$0xff] }
 0x662   :  { %v11453_v52 = vpop.f32.mrb[184].mxu1  ;;  %11489 = vmatprep.mubr.msk.bf16.mxu1 %vm1337_vm6, %v4067_v0 }
 0x663   :  { %v4024_v32 = vpop.f32.mrb[185].mxu1  ;;  %11490 = vmatmul.mubr.msk.bf16.gmra.mrb[212].mxu1 %vm1337_vm6, %v4068_v53  ;;  %v6744_v53 = vpack.c.bf16 %v10068_v59, %v10067_v1  ;;  %v10073_v59 = vld [vmem:[%s16599_s0 + $0x330] sm:$0xff] }
 0x664   :  { %v11454_v18 = vpop.f32.mrb[186].mxu1 }
 0x665   :  { %v4054_v61 = vpack.c.bf16 %v11454_v18, %v11453_v52  ;;  %v4027_v41 = vpop.f32.mrb[187].mxu1  ;;  %v10070_v52 = vld [vmem:[%s16599_s0 + $0x318] sm:$0xff]  ;;  %v10072_v18 = vld [vmem:[%s16599_s0 + $0x328] sm:$0xff]  ;;  %11845 = vmatprep.mubr.msk.bf16.mxu0 %vm136_vm2, %v6744_v53 }
 0x666   :  { %v4053_v6 = vpack.c.bf16 %v4027_v41, %v4024_v32  ;;  %v10071_v32 = vld [vmem:[%s16599_s0 + $0x320] sm:$0xff] }
 0x667   :  { %v4070_v26 = vmax.bf16 %v12750_v63, %v4054_v61 }
 0x668   :  { %v4069_v40 = vmax.bf16 %v12750_v63, %v4053_v6  ;;  %v6745_v6 = vpack.c.bf16 %v10070_v52, %v10069_v38  ;;  %v10075_v38 = vld [vmem:[%s16599_s0 + $0x340] sm:$0xff] }
 0x66a   :  { %11493 = vmatprep.mubr.msk.bf16.mxu1 %vm1337_vm6, %v4069_v40  ;;  %v6746_v40 = vpack.c.bf16 %v10072_v18, %v10071_v32  ;;  %11846 = vmatmul.mubr.msk.bf16.vlgmr.msra.gmra.mrb[100].mxu0 %vm136_vm2, %v6745_v6  ;;  %v12719_v6 = vld [vmem:[%s16608_s9 + $0x8] sm:$0xff]  }
 0x66b   :  { %11494 = vmatmul.mubr.msk.bf16.gmra.mrb[216].mxu1 %vm1337_vm6, %v4070_v26  ;;  %11878 = vmatpush3.bf16.msra.mxu0 %v14740_v9 }
 0x66c   :  { %11849 = vmatprep.mubr.msk.bf16.mxu0 %vm136_vm2, %v6746_v40  ;;  %11911 = vmatprep.subr.bf16.mxu0 %v12872_v22 }
 0x706   :  { %v11467_v46 = vpop.f32.mrb[188].mxu1 }
 0x707   :  { %v4153_v37 = vpop.f32.mrb[189].mxu1 }
 0x708   :  { %v11468_v0 = vpop.f32.mrb[190].mxu1 }
 0x709   :  { %v4281_v61 = vpack.c.bf16 %v11468_v0, %v11467_v46  ;;  %v4156_v41 = vpop.f32.mrb[191].mxu1  ;;  %v10074_v46 = vld [vmem:[%s16599_s0 + $0x338] sm:$0xff]  ;;  %v10076_v0 = vld [vmem:[%s16599_s0 + $0x348] sm:$0xff] }
 0x70a   :  { %v4280_v26 = vpack.c.bf16 %v4156_v41, %v4153_v37  ;;  %v6747_v32 = vpack.c.bf16 %v10074_v46, %v10073_v59  ;;  %v6748_v18 = vpack.c.bf16 %v10076_v0, %v10075_v38  ;;  %v12720_v46 = vld [vmem:[%s16608_s9 + $0x10] sm:$0xff]   ;;  %v10080_v38 = vld [vmem:[%s16599_s0 + $0x368] sm:$0xff] }
 0x70b   :  { %v4297_v37 = vmax.bf16 %v12750_v63, %v4281_v61 }
 0x70c   :  { %v4296_v1 = vmax.bf16 %v12750_v63, %v4280_v26  ;;  %11850 = vmatmul.mubr.msk.bf16.gmra.mrb[104].mxu0 %vm136_vm2, %v6747_v32 }
 0x70d   :  { %11853 = vmatprep.mubr.msk.bf16.mxu0 %vm136_vm2, %v6748_v18 }
 0x70e   :  { %v11471_v53 = vpop.f32.mrb[192].mxu1  ;;  %11507 = vmatprep.mubr.msk.bf16.mxu1 %vm1337_vm6, %v4296_v1  ;;  %v10078_v1 = vld [vmem:[%s16599_s0 + $0x358] sm:$0xff] }
 0x70f   :  { %v4169_v52 = vpop.f32.mrb[193].mxu1  ;;  %11508 = vmatmul.mubr.msk.bf16.vlgmr.msra.gmra.mrb[220].mxu1 %vm1337_vm6, %v4297_v37  ;;  %v10079_v37 = vld [vmem:[%s16599_s0 + $0x360] sm:$0xff] }
 0x710   :  { %v11472_v9 = vpop.f32.mrb[194].mxu1  ;;  %11676 = vmatpush3.bf16.msra.mxu1 %v15100_v31  ;;  %v10077_v31 = vld [vmem:[%s16599_s0 + $0x350] sm:$0xff] }
 0x711   :  { %v4283_v61 = vpack.c.bf16 %v11472_v9, %v11471_v53  ;;  %v4172_v41 = vpop.f32.mrb[195].mxu1  ;;  %11677 = vmatprep.subr.bf16.mxu1 %v12719_v6  ;;  %v6750_v9 = vpack.c.bf16 %v10080_v38, %v10079_v37 }
 0x712   :  { %v4282_v40 = vpack.c.bf16 %v4172_v41, %v4169_v52  ;;  %v6749_v52 = vpack.c.bf16 %v10078_v1, %v10077_v31  ;;  %v12721_v41 = vld [vmem:[%s16608_s9 + $0x18] sm:$0xff]  }
 0x713   :  { %v4299_v59 = vmax.bf16 %v12750_v63, %v4283_v61  ;;  %v10082_v31 = vld [vmem:[%s16599_s0 + $0x378] sm:$0xff] }
 0x714   :  { %v4298_v26 = vmax.bf16 %v12750_v63, %v4282_v40  ;;  %11678 = vmatpush3.bf16.msra.mxu1 %v12719_v6  ;;  %11854 = vmatmul.mubr.msk.bf16.gmra.mrb[108].mxu0 %vm136_vm2, %v6749_v52  ;;  %v12722_v52 = vld [vmem:[%s16609_s10] sm:$0xff]  }
 0x715   :  { %11679 = vmatprep.subr.bf16.mxu1 %v12720_v46  ;;  %11857 = vmatprep.mubr.msk.bf16.mxu0 %vm136_vm2, %v6750_v9 }
 0x716   :  { %v11475_v0 = vpop.f32.mrb[196].mxu1  ;;  %11511 = vmatprep.mubr.msk.bf16.mxu1 %vm1337_vm6, %v4298_v26  ;;  %v10081_v26 = vld [vmem:[%s16599_s0 + $0x370] sm:$0xff] }
 0x717   :  { %v4185_v53 = vpop.f32.mrb[197].mxu1  ;;  %11512 = vmatmul.mubr.msk.bf16.gmra.mrb[224].mxu1 %vm1337_vm6, %v4299_v59  ;;  %v6751_v37 = vpack.c.bf16 %v10082_v31, %v10081_v26 }
 0x718   :  { %v11476_v32 = vpop.f32.mrb[198].mxu1  ;;  %11680 = vmatpush3.bf16.msra.mxu1 %v12720_v46 }
 0x719   :  { %v4285_v18 = vpack.c.bf16 %v11476_v32, %v11475_v0  ;;  %v4188_v61 = vpop.f32.mrb[199].mxu1  ;;  %11681 = vmatprep.subr.bf16.mxu1 %v12721_v41 }
 0x71a   :  { %v4284_v6 = vpack.c.bf16 %v4188_v61, %v4185_v53 }
 0x71b   :  { %v4301_v1 = vmax.bf16 %v12750_v63, %v4285_v18 }
 0x71c   :  { %v4300_v40 = vmax.bf16 %v12750_v63, %v4284_v6  ;;  %11682 = vmatpush3.bf16.msra.mxu1 %v12721_v41  ;;  %11858 = vmatmul.mubr.msk.bf16.gmra.mrb[112].mxu0 %vm136_vm2, %v6751_v37 }
 0x71d   :  { %11683 = vmatprep.subr.bf16.mxu1 %v13148_v4  ;;  %11861 = vmatprep.mubr.msk.bf16.mxu0 %vm136_vm2, %v6752_v10  ;;  %v7039_v10 = vpack.c.bf16 %v10126_v30, %v10125_v27  ;;  %v10180_v27 = vld [vmem:[%s16601_s2 + $0x388] sm:$0xff] }
 0x71e   :  { %v11479_v59 = vpop.f32.mrb[200].mxu1  ;;  %11515 = vmatprep.mubr.msk.bf16.mxu1 %vm1337_vm6, %v4300_v40 }
 0x71f   :  { %v4201_v46 = vpop.f32.mrb[201].mxu1  ;;  %11516 = vmatmul.mubr.msk.bf16.gmra.mrb[228].mxu1 %vm1337_vm6, %v4301_v1 }
 0x720   :  { %v11480_v38 = vpop.f32.mrb[202].mxu1  ;;  %11684 = vmatpush3.bf16.msra.mxu1 %v13148_v4 }
 0x721   :  { %v4287_v0 = vpack.c.bf16 %v11480_v38, %v11479_v59  ;;  %v4204_v53 = vpop.f32.mrb[203].mxu1  ;;  %11717 = vmatprep.subr.bf16.mxu1 %v12722_v52 }
 0x722   :  { %v4286_v32 = vpack.c.bf16 %v4204_v53, %v4201_v46 }
 0x723   :  { %v4303_v18 = vmax.bf16 %v12750_v63, %v4287_v0 }
 0x724   :  { %v4302_v9 = vmax.bf16 %v12750_v63, %v4286_v32 }
 0x726   :  { %v11483_v61 = vpop.f32.mrb[204].mxu1  ;;  %11519 = vmatprep.mubr.msk.bf16.mxu1 %vm1337_vm6, %v4302_v9 }
 0x727   :  { %v4217_v41 = vpop.f32.mrb[205].mxu1  ;;  %11520 = vmatmul.mubr.msk.bf16.gmra.mrb[232].mxu1 %vm1337_vm6, %v4303_v18 }
 0x728   :  { %v11484_v6 = vpop.f32.mrb[206].mxu1 }
 0x729   :  { %v4289_v40 = vpack.c.bf16 %v11484_v6, %v11483_v61  ;;  %v4220_v26 = vpop.f32.mrb[207].mxu1 }
 0x72a   :  { %v4288_v31 = vpack.c.bf16 %v4220_v26, %v4217_v41 }
 0x72b   :  { %v4305_v59 = vmax.bf16 %v12750_v63, %v4289_v40 }
 0x72c   :  { %v4304_v1 = vmax.bf16 %v12750_v63, %v4288_v31 }
 0x72e   :  { %v11487_v46 = vpop.f32.mrb[208].mxu1  ;;  %11523 = vmatprep.mubr.msk.bf16.mxu1 %vm1337_vm6, %v4304_v1 }
 0x72f   :  { %v4233_v37 = vpop.f32.mrb[209].mxu1  ;;  %11524 = vmatmul.mubr.msk.bf16.gmra.mrb[236].mxu1 %vm1337_vm6, %v4305_v59 }
 0x730   :  { %v11488_v38 = vpop.f32.mrb[210].mxu1 }
 0x731   :  { %v4291_v0 = vpack.c.bf16 %v11488_v38, %v11487_v46  ;;  %v4236_v53 = vpop.f32.mrb[211].mxu1 }
 0x732   :  { %v4290_v32 = vpack.c.bf16 %v4236_v53, %v4233_v37 }
 0x733   :  { %v4307_v18 = vmax.bf16 %v12750_v63, %v4291_v0 }
 0x734   :  { %v4306_v9 = vmax.bf16 %v12750_v63, %v4290_v32 }
 0x736   :  { %v11491_v61 = vpop.f32.mrb[212].mxu1  ;;  %11527 = vmatprep.mubr.msk.bf16.mxu1 %vm1337_vm6, %v4306_v9 }
 0x737   :  { %v4249_v41 = vpop.f32.mrb[213].mxu1  ;;  %11528 = vmatmul.mubr.msk.bf16.gmra.mrb[240].mxu1 %vm1337_vm6, %v4307_v18 }
 0x738   :  { %v11492_v6 = vpop.f32.mrb[214].mxu1 }
 0x739   :  { %v4293_v40 = vpack.c.bf16 %v11492_v6, %v11491_v61  ;;  %v4252_v26 = vpop.f32.mrb[215].mxu1  ;;  %v5730_v61 = vmax.bf16 %v12750_v63, %v5714_v23  ;;  %v5732_v6 = vmax.bf16 %v12750_v63, %v5716_v42  ;;  %v5735_v23 = vmax.bf16 %v12750_v63, %v5719_v43  ;;  %v10086_v42 = vld [vmem:[%s16599_s0 + $0x398] sm:$0xff] }
 0x73a   :  { %v4292_v31 = vpack.c.bf16 %v4252_v26, %v4249_v41  ;;  %v5731_v41 = vmax.bf16 %v12750_v63, %v5715_v20  ;;  %v12725_v20 = vld [vmem:[%s16609_s10 + $0x18] sm:$0xff]   ;;  %v6753_v54 = vpack.c.bf16 %v10086_v42, %v10085_v35  ;;  %v5738_v43 = vmax.bf16 %v12750_v63, %v16622_v28  ;;  %v10092_v26 = vld [vmem:[%s16599_s0 + $0x3c8] sm:$0xff]  ;;  %v10127_v35 = vld [vmem:[%s16600_s1 + $0x360] sm:$0xff] }
 0x73b   :  { %v4309_v59 = vmax.bf16 %v12750_v63, %v4293_v40  ;;  %v10091_v40 = vld [vmem:[%s16599_s0 + $0x3c0] sm:$0xff]  ;;  %v10128_v42 = vld [vmem:[%s16600_s1 + $0x368] sm:$0xff]  ;;  %v10130_v28 = vld [vmem:[%s16600_s1 + $0x378] sm:$0xff] }
 0x73c   :  { %v4308_v1 = vmax.bf16 %v12750_v63, %v4292_v31  ;;  %11862 = vmatmul.mubr.msk.bf16.gmra.mrb[116].mxu0 %vm136_vm2, %v6753_v54  ;;  %v6756_v31 = vpack.c.bf16 %v10092_v26, %v10091_v40  ;;  %v7040_v54 = vpack.c.bf16 %v10128_v42, %v10127_v35  ;;  %v10138_v40 = vld [vmem:[%s16600_s1 + $0x3b8] sm:$0xff] }
 0x73d   :  { %11865 = vmatprep.mubr.msk.bf16.mxu0 %vm136_vm2, %v6754_v5  ;;  %v7042_v5 = vpack.c.bf16 %v10132_v56, %v10131_v39  ;;  %v10182_v35 = vld [vmem:[%s16601_s2 + $0x398] sm:$0xff]  ;;  %v10185_v39 = vld [vmem:[%s16601_s2 + $0x3b0] sm:$0xff] }
 0x73e   :  { %v11495_v46 = vpop.f32.mrb[216].mxu1  ;;  %11531 = vmatprep.mubr.msk.bf16.mxu1 %vm1337_vm6, %v4308_v1  ;;  %v5741_v1 = vmax.bf16 %v12750_v63, %v16625_v44  ;;  %v10142_v44 = vld [vmem:[%s16600_s1 + $0x3d8] sm:$0xff] }
 0x73f   :  { %v4265_v37 = vpop.f32.mrb[217].mxu1  ;;  %11532 = vmatmul.mubr.msk.bf16.gmra.mrb[244].mxu1 %vm1337_vm6, %v4309_v59  ;;  %v16626_v59 = vpack.c.bf16 %v15056_v25, %v15049_v12  ;;  %v6759_v12 = vpack.c.bf16 %v10098_v7, %v10097_v13  ;;  %v16627_v25 = vpack.c.bf16 %v15052_v11, %v15045_v34  ;;  %v10117_v34 = vld [vmem:[%s16600_s1 + $0x310] sm:$0xff]  ;;  %v10118_v11 = vld [vmem:[%s16600_s1 + $0x318] sm:$0xff]  ;;  %v10163_v7 = vld [vmem:[%s16601_s2 + $0x300] sm:$0xff] }
 0x740   :  { %v11496_v38 = vpop.f32.mrb[218].mxu1 }
 0x741   :  { %v4295_v0 = vpack.c.bf16 %v11496_v38, %v11495_v46  ;;  %v4268_v53 = vpop.f32.mrb[219].mxu1  ;;  %v5742_v46 = vmax.bf16 %v12750_v63, %v16626_v59  ;;  %v10096_v38 = vld [vmem:[%s16599_s0 + $0x3e8] sm:$0xff]  ;;  %v10143_v59 = vld [vmem:[%s16600_s1 + $0x3e0] sm:$0xff] }
 0x742   :  { %v4294_v32 = vpack.c.bf16 %v4268_v53, %v4265_v37  ;;  %v10095_v37 = vld [vmem:[%s16599_s0 + $0x3e0] sm:$0xff]  ;;  %v5743_v53 = vmax.bf16 %v12750_v63, %v16627_v25 }
 0x743   :  { %v4311_v18 = vmax.bf16 %v12750_v63, %v4295_v0  ;;  %v6758_v0 = vpack.c.bf16 %v10096_v38, %v10095_v37  ;;  %v10145_v38 = vld [vmem:[%s16600_s1 + $0x3f0] sm:$0xff] }
 0x744   :  { %v4310_v9 = vmax.bf16 %v12750_v63, %v4294_v32  ;;  %11866 = vmatmul.mubr.msk.bf16.gmra.mrb[120].mxu0 %vm136_vm2, %v6755_v17  ;;  %v16628_v32 = vpack.c.bf16 %v15082_v33, %v15076_v49  ;;  %v7035_v49 = vpack.c.bf16 %v10118_v11, %v10117_v34  ;;  %v12727_v33 = vld [vmem:[%s16606_s7] sm:$0x1f]   ;;  %v7043_v17 = vpack.c.bf16 %v10134_v21, %v10133_v62  ;;  %v10169_v34 = vld [vmem:[%s16601_s2 + $0x330] sm:$0xff]  ;;  %v10170_v11 = vld [vmem:[%s16601_s2 + $0x338] sm:$0xff] }
 0x745   :  { %11869 = vmatprep.mubr.msk.bf16.mxu0 %vm136_vm2, %v6756_v31  ;;  %v10139_v31 = vld [vmem:[%s16600_s1 + $0x3c0] sm:$0xff]  ;;  %v10186_v62 = vld [vmem:[%s16601_s2 + $0x3b8] sm:$0xff] }
 0x746   :  { %11535 = vmatprep.mubr.msk.bf16.mxu1 %vm1337_vm6, %v4310_v9  ;;  %v5744_v9 = vmax.bf16 %v12750_v63, %v16628_v32  ;;  %v7046_v60 = vpack.c.bf16 %v10140_v8, %v10139_v31  ;;  %v10166_v32 = vld [vmem:[%s16601_s2 + $0x318] sm:$0xff]  ;;  %v10187_v21 = vld [vmem:[%s16601_s2 + $0x3c0] sm:$0xff]  ;;  %v10189_v8 = vld [vmem:[%s16601_s2 + $0x3d0] sm:$0xff] }
 0x747   :  { %11536 = vmatmul.mubr.msk.bf16.gmra.mrb[248].mxu1 %vm1337_vm6, %v4311_v18  ;;  %v10115_v18 = vld [vmem:[%s16600_s1 + $0x300] sm:$0xff] }
 0x748   :  { %11685 = vmatprep.mubr.msk.bf16.mxu1 %vm1337_vm6, %v5730_v61  ;;  %v10116_v61 = vld [vmem:[%s16600_s1 + $0x308] sm:$0xff] }
 0x74c   :  { %11870 = vmatmul.mubr.msk.bf16.gmra.mrb[124].mxu0 %vm136_vm2, %v6757_v36  ;;  %v10141_v36 = vld [vmem:[%s16600_s1 + $0x3d0] sm:$0xff] }
 0x74d   :  { %11873 = vmatprep.mubr.msk.bf16.mxu0 %vm136_vm2, %v6758_v0  ;;  %v10146_v0 = vld [vmem:[%s16600_s1 + $0x3f8] sm:$0xff] }
 0x74e   :  { %v7049_v13 = vpack.c.bf16 %v10146_v0, %v10145_v38 }
 0x74f   :  { %11686 = vmatmul.mubr.msk.bf16.vlgmr.msra.gmra.mrb[252].mxu1 %vm1337_vm6, %v5731_v41  ;;  %v7034_v41 = vpack.c.bf16 %v10116_v61, %v10115_v18  ;;  %v10167_v18 = vld [vmem:[%s16601_s2 + $0x320] sm:$0xff]  ;;  %v10168_v61 = vld [vmem:[%s16601_s2 + $0x328] sm:$0xff] }
 0x750   :  { %11689 = vmatprep.mubr.msk.bf16.mxu1 %vm1337_vm6, %v5732_v6  ;;  %11718 = vmatpush3.bf16.msra.mxu1 %v12722_v52  ;;  %v5740_v52 = vmax.bf16 %v12750_v63, %v16624_v58  ;;  %v16629_v6 = vpack.c.bf16 %v15079_v29, %v15072_v51  ;;  %v10122_v51 = vld [vmem:[%s16600_s1 + $0x338] sm:$0xff] }
 0x751   :  { %11719 = vmatprep.subr.bf16.mxu1 %v12723_v15 }
 0x754   :  { %11720 = vmatpush3.bf16.msra.mxu1 %v12723_v15  ;;  %11874 = vmatmul.mubr.msk.bf16.gmra.mrb[128].mxu0 %vm136_vm2, %v6759_v12  ;;  %v5745_v15 = vmax.bf16 %v12750_v63, %v16629_v6  ;;  %v10164_v12 = vld [vmem:[%s16601_s2 + $0x308] sm:$0xff] }
 0x755   :  { %11721 = vmatprep.subr.bf16.mxu1 %v12724_v16  ;;  %11879 = vmatprep.mubr.msk.bf16.mxu0 %vm445_vm3, %v7034_v41  ;;  %v7324_v25 = vpack.c.bf16 %v10164_v12, %v10163_v7  ;;  %v7326_v41 = vpack.c.bf16 %v10168_v61, %v10167_v18  ;;  %v10211_v61 = vld [vmem:[%s16602_s3 + $0x300] sm:$0xff] }
 0x757   :  { %11690 = vmatmul.mubr.msk.bf16.gmra.mrb[0].mxu1 %vm1337_vm6, %v5733_v2  ;;  %v10119_v2 = vld [vmem:[%s16600_s1 + $0x320] sm:$0xff] }
 0x758   :  { %11693 = vmatprep.mubr.msk.bf16.mxu1 %vm1337_vm6, %v5734_v19  ;;  %11722 = vmatpush3.bf16.msra.mxu1 %v12724_v16  ;;  %v10120_v16 = vld [vmem:[%s16600_s1 + $0x328] sm:$0xff]  ;;  %v10121_v19 = vld [vmem:[%s16600_s1 + $0x330] sm:$0xff] }
 0x759   :  { %11723 = vmatprep.subr.bf16.mxu1 %v12725_v20  ;;  %v7037_v29 = vpack.c.bf16 %v10122_v51, %v10121_v19  ;;  %v10176_v19 = vld [vmem:[%s16601_s2 + $0x368] sm:$0xff] }
 0x75c   :  { %11724 = vmatpush3.bf16.msra.mxu1 %v12725_v20  ;;  %11880 = vmatmul.mubr.msk.bf16.vlgmr.msra.gmra.mrb[100].mxu0 %vm445_vm3, %v7035_v49  ;;  %v10123_v20 = vld [vmem:[%s16600_s1 + $0x340] sm:$0xff]  ;;  %v7327_v49 = vpack.c.bf16 %v10170_v11, %v10169_v34 }
 0x75d   :  { %11725 = vmatprep.subr.bf16.mxu1 %v13454_v48  ;;  %11912 = vmatpush3.bf16.msra.mxu0 %v12872_v22  ;;  %v7036_v22 = vpack.c.bf16 %v10120_v16, %v10119_v2  ;;  %v10174_v2 = vld [vmem:[%s16601_s2 + $0x358] sm:$0xff] }
 0x75e   :  { %12672 = vmatprep.subr.msk.bf16.mxu0 %vm1081_vm4, %v12727_v33  ;;  %v10172_v33 = vld [vmem:[%s16601_s2 + $0x348] sm:$0xff] }
 0x75f   :  { %11694 = vmatmul.mubr.msk.bf16.gmra.mrb[4].mxu1 %vm1337_vm6, %v5735_v23  ;;  %11883 = vmatprep.mubr.msk.bf16.mxu0 %vm445_vm3, %v7036_v22  ;;  %v10124_v23 = vld [vmem:[%s16600_s1 + $0x348] sm:$0xff]  ;;  %v10175_v22 = vld [vmem:[%s16601_s2 + $0x360] sm:$0xff] }
 0x760   :  { %11697 = vmatprep.mubr.msk.bf16.mxu1 %vm1337_vm6, %v5736_v47  ;;  %11726 = vmatpush3.bf16.msra.mxu1 %v13454_v48  ;;  %v7038_v47 = vpack.c.bf16 %v10124_v23, %v10123_v20  ;;  %v7330_v51 = vpack.c.bf16 %v10176_v19, %v10175_v22  ;;  %v10178_v20 = vld [vmem:[%s16601_s2 + $0x378] sm:$0xff] }
 0x761   :  { %11759 = vmatprep.subr.bf16.mxu1 %v15290_v45  ;;  %v10214_v22 = vld [vmem:[%s16602_s3 + $0x318] sm:$0xff] }
 0x764   :  { %11884 = vmatmul.mubr.msk.bf16.gmra.mrb[104].mxu0 %vm445_vm3, %v7037_v29  ;;  %v10177_v29 = vld [vmem:[%s16601_s2 + $0x370] sm:$0xff] }
 0x765   :  { %11887 = vmatprep.mubr.msk.bf16.mxu0 %vm445_vm3, %v7038_v47  ;;  %v7331_v23 = vpack.c.bf16 %v10178_v20, %v10177_v29  ;;  %v10179_v47 = vld [vmem:[%s16601_s2 + $0x380] sm:$0xff]  ;;  %v10216_v20 = vld [vmem:[%s16602_s3 + $0x328] sm:$0xff] }
 0x766   :  { %v7332_v30 = vpack.c.bf16 %v10180_v27, %v10179_v47  ;;  %v10215_v29 = vld [vmem:[%s16602_s3 + $0x320] sm:$0xff] }
 0x767   :  { %11698 = vmatmul.mubr.msk.bf16.gmra.mrb[8].mxu1 %vm1337_vm6, %v5737_v50  ;;  %v10129_v50 = vld [vmem:[%s16600_s1 + $0x370] sm:$0xff] }
 0x768   :  { %11701 = vmatprep.mubr.msk.bf16.mxu1 %vm1337_vm6, %v5738_v43  ;;  %v7041_v43 = vpack.c.bf16 %v10130_v28, %v10129_v50  ;;  %v10183_v28 = vld [vmem:[%s16601_s2 + $0x3a0] sm:$0xff] }
 0x76c   :  { %11888 = vmatmul.mubr.msk.bf16.gmra.mrb[108].mxu0 %vm445_vm3, %v7039_v10  ;;  %v10181_v10 = vld [vmem:[%s16601_s2 + $0x390] sm:$0xff] }
 0x76d   :  { %11891 = vmatprep.mubr.msk.bf16.mxu0 %vm445_vm3, %v7040_v54  ;;  %v7333_v42 = vpack.c.bf16 %v10182_v35, %v10181_v10 }
 0x76f   :  { %11702 = vmatmul.mubr.msk.bf16.gmra.mrb[12].mxu1 %vm1337_vm6, %v5739_v14  ;;  %v10136_v14 = vld [vmem:[%s16600_s1 + $0x3a8] sm:$0xff] }
 0x770   :  { %11705 = vmatprep.mubr.msk.bf16.mxu1 %vm1337_vm6, %v5740_v52  ;;  %v7044_v58 = vpack.c.bf16 %v10136_v14, %v10135_v24  ;;  %v10137_v52 = vld [vmem:[%s16600_s1 + $0x3b0] sm:$0xff]  ;;  %v7335_v14 = vpack.c.bf16 %v10186_v62, %v10185_v39 }
 0x771   :  { %v7045_v26 = vpack.c.bf16 %v10138_v40, %v10137_v52 }
 0x774   :  { %11892 = vmatmul.mubr.msk.bf16.gmra.mrb[112].mxu0 %vm445_vm3, %v7041_v43  ;;  %v10184_v43 = vld [vmem:[%s16601_s2 + $0x3a8] sm:$0xff] }
 0x775   :  { %11895 = vmatprep.mubr.msk.bf16.mxu0 %vm445_vm3, %v7042_v5  ;;  %v7334_v5 = vpack.c.bf16 %v10184_v43, %v10183_v28  ;;  %v10218_v28 = vld [vmem:[%s16602_s3 + $0x338] sm:$0xff] }
 0x777   :  { %11706 = vmatmul.mubr.msk.bf16.gmra.mrb[16].mxu1 %vm1337_vm6, %v5741_v1  ;;  %v7047_v1 = vpack.c.bf16 %v10142_v44, %v10141_v36 }
 0x778   :  { %11709 = vmatprep.mubr.msk.bf16.mxu1 %vm1337_vm6, %v5742_v46  ;;  %v10144_v46 = vld [vmem:[%s16600_s1 + $0x3e8] sm:$0xff] }
 0x779   :  { %v7048_v37 = vpack.c.bf16 %v10144_v46, %v10143_v59  ;;  %v10192_v59 = vld [vmem:[%s16601_s2 + $0x3e8] sm:$0xff] }
 0x77c   :  { %11896 = vmatmul.mubr.msk.bf16.gmra.mrb[116].mxu0 %vm445_vm3, %v7043_v17  ;;  %v10188_v17 = vld [vmem:[%s16601_s2 + $0x3c8] sm:$0xff] }
 0x77d   :  { %11899 = vmatprep.mubr.msk.bf16.mxu0 %vm445_vm3, %v7044_v58  ;;  %v7336_v58 = vpack.c.bf16 %v10188_v17, %v10187_v21 }
 0x77f   :  { %11710 = vmatmul.mubr.msk.bf16.gmra.mrb[20].mxu1 %vm1337_vm6, %v5743_v53  ;;  %v10165_v53 = vld [vmem:[%s16601_s2 + $0x310] sm:$0xff] }
 0x780   :  { %11713 = vmatprep.mubr.msk.bf16.mxu1 %vm1337_vm6, %v5744_v9  ;;  %v7325_v9 = vpack.c.bf16 %v10166_v32, %v10165_v53  ;;  %v10193_v53 = vld [vmem:[%s16601_s2 + $0x3f0] sm:$0xff]  ;;  %v10194_v32 = vld [vmem:[%s16601_s2 + $0x3f8] sm:$0xff] }
 0x784   :  { %11900 = vmatmul.mubr.msk.bf16.gmra.mrb[120].mxu0 %vm445_vm3, %v7045_v26 }
 0x785   :  { %11903 = vmatprep.mubr.msk.bf16.mxu0 %vm445_vm3, %v7046_v60  ;;  %v10190_v60 = vld [vmem:[%s16601_s2 + $0x3d8] sm:$0xff] }
 0x786   :  { %v7337_v38 = vpack.c.bf16 %v10190_v60, %v10189_v8 }
 0x787   :  { %11714 = vmatmul.mubr.msk.bf16.gmra.mrb[24].mxu1 %vm1337_vm6, %v5745_v15  ;;  %v10173_v15 = vld [vmem:[%s16601_s2 + $0x350] sm:$0xff] }
 0x788   :  { %v7329_v16 = vpack.c.bf16 %v10174_v2, %v10173_v15 }
 0x78c   :  { %11904 = vmatmul.mubr.msk.bf16.gmra.mrb[124].mxu0 %vm445_vm3, %v7047_v1  ;;  %v10191_v1 = vld [vmem:[%s16601_s2 + $0x3e0] sm:$0xff] }
 0x78d   :  { %11907 = vmatprep.mubr.msk.bf16.mxu0 %vm445_vm3, %v7048_v37  ;;  %v7338_v0 = vpack.c.bf16 %v10192_v59, %v10191_v1 }
 0x794   :  { %11908 = vmatmul.mubr.msk.bf16.gmra.mrb[128].mxu0 %vm445_vm3, %v7049_v13 }
 0x795   :  { %11913 = vmatprep.mubr.msk.bf16.mxu0 %vm136_vm2, %v7324_v25 }
 0x79c   :  { %11914 = vmatmul.mubr.msk.bf16.vlgmr.msra.gmra.mrb[100].mxu0 %vm136_vm2, %v7325_v9 }
 0x79d   :  { %11946 = vmatpush3.bf16.msra.mxu0 %v13108_v55  ;;  %11917 = vmatprep.mubr.msk.bf16.mxu0 %vm136_vm2, %v7326_v41  ;;  %v10171_v55 = vld [vmem:[%s16601_s2 + $0x340] sm:$0xff]  ;;  %v10212_v41 = vld [vmem:[%s16602_s3 + $0x308] sm:$0xff] }
 0x79e   :  { %v7328_v6 = vpack.c.bf16 %v10172_v33, %v10171_v55  ;;  %v7614_v55 = vpack.c.bf16 %v10212_v41, %v10211_v61 }
 0x7a4   :  { %11918 = vmatmul.mubr.msk.bf16.gmra.mrb[104].mxu0 %vm136_vm2, %v7327_v49  ;;  %v7339_v49 = vpack.c.bf16 %v10194_v32, %v10193_v53 }
 0x7a5   :  { %11921 = vmatprep.mubr.msk.bf16.mxu0 %vm136_vm2, %v7328_v6 }
 0x7ac   :  { %11922 = vmatmul.mubr.msk.bf16.gmra.mrb[108].mxu0 %vm136_vm2, %v7329_v16  ;;  %v10213_v16 = vld [vmem:[%s16602_s3 + $0x310] sm:$0xff] }
 0x7ad   :  { %11925 = vmatprep.mubr.msk.bf16.mxu0 %vm136_vm2, %v7330_v51  ;;  %v7615_v27 = vpack.c.bf16 %v10214_v22, %v10213_v16 }
 0x7b4   :  { %11926 = vmatmul.mubr.msk.bf16.gmra.mrb[112].mxu0 %vm136_vm2, %v7331_v23 }
 0x7b5   :  { %11929 = vmatprep.mubr.msk.bf16.mxu0 %vm136_vm2, %v7332_v30  ;;  %v7616_v30 = vpack.c.bf16 %v10216_v20, %v10215_v29 }
 0x7bc   :  { %11930 = vmatmul.mubr.msk.bf16.gmra.mrb[116].mxu0 %vm136_vm2, %v7333_v42 }
 0x7bd   :  { %11933 = vmatprep.mubr.msk.bf16.mxu0 %vm136_vm2, %v7334_v5  ;;  %v10220_v5 = vld [vmem:[%s16602_s3 + $0x348] sm:$0xff] }
 0x7c4   :  { %11934 = vmatmul.mubr.msk.bf16.gmra.mrb[120].mxu0 %vm136_vm2, %v7335_v14 }
 0x7c5   :  { %11937 = vmatprep.mubr.msk.bf16.mxu0 %vm136_vm2, %v7336_v58 }
 0x7cc   :  { %11938 = vmatmul.mubr.msk.bf16.gmra.mrb[124].mxu0 %vm136_vm2, %v7337_v38 }
 0x7cd   :  { %11941 = vmatprep.mubr.msk.bf16.mxu0 %vm136_vm2, %v7338_v0 }
 0x7d4   :  { %11942 = vmatmul.mubr.msk.bf16.gmra.mrb[128].mxu0 %vm136_vm2, %v7339_v49 }
 0x7d5   :  { %11947 = vmatprep.mubr.msk.bf16.mxu0 %vm1032_vm5, %v7614_v55 }
 0x7dc   :  { %11948 = vmatmul.mubr.msk.bf16.vlgmr.msra.gmra.mrb[100].mxu0 %vm1032_vm5, %v7615_v27 }
 0x7dd   :  { %11951 = vmatprep.mubr.msk.bf16.mxu0 %vm1032_vm5, %v7616_v30 }
 0x7e2   :  { %v11509_v54 = vpop.f32.mrb[220].mxu1 }
 0x7e3   :  { %4524 = vst.msk [vmem:[#allocation2 + $0x110] sm:$0xff] %vm136_vm2, %v11509_v54  ;;  %v4394_v50 = vpop.f32.mrb[221].mxu1 }
 0x7e4   :  { %4522 = vst.msk [vmem:[#allocation2 + $0x100] sm:$0xff] %vm136_vm2, %v4394_v50  ;;  %v11510_v56 = vpop.f32.mrb[222].mxu1  ;;  %v10217_v50 = vld [vmem:[%s16602_s3 + $0x330] sm:$0xff] }
 0x7e5   :  { %4525 = vst.msk [vmem:[#allocation2 + $0x118] sm:$0xff] %vm136_vm2, %v11510_v56  ;;  %v4397_v24 = vpop.f32.mrb[223].mxu1  ;;  %v10219_v56 = vld [vmem:[%s16602_s3 + $0x340] sm:$0xff]  ;;  %v7617_v17 = vpack.c.bf16 %v10218_v28, %v10217_v50 }
 0x7e6   :  { %4523 = vst.msk [vmem:[#allocation2 + $0x108] sm:$0xff] %vm136_vm2, %v4397_v24  ;;  %v7618_v24 = vpack.c.bf16 %v10220_v5, %v10219_v56 }
 0x7e7   :  { %11952 = vmatmul.mubr.msk.bf16.gmra.mrb[104].mxu0 %vm1032_vm5, %v7617_v17 }
 0x7e8   :  { %11955 = vmatprep.mubr.msk.bf16.mxu0 %vm1032_vm5, %v7618_v24 }
 0x7ea   :  { %v9213_v52 = vld [vmem:[#allocation2 + $0x110] sm:$0xff]  ;;  %v11513_v40 = vpop.f32.mrb[224].mxu1 }
 0x7eb   :  { %9214 = vst [vmem:[%s16612_s13 + $0x110] sm:$0xff] %v9213_v52  ;;  %v9209_v26 = vld [vmem:[#allocation2 + $0x100] sm:$0xff]  ;;  %4528 = vst.msk [vmem:[#allocation2 + $0x130] sm:$0xff] %vm136_vm2, %v11513_v40  ;;  %v4410_v31 = vpop.f32.mrb[225].mxu1 }
 0x7ec   :  { %9210 = vst [vmem:[%s16612_s13 + $0x100] sm:$0xff] %v9209_v26  ;;  %v9215_v36 = vld [vmem:[#allocation2 + $0x118] sm:$0xff]  ;;  %4526 = vst.msk [vmem:[#allocation2 + $0x120] sm:$0xff] %vm136_vm2, %v4410_v31  ;;  %v11514_v44 = vpop.f32.mrb[226].mxu1  ;;  %v10221_v26 = vld [vmem:[%s16602_s3 + $0x350] sm:$0xff] }
 0x7ed   :  { %9216 = vst [vmem:[%s16612_s13 + $0x118] sm:$0xff] %v9215_v36  ;;  %v9211_v46 = vld [vmem:[#allocation2 + $0x108] sm:$0xff]  ;;  %4529 = vst.msk [vmem:[#allocation2 + $0x138] sm:$0xff] %vm136_vm2, %v11514_v44  ;;  %v4413_v37 = vpop.f32.mrb[227].mxu1  ;;  %v10222_v31 = vld [vmem:[%s16602_s3 + $0x358] sm:$0xff] }
 0x7ee   :  { %9212 = vst [vmem:[%s16612_s13 + $0x108] sm:$0xff] %v9211_v46  ;;  %4527 = vst.msk [vmem:[#allocation2 + $0x128] sm:$0xff] %vm136_vm2, %v4413_v37  ;;  %v10223_v36 = vld [vmem:[%s16602_s3 + $0x360] sm:$0xff]  ;;  %v10224_v44 = vld [vmem:[%s16602_s3 + $0x368] sm:$0xff]  ;;  %v7619_v46 = vpack.c.bf16 %v10222_v31, %v10221_v26 }
 0x7ef   :  { %v7620_v37 = vpack.c.bf16 %v10224_v44, %v10223_v36  ;;  %v10237_v26 = vld [vmem:[%s16602_s3 + $0x3d0] sm:$0xff]  ;;  %v10238_v31 = vld [vmem:[%s16602_s3 + $0x3d8] sm:$0xff]  ;;  %v10240_v36 = vld [vmem:[%s16602_s3 + $0x3e8] sm:$0xff] }
 0x7f0   :  { %11956 = vmatmul.mubr.msk.bf16.gmra.mrb[108].mxu0 %vm1032_vm5, %v7619_v46 }
 0x7f1   :  { %11959 = vmatprep.mubr.msk.bf16.mxu0 %vm1032_vm5, %v7620_v37  ;;  %v7627_v37 = vpack.c.bf16 %v10238_v31, %v10237_v26 }
 0x7f2   :  { %v9221_v13 = vld [vmem:[#allocation2 + $0x130] sm:$0xff]  ;;  %v11517_v7 = vpop.f32.mrb[228].mxu1 }
 0x7f3   :  { %9222 = vst [vmem:[%s16612_s13 + $0x130] sm:$0xff] %v9221_v13  ;;  %v9217_v12 = vld [vmem:[#allocation2 + $0x120] sm:$0xff]  ;;  %4532 = vst.msk [vmem:[#allocation2 + $0x150] sm:$0xff] %vm136_vm2, %v11517_v7  ;;  %v4426_v25 = vpop.f32.mrb[229].mxu1 }
 0x7f4   :  { %9218 = vst [vmem:[%s16612_s13 + $0x120] sm:$0xff] %v9217_v12  ;;  %v9223_v9 = vld [vmem:[#allocation2 + $0x138] sm:$0xff]  ;;  %4530 = vst.msk [vmem:[#allocation2 + $0x140] sm:$0xff] %vm136_vm2, %v4426_v25  ;;  %v11518_v18 = vpop.f32.mrb[230].mxu1  ;;  %v10225_v12 = vld [vmem:[%s16602_s3 + $0x370] sm:$0xff] }
 0x7f5   :  { %9224 = vst [vmem:[%s16612_s13 + $0x138] sm:$0xff] %v9223_v9  ;;  %v9219_v34 = vld [vmem:[#allocation2 + $0x128] sm:$0xff]  ;;  %4533 = vst.msk [vmem:[#allocation2 + $0x158] sm:$0xff] %vm136_vm2, %v11518_v18  ;;  %v4429_v11 = vpop.f32.mrb[231].mxu1  ;;  %v10226_v25 = vld [vmem:[%s16602_s3 + $0x378] sm:$0xff] }
 0x7f6   :  { %9220 = vst [vmem:[%s16612_s13 + $0x128] sm:$0xff] %v9219_v34  ;;  %4531 = vst.msk [vmem:[#allocation2 + $0x148] sm:$0xff] %vm136_vm2, %v4429_v11  ;;  %v10227_v9 = vld [vmem:[%s16602_s3 + $0x380] sm:$0xff]  ;;  %v10228_v18 = vld [vmem:[%s16602_s3 + $0x388] sm:$0xff]  ;;  %v7621_v34 = vpack.c.bf16 %v10226_v25, %v10225_v12 }
 0x7f7   :  { %v7622_v11 = vpack.c.bf16 %v10228_v18, %v10227_v9  ;;  %v10241_v25 = vld [vmem:[%s16602_s3 + $0x3f0] sm:$0xff] }
 0x7f8   :  { %11960 = vmatmul.mubr.msk.bf16.gmra.mrb[112].mxu0 %vm1032_vm5, %v7621_v34 }
 0x7f9   :  { %11963 = vmatprep.mubr.msk.bf16.mxu0 %vm1032_vm5, %v7622_v11 }
 0x7fa   :  { %v9229_v33 = vld [vmem:[#allocation2 + $0x150] sm:$0xff]  ;;  %v11521_v6 = vpop.f32.mrb[232].mxu1 }
 0x7fb   :  { %9230 = vst [vmem:[%s16612_s13 + $0x150] sm:$0xff] %v9229_v33  ;;  %v9225_v15 = vld [vmem:[#allocation2 + $0x140] sm:$0xff]  ;;  %4536 = vst.msk [vmem:[#allocation2 + $0x170] sm:$0xff] %vm136_vm2, %v11521_v6  ;;  %v4442_v2 = vpop.f32.mrb[233].mxu1 }
 0x7fc   :  { %9226 = vst [vmem:[%s16612_s13 + $0x140] sm:$0xff] %v9225_v15  ;;  %v9231_v19 = vld [vmem:[#allocation2 + $0x158] sm:$0xff]  ;;  %4534 = vst.msk [vmem:[#allocation2 + $0x160] sm:$0xff] %vm136_vm2, %v4442_v2  ;;  %v11522_v51 = vpop.f32.mrb[234].mxu1  ;;  %v10229_v15 = vld [vmem:[%s16602_s3 + $0x390] sm:$0xff] }
 0x7fd   :  { %9232 = vst [vmem:[%s16612_s13 + $0x158] sm:$0xff] %v9231_v19  ;;  %v9227_v23 = vld [vmem:[#allocation2 + $0x148] sm:$0xff]  ;;  %4537 = vst.msk [vmem:[#allocation2 + $0x178] sm:$0xff] %vm136_vm2, %v11522_v51  ;;  %v4445_v47 = vpop.f32.mrb[235].mxu1  ;;  %v10230_v2 = vld [vmem:[%s16602_s3 + $0x398] sm:$0xff] }
 0x7fe   :  { %9228 = vst [vmem:[%s16612_s13 + $0x148] sm:$0xff] %v9227_v23  ;;  %4535 = vst.msk [vmem:[#allocation2 + $0x168] sm:$0xff] %vm136_vm2, %v4445_v47  ;;  %v10231_v19 = vld [vmem:[%s16602_s3 + $0x3a0] sm:$0xff]  ;;  %v10232_v51 = vld [vmem:[%s16602_s3 + $0x3a8] sm:$0xff]  ;;  %v7623_v23 = vpack.c.bf16 %v10230_v2, %v10229_v15 }
 0x7ff   :  { %v7624_v47 = vpack.c.bf16 %v10232_v51, %v10231_v19 }
 0x800   :  { %11964 = vmatmul.mubr.msk.bf16.gmra.mrb[116].mxu0 %vm1032_vm5, %v7623_v23 }
 0x801   :  { %11967 = vmatprep.mubr.msk.bf16.mxu0 %vm1032_vm5, %v7624_v47 }
 0x802   :  { %v9237_v10 = vld [vmem:[#allocation2 + $0x170] sm:$0xff]  ;;  %v11525_v35 = vpop.f32.mrb[236].mxu1 }
 0x803   :  { %9238 = vst [vmem:[%s16612_s13 + $0x170] sm:$0xff] %v9237_v10  ;;  %v9233_v42 = vld [vmem:[#allocation2 + $0x160] sm:$0xff]  ;;  %4540 = vst.msk [vmem:[#allocation2 + $0x190] sm:$0xff] %vm136_vm2, %v11525_v35  ;;  %v4458_v54 = vpop.f32.mrb[237].mxu1 }
 0x804   :  { %9234 = vst [vmem:[%s16612_s13 + $0x160] sm:$0xff] %v9233_v42  ;;  %v9239_v43 = vld [vmem:[#allocation2 + $0x178] sm:$0xff]  ;;  %4538 = vst.msk [vmem:[#allocation2 + $0x180] sm:$0xff] %vm136_vm2, %v4458_v54  ;;  %v11526_v39 = vpop.f32.mrb[238].mxu1  ;;  %v10233_v42 = vld [vmem:[%s16602_s3 + $0x3b0] sm:$0xff] }
 0x805   :  { %9240 = vst [vmem:[%s16612_s13 + $0x178] sm:$0xff] %v9239_v43  ;;  %v9235_v62 = vld [vmem:[#allocation2 + $0x168] sm:$0xff]  ;;  %4541 = vst.msk [vmem:[#allocation2 + $0x198] sm:$0xff] %vm136_vm2, %v11526_v39  ;;  %v4461_v21 = vpop.f32.mrb[239].mxu1  ;;  %v10234_v54 = vld [vmem:[%s16602_s3 + $0x3b8] sm:$0xff] }
 0x806   :  { %9236 = vst [vmem:[%s16612_s13 + $0x168] sm:$0xff] %v9235_v62  ;;  %4539 = vst.msk [vmem:[#allocation2 + $0x188] sm:$0xff] %vm136_vm2, %v4461_v21  ;;  %v10235_v43 = vld [vmem:[%s16602_s3 + $0x3c0] sm:$0xff]  ;;  %v10236_v39 = vld [vmem:[%s16602_s3 + $0x3c8] sm:$0xff]  ;;  %v7625_v17 = vpack.c.bf16 %v10234_v54, %v10233_v42 }
 0x807   :  { %v7626_v24 = vpack.c.bf16 %v10236_v39, %v10235_v43 }
 0x808   :  { %11968 = vmatmul.mubr.msk.bf16.gmra.mrb[120].mxu0 %vm1032_vm5, %v7625_v17 }
 0x809   :  { %11971 = vmatprep.mubr.msk.bf16.mxu0 %vm1032_vm5, %v7626_v24 }
 0x80a   :  { %v9245_v14 = vld [vmem:[#allocation2 + $0x190] sm:$0xff]  ;;  %v11529_v58 = vpop.f32.mrb[240].mxu1 }
 0x80b   :  { %9246 = vst [vmem:[%s16612_s13 + $0x190] sm:$0xff] %v9245_v14  ;;  %v9241_v52 = vld [vmem:[#allocation2 + $0x180] sm:$0xff]  ;;  %4544 = vst.msk [vmem:[#allocation2 + $0x1b0] sm:$0xff] %vm136_vm2, %v11529_v58  ;;  %v4474_v40 = vpop.f32.mrb[241].mxu1 }
 0x80c   :  { %9242 = vst [vmem:[%s16612_s13 + $0x180] sm:$0xff] %v9241_v52  ;;  %v9247_v8 = vld [vmem:[#allocation2 + $0x198] sm:$0xff]  ;;  %4542 = vst.msk [vmem:[#allocation2 + $0x1a0] sm:$0xff] %vm136_vm2, %v4474_v40  ;;  %v11530_v60 = vpop.f32.mrb[242].mxu1 }
 0x80d   :  { %9248 = vst [vmem:[%s16612_s13 + $0x198] sm:$0xff] %v9247_v8  ;;  %v9243_v1 = vld [vmem:[#allocation2 + $0x188] sm:$0xff]  ;;  %4545 = vst.msk [vmem:[#allocation2 + $0x1b8] sm:$0xff] %vm136_vm2, %v11530_v60  ;;  %v4477_v59 = vpop.f32.mrb[243].mxu1  ;;  %v10239_v60 = vld [vmem:[%s16602_s3 + $0x3e0] sm:$0xff] }
 0x80e   :  { %9244 = vst [vmem:[%s16612_s13 + $0x188] sm:$0xff] %v9243_v1  ;;  %4543 = vst.msk [vmem:[#allocation2 + $0x1a8] sm:$0xff] %vm136_vm2, %v4477_v59  ;;  %v12728_v59 = vld [vmem:[%s16610_s11 + $0x8] sm:$0xff]  }
 0x810   :  { %11972 = vmatmul.mubr.msk.bf16.gmra.mrb[124].mxu0 %vm1032_vm5, %v7627_v37  ;;  %v15904_v37 = vld [vmem:[%s16607_s8] ss:$0 sm:$0xff] }
 0x812   :  { %v9253_v38 = vld [vmem:[#allocation2 + $0x1b0] sm:$0xff]  ;;  %v11533_v0 = vpop.f32.mrb[244].mxu1 }
 0x813   :  { %9254 = vst [vmem:[%s16612_s13 + $0x1b0] sm:$0xff] %v9253_v38  ;;  %v9249_v13 = vld [vmem:[#allocation2 + $0x1a0] sm:$0xff]  ;;  %4548 = vst.msk [vmem:[#allocation2 + $0x1d0] sm:$0xff] %vm136_vm2, %v11533_v0  ;;  %v4490_v7 = vpop.f32.mrb[245].mxu1  ;;  %v7628_v38 = vpack.c.bf16 %v10240_v36, %v10239_v60 }
 0x814   :  { %9250 = vst [vmem:[%s16612_s13 + $0x1a0] sm:$0xff] %v9249_v13  ;;  %v9255_v53 = vld [vmem:[#allocation2 + $0x1b8] sm:$0xff]  ;;  %4546 = vst.msk [vmem:[#allocation2 + $0x1c0] sm:$0xff] %vm136_vm2, %v4490_v7  ;;  %v11534_v32 = vpop.f32.mrb[246].mxu1  ;;  %v12729_v7 = vld [vmem:[%s16610_s11 + $0x10] sm:$0xff]  }
 0x815   :  { %9256 = vst [vmem:[%s16612_s13 + $0x1b8] sm:$0xff] %v9255_v53  ;;  %v9251_v61 = vld [vmem:[#allocation2 + $0x1a8] sm:$0xff]  ;;  %4549 = vst.msk [vmem:[#allocation2 + $0x1d8] sm:$0xff] %vm136_vm2, %v11534_v32  ;;  %v4493_v41 = vpop.f32.mrb[247].mxu1  ;;  %11975 = vmatprep.mubr.msk.bf16.mxu0 %vm1032_vm5, %v7628_v38  ;;  %v10242_v53 = vld [vmem:[%s16602_s3 + $0x3f8] sm:$0xff] }
 0x816   :  { %9252 = vst [vmem:[%s16612_s13 + $0x1a8] sm:$0xff] %v9251_v61  ;;  %4547 = vst.msk [vmem:[#allocation2 + $0x1c8] sm:$0xff] %vm136_vm2, %v4493_v41  ;;  %v12730_v61 = vld [vmem:[%s16610_s11 + $0x18] sm:$0xff]   ;;  %v7629_v34 = vpack.c.bf16 %v10242_v53, %v10241_v25 }
 0x818   :  { %11976 = vmatmul.mubr.msk.bf16.gmra.mrb[128].mxu0 %vm1032_vm5, %v7629_v34 }
 0x81a   :  { %v9261_v49 = vld [vmem:[#allocation2 + $0x1d0] sm:$0xff]  ;;  %v11537_v55 = vpop.f32.mrb[248].mxu1 }
 0x81b   :  { %9262 = vst [vmem:[%s16612_s13 + $0x1d0] sm:$0xff] %v9261_v49  ;;  %v9257_v33 = vld [vmem:[#allocation2 + $0x1c0] sm:$0xff]  ;;  %4552 = vst.msk [vmem:[#allocation2 + $0x1f0] sm:$0xff] %vm136_vm2, %v11537_v55  ;;  %v4506_v6 = vpop.f32.mrb[249].mxu1 }
 0x81c   :  { %9258 = vst [vmem:[%s16612_s13 + $0x1c0] sm:$0xff] %v9257_v33  ;;  %v9263_v16 = vld [vmem:[#allocation2 + $0x1d8] sm:$0xff]  ;;  %4550 = vst.msk [vmem:[#allocation2 + $0x1e0] sm:$0xff] %vm136_vm2, %v4506_v6  ;;  %v11538_v22 = vpop.f32.mrb[250].mxu1 }
 0x81d   :  { %9264 = vst [vmem:[%s16612_s13 + $0x1d8] sm:$0xff] %v9263_v16  ;;  %v9259_v29 = vld [vmem:[#allocation2 + $0x1c8] sm:$0xff]  ;;  %4553 = vst.msk [vmem:[#allocation2 + $0x1f8] sm:$0xff] %vm136_vm2, %v11538_v22  ;;  %v4509_v20 = vpop.f32.mrb[251].mxu1  ;;  %v15878_v16 = vld [vmem:[%s16611_s12] sm:$0xff]  }
 0x81e   :  { %9260 = vst [vmem:[%s16612_s13 + $0x1c8] sm:$0xff] %v9259_v29  ;;  %4551 = vst.msk [vmem:[#allocation2 + $0x1e8] sm:$0xff] %vm136_vm2, %v4509_v20 }
 0x822   :  { %v9269_v27 = vld [vmem:[#allocation2 + $0x1f0] sm:$0xff]  ;;  %v11687_v30 = vpop.f32.mrb[252].mxu1 }
 0x823   :  { %9270 = vst [vmem:[%s16612_s13 + $0x1f0] sm:$0xff] %v9269_v27  ;;  %v9265_v10 = vld [vmem:[#allocation2 + $0x1e0] sm:$0xff]  ;;  %v5828_v35 = vpop.f32.mrb[253].mxu1 }
 0x824   :  { %9266 = vst [vmem:[%s16612_s13 + $0x1e0] sm:$0xff] %v9265_v10  ;;  %v9271_v50 = vld [vmem:[#allocation2 + $0x1f8] sm:$0xff]  ;;  %v11688_v28 = vpop.f32.mrb[254].mxu1 }
 0x825   :  { %9272 = vst [vmem:[%s16612_s13 + $0x1f8] sm:$0xff] %v9271_v50  ;;  %v9267_v56 = vld [vmem:[#allocation2 + $0x1e8] sm:$0xff]  ;;  %v5956_v5 = vpack.c.bf16 %v11688_v28, %v11687_v30  ;;  %v5831_v62 = vpop.f32.mrb[255].mxu1 }
 0x826   :  { %9268 = vst [vmem:[%s16612_s13 + $0x1e8] sm:$0xff] %v9267_v56  ;;  %v5955_v21 = vpack.c.bf16 %v5831_v62, %v5828_v35 }
 0x827   :  { %v5972_v58 = vmax.bf16 %v12750_v63, %v5956_v5 }
 0x828   :  { %v5971_v14 = vmax.bf16 %v12750_v63, %v5955_v21 }
 0x82a   :  { %v11691_v52 = vpop.f32.mrb[0].mxu1  ;;  %11727 = vmatprep.mubr.msk.bf16.mxu1 %vm1337_vm6, %v5971_v14 }
 0x82b   :  { %v5844_v40 = vpop.f32.mrb[1].mxu1  ;;  %11728 = vmatmul.mubr.msk.bf16.vlgmr.msra.gmra.mrb[28].mxu1 %vm1337_vm6, %v5972_v58 }
 0x82c   :  { %v11692_v8 = vpop.f32.mrb[2].mxu1  ;;  %11760 = vmatpush3.bf16.msra.mxu1 %v15290_v45 }
 0x82d   :  { %v5958_v44 = vpack.c.bf16 %v11692_v8, %v11691_v52  ;;  %v5847_v1 = vpop.f32.mrb[3].mxu1  ;;  %11761 = vmatprep.subr.bf16.mxu1 %v12728_v59 }
 0x82e   :  { %v5957_v46 = vpack.c.bf16 %v5847_v1, %v5844_v40 }
 0x82f   :  { %v5974_v13 = vmax.bf16 %v12750_v63, %v5958_v44 }
 0x830   :  { %v5973_v0 = vmax.bf16 %v12750_v63, %v5957_v46  ;;  %11762 = vmatpush3.bf16.msra.mxu1 %v12728_v59 }
 0x831   :  { %11763 = vmatprep.subr.bf16.mxu1 %v12729_v7 }
 0x832   :  { %v11695_v45 = vpop.f32.mrb[4].mxu1  ;;  %11731 = vmatprep.mubr.msk.bf16.mxu1 %vm1337_vm6, %v5973_v0 }
 0x833   :  { %v5860_v12 = vpop.f32.mrb[5].mxu1  ;;  %11732 = vmatmul.mubr.msk.bf16.gmra.mrb[32].mxu1 %vm1337_vm6, %v5974_v13 }
 0x834   :  { %v11696_v32 = vpop.f32.mrb[6].mxu1  ;;  %11764 = vmatpush3.bf16.msra.mxu1 %v12729_v7 }
 0x835   :  { %v5960_v9 = vpack.c.bf16 %v11696_v32, %v11695_v45  ;;  %v5863_v18 = vpop.f32.mrb[7].mxu1  ;;  %11765 = vmatprep.subr.bf16.mxu1 %v12730_v61 }
 0x836   :  { %v5959_v41 = vpack.c.bf16 %v5863_v18, %v5860_v12 }
 0x837   :  { %v5976_v49 = vmax.bf16 %v12750_v63, %v5960_v9 }
 0x838   :  { %v5975_v11 = vmax.bf16 %v12750_v63, %v5959_v41  ;;  %11766 = vmatpush3.bf16.msra.mxu1 %v12730_v61 }
 0x839   :  { %11767 = vmatprep.subr.bf16.mxu1 %v13898_v3 }
 0x83a   :  { %v11699_v55 = vpop.f32.mrb[8].mxu1  ;;  %11735 = vmatprep.mubr.msk.bf16.mxu1 %vm1337_vm6, %v5975_v11 }
 0x83b   :  { %v5876_v33 = vpop.f32.mrb[9].mxu1  ;;  %11736 = vmatmul.mubr.msk.bf16.gmra.mrb[36].mxu1 %vm1337_vm6, %v5976_v49 }
 0x83c   :  { %v11700_v6 = vpop.f32.mrb[10].mxu1  ;;  %11768 = vmatpush3.bf16.msra.mxu1 %v13898_v3 }
 0x83d   :  { %v5962_v15 = vpack.c.bf16 %v11700_v6, %v11699_v55  ;;  %v5879_v2 = vpop.f32.mrb[11].mxu1  ;;  %11801 = vmatprep.subr.bf16.mxu1 %v15878_v16 }
 0x83e   :  { %v5961_v22 = vpack.c.bf16 %v5879_v2, %v5876_v33 }
 0x83f   :  { %v5978_v51 = vmax.bf16 %v12750_v63, %v5962_v15 }
 0x840   :  { %v5977_v19 = vmax.bf16 %v12750_v63, %v5961_v22 }
 0x842   :  { %v11703_v29 = vpop.f32.mrb[12].mxu1  ;;  %11739 = vmatprep.mubr.msk.bf16.mxu1 %vm1337_vm6, %v5977_v19 }
 0x843   :  { %v5892_v20 = vpop.f32.mrb[13].mxu1  ;;  %11740 = vmatmul.mubr.msk.bf16.gmra.mrb[40].mxu1 %vm1337_vm6, %v5978_v51 }
 0x844   :  { %v11704_v23 = vpop.f32.mrb[14].mxu1 }
 0x845   :  { %v5964_v47 = vpack.c.bf16 %v11704_v23, %v11703_v29  ;;  %v5895_v27 = vpop.f32.mrb[15].mxu1 }
 0x846   :  { %v5963_v30 = vpack.c.bf16 %v5895_v27, %v5892_v20 }
 0x847   :  { %v5980_v35 = vmax.bf16 %v12750_v63, %v5964_v47 }
 0x848   :  { %v5979_v10 = vmax.bf16 %v12750_v63, %v5963_v30 }
 0x84a   :  { %v11707_v42 = vpop.f32.mrb[16].mxu1  ;;  %11743 = vmatprep.mubr.msk.bf16.mxu1 %vm1337_vm6, %v5979_v10 }
 0x84b   :  { %v5908_v54 = vpop.f32.mrb[17].mxu1  ;;  %11744 = vmatmul.mubr.msk.bf16.gmra.mrb[44].mxu1 %vm1337_vm6, %v5980_v35 }
 0x84c   :  { %v11708_v50 = vpop.f32.mrb[18].mxu1 }
 0x84d   :  { %v5966_v28 = vpack.c.bf16 %v11708_v50, %v11707_v42  ;;  %v5911_v43 = vpop.f32.mrb[19].mxu1 }
 0x84e   :  { %v5965_v39 = vpack.c.bf16 %v5911_v43, %v5908_v54 }
 0x84f   :  { %v5982_v5 = vmax.bf16 %v12750_v63, %v5966_v28 }
 0x850   :  { %v5981_v56 = vmax.bf16 %v12750_v63, %v5965_v39 }
 0x852   :  { %v11711_v62 = vpop.f32.mrb[20].mxu1  ;;  %11747 = vmatprep.mubr.msk.bf16.mxu1 %vm1337_vm6, %v5981_v56 }
 0x853   :  { %v5924_v21 = vpop.f32.mrb[21].mxu1  ;;  %11748 = vmatmul.mubr.msk.bf16.gmra.mrb[48].mxu1 %vm1337_vm6, %v5982_v5 }
 0x854   :  { %v11712_v17 = vpop.f32.mrb[22].mxu1 }
 0x855   :  { %v5968_v24 = vpack.c.bf16 %v11712_v17, %v11711_v62  ;;  %v5927_v14 = vpop.f32.mrb[23].mxu1 }
 0x856   :  { %v5967_v58 = vpack.c.bf16 %v5927_v14, %v5924_v21 }
 0x857   :  { %v5984_v40 = vmax.bf16 %v12750_v63, %v5968_v24 }
 0x858   :  { %v5983_v52 = vmax.bf16 %v12750_v63, %v5967_v58 }
 0x85a   :  { %v11715_v26 = vpop.f32.mrb[24].mxu1  ;;  %11751 = vmatprep.mubr.msk.bf16.mxu1 %vm1337_vm6, %v5983_v52 }
 0x85b   :  { %v5940_v31 = vpop.f32.mrb[25].mxu1  ;;  %11752 = vmatmul.mubr.msk.bf16.gmra.mrb[52].mxu1 %vm1337_vm6, %v5984_v40 }
 0x85c   :  { %v11716_v8 = vpop.f32.mrb[26].mxu1 }
 0x85d   :  { %v5970_v60 = vpack.c.bf16 %v11716_v8, %v11715_v26  ;;  %v5943_v36 = vpop.f32.mrb[27].mxu1 }
 0x85e   :  { %v5969_v44 = vpack.c.bf16 %v5943_v36, %v5940_v31 }
 0x85f   :  { %v5986_v59 = vmax.bf16 %v12750_v63, %v5970_v60 }
 0x860   :  { %v5985_v1 = vmax.bf16 %v12750_v63, %v5969_v44 }
 0x862   :  { %11755 = vmatprep.mubr.msk.bf16.mxu1 %vm1337_vm6, %v5985_v1 }
 0x863   :  { %11756 = vmatmul.mubr.msk.bf16.gmra.mrb[56].mxu1 %vm1337_vm6, %v5986_v59 }
 0x8af   :  { %v11949_v46 = vpop.f32.mrb[100].mxu0 }
 0x8b0   :  { %v15907_v38 = vadd.f32 %v15904_v37, %v11949_v46  ;;  %v7712_v0 = vpop.f32.mrb[101].mxu0 }
 0x8b1   :  { %v15910_v13 = vadd.f32 %v15904_v37, %v7712_v0  ;;  %v11950_v7 = vpop.f32.mrb[102].mxu0 }
 0x8b2   :  { %v15913_v45 = vadd.f32 %v15904_v37, %v11950_v7  ;;  %v7715_v12 = vpop.f32.mrb[103].mxu0 }
 0x8b3   :  { %v15916_v25 = vadd.f32 %v15904_v37, %v7715_v12 }
 0x8b4   :  { %v7872_v53 = vpack.c.bf16 %v15913_v45, %v15907_v38  ;;  %v12742_v45 = vld [vmem:[%s16609_s10 + $0x10] sm:$0xff]  }
 0x8b5   :  { %v7871_v32 = vpack.c.bf16 %v15916_v25, %v15910_v13  ;;  %v12741_v13 = vld [vmem:[%s16609_s10 + $0x8] sm:$0xff]  }
 0x8ba   :  { %v11953_v9 = vpop.f32.mrb[104].mxu0 }
 0x8bb   :  { %v15923_v18 = vadd.f32 %v15904_v37, %v11953_v9  ;;  %v7728_v61 = vpop.f32.mrb[105].mxu0 }
 0x8bc   :  { %v15926_v41 = vadd.f32 %v15904_v37, %v7728_v61  ;;  %v11954_v34 = vpop.f32.mrb[106].mxu0 }
 0x8bd   :  { %v15929_v11 = vadd.f32 %v15904_v37, %v11954_v34  ;;  %v7731_v49 = vpop.f32.mrb[107].mxu0 }
 0x8be   :  { %v15932_v55 = vadd.f32 %v15904_v37, %v7731_v49 }
 0x8bf   :  { %v7874_v33 = vpack.c.bf16 %v15929_v11, %v15923_v18 }
 0x8c0   :  { %v7873_v6 = vpack.c.bf16 %v15932_v55, %v15926_v41  ;;  %v16188_v41 = vld [vmem:[%s16610_s11] sm:$0xff]  }
 0x8c1   :  { %v7890_v38 = vmax.bf16 %v12750_v63, %v7874_v33 }
 0x8c3   :  { %v11957_v15 = vpop.f32.mrb[108].mxu0 }
 0x8c4   :  { %v15939_v2 = vadd.f32 %v15904_v37, %v11957_v15  ;;  %v7744_v22 = vpop.f32.mrb[109].mxu0 }
 0x8c5   :  { %v15942_v19 = vadd.f32 %v15904_v37, %v7744_v22  ;;  %v11958_v51 = vpop.f32.mrb[110].mxu0 }
 0x8c6   :  { %v15945_v29 = vadd.f32 %v15904_v37, %v11958_v51  ;;  %v7747_v20 = vpop.f32.mrb[111].mxu0 }
 0x8c7   :  { %v15948_v23 = vadd.f32 %v15904_v37, %v7747_v20 }
 0x8c8   :  { %v7876_v47 = vpack.c.bf16 %v15945_v29, %v15939_v2 }
 0x8c9   :  { %v7875_v27 = vpack.c.bf16 %v15948_v23, %v15942_v19 }
 0x8cb   :  { %v11961_v30 = vpop.f32.mrb[112].mxu0  ;;  %v7891_v25 = vmax.bf16 %v12750_v63, %v7875_v27 }
 0x8cc   :  { %v15955_v10 = vadd.f32 %v15904_v37, %v11961_v30  ;;  %v7760_v35 = vpop.f32.mrb[113].mxu0 }
 0x8cd   :  { %v15958_v42 = vadd.f32 %v15904_v37, %v7760_v35  ;;  %v11962_v54 = vpop.f32.mrb[114].mxu0 }
 0x8ce   :  { %v15961_v50 = vadd.f32 %v15904_v37, %v11962_v54  ;;  %v7763_v28 = vpop.f32.mrb[115].mxu0 }
 0x8cf   :  { %v15964_v43 = vadd.f32 %v15904_v37, %v7763_v28 }
 0x8d0   :  { %v7878_v39 = vpack.c.bf16 %v15961_v50, %v15955_v10 }
 0x8d1   :  { %v7877_v56 = vpack.c.bf16 %v15964_v43, %v15958_v42 }
 0x8d2   :  { %v7894_v11 = vmax.bf16 %v12750_v63, %v7878_v39 }
 0x8d3   :  { %v11965_v5 = vpop.f32.mrb[116].mxu0  ;;  %v7893_v18 = vmax.bf16 %v12750_v63, %v7877_v56 }
 0x8d4   :  { %v15971_v62 = vadd.f32 %v15904_v37, %v11965_v5  ;;  %v7776_v21 = vpop.f32.mrb[117].mxu0 }
 0x8d5   :  { %v15974_v17 = vadd.f32 %v15904_v37, %v7776_v21  ;;  %v11966_v24 = vpop.f32.mrb[118].mxu0 }
 0x8d6   :  { %v15977_v14 = vadd.f32 %v15904_v37, %v11966_v24  ;;  %v7779_v58 = vpop.f32.mrb[119].mxu0 }
 0x8d7   :  { %v15980_v52 = vadd.f32 %v15904_v37, %v7779_v58 }
 0x8d9   :  { %v16630_v55 = vpack.c.bf16 %v15980_v52, %v15974_v17 }
 0x8db   :  { %v11969_v31 = vpop.f32.mrb[120].mxu0  ;;  %v7895_v33 = vmax.bf16 %v12750_v63, %v16630_v55 }
 0x8dc   :  { %v15987_v60 = vadd.f32 %v15904_v37, %v11969_v31  ;;  %v7792_v36 = vpop.f32.mrb[121].mxu0 }
 0x8dd   :  { %v15990_v1 = vadd.f32 %v15904_v37, %v7792_v36  ;;  %v11970_v59 = vpop.f32.mrb[122].mxu0 }
 0x8de   :  { %v15993_v0 = vadd.f32 %v15904_v37, %v11970_v59  ;;  %v7795_v7 = vpop.f32.mrb[123].mxu0  ;;  %v16022_v59 = vld [vmem:[%s16611_s12 + $0x8] sm:$0xff]  }
 0x8df   :  { %v15996_v61 = vadd.f32 %v15904_v37, %v7795_v7 }
 0x8e0   :  { %v16633_v29 = vpack.c.bf16 %v15993_v0, %v15987_v60 }
 0x8e1   :  { %v16632_v2 = vpack.c.bf16 %v15996_v61, %v15990_v1 }
 0x8e2   :  { %v7898_v23 = vmax.bf16 %v12750_v63, %v16633_v29 }
 0x8e3   :  { %v11973_v20 = vpop.f32.mrb[124].mxu0  ;;  %v7897_v19 = vmax.bf16 %v12750_v63, %v16632_v2 }
 0x8e4   :  { %v16006_v35 = vadd.f32 %v15904_v37, %v11973_v20  ;;  %v7808_v54 = vpop.f32.mrb[125].mxu0 }
 0x8e5   :  { %v16010_v5 = vadd.f32 %v15904_v37, %v7808_v54  ;;  %v11974_v21 = vpop.f32.mrb[126].mxu0 }
 0x8e6   :  { %v16013_v58 = vadd.f32 %v15904_v37, %v11974_v21  ;;  %v7811_v31 = vpop.f32.mrb[127].mxu0 }
 0x8e8   :  { %v16635_v10 = vpack.c.bf16 %v16013_v58, %v16006_v35 }
 0x8ea   :  { %v7900_v42 = vmax.bf16 %v12750_v63, %v16635_v10 }
 0x8fe   :  { %v11729_v8 = vpop.f32.mrb[28].mxu1 }
 0x8ff   :  { %v6069_v44 = vpop.f32.mrb[29].mxu1 }
 0x900   :  { %v11730_v46 = vpop.f32.mrb[30].mxu1 }
 0x901   :  { %v6197_v12 = vpack.c.bf16 %v11730_v46, %v11729_v8  ;;  %v6072_v9 = vpop.f32.mrb[31].mxu1 }
 0x902   :  { %v6196_v34 = vpack.c.bf16 %v6072_v9, %v6069_v44  ;;  %v16017_v44 = vadd.f32 %v15904_v37, %v7811_v31 }
 0x903   :  { %v6213_v51 = vmax.bf16 %v12750_v63, %v6197_v12 }
 0x904   :  { %v6212_v22 = vmax.bf16 %v12750_v63, %v6196_v34  ;;  %v11977_v34 = vpop.f32.mrb[128].mxu0 }
 0x905   :  { %v16040_v20 = vadd.f32 %v15904_v37, %v11977_v34 }
 0x906   :  { %v11733_v30 = vpop.f32.mrb[32].mxu1  ;;  %11769 = vmatprep.mubr.msk.bf16.mxu1 %vm1337_vm6, %v6212_v22  ;;  %v16035_v22 = vld [vmem:[%s16611_s12 + $0x10] sm:$0xff]  }
 0x907   :  { %v6085_v28 = vpop.f32.mrb[33].mxu1  ;;  %11770 = vmatmul.mubr.msk.bf16.vlgmr.msra.gmra.mrb[60].mxu1 %vm1337_vm6, %v6213_v51 }
 0x908   :  { %v11734_v24 = vpop.f32.mrb[34].mxu1  ;;  %11802 = vmatpush3.bf16.msra.mxu1 %v15878_v16 }
 0x909   :  { %v6199_v8 = vpack.c.bf16 %v11734_v24, %v11733_v30  ;;  %v6088_v36 = vpop.f32.mrb[35].mxu1  ;;  %11803 = vmatprep.subr.bf16.mxu1 %v16022_v59  ;;  %v7824_v30 = vpop.f32.mrb[129].mxu0 }
 0x90a   :  { %v6198_v46 = vpack.c.bf16 %v6088_v36, %v6085_v28  ;;  %v16044_v28 = vadd.f32 %v15904_v37, %v7824_v30  ;;  %v11978_v21 = vpop.f32.mrb[130].mxu0 }
 0x90b   :  { %v6215_v9 = vmax.bf16 %v12750_v63, %v6199_v8  ;;  %v16047_v31 = vadd.f32 %v15904_v37, %v11978_v21  ;;  %v7827_v8 = vpop.f32.mrb[131].mxu0 }
 0x90c   :  { %v6214_v16 = vmax.bf16 %v12750_v63, %v6198_v46  ;;  %11804 = vmatpush3.bf16.msra.mxu1 %v16022_v59 }
 0x90d   :  { %11805 = vmatprep.subr.bf16.mxu1 %v16035_v22  ;;  %v16637_v39 = vpack.c.bf16 %v16047_v31, %v16040_v20 }
 0x90e   :  { %v11737_v51 = vpop.f32.mrb[36].mxu1  ;;  %11773 = vmatprep.mubr.msk.bf16.mxu1 %vm1337_vm6, %v6214_v16  ;;  %v16051_v16 = vadd.f32 %v15904_v37, %v7827_v8 }
 0x90f   :  { %v6101_v54 = vpop.f32.mrb[37].mxu1  ;;  %11774 = vmatmul.mubr.msk.bf16.gmra.mrb[64].mxu1 %vm1337_vm6, %v6215_v9  ;;  %v16056_v9 = vld [vmem:[%s16611_s12 + $0x18] sm:$0xff]   ;;  %v7902_v56 = vmax.bf16 %v12750_v63, %v16637_v39 }
 0x910   :  { %v11738_v24 = vpop.f32.mrb[38].mxu1  ;;  %11806 = vmatpush3.bf16.msra.mxu1 %v16035_v22  ;;  %v16636_v50 = vpack.c.bf16 %v16051_v16, %v16044_v28 }
 0x911   :  { %v6201_v36 = vpack.c.bf16 %v11738_v24, %v11737_v51  ;;  %v6104_v46 = vpop.f32.mrb[39].mxu1  ;;  %11807 = vmatprep.subr.bf16.mxu1 %v16056_v9 }
 0x912   :  { %v6200_v34 = vpack.c.bf16 %v6104_v46, %v6101_v54  ;;  %v7901_v43 = vmax.bf16 %v12750_v63, %v16636_v50 }
 0x913   :  { %v6217_v37 = vmax.bf16 %v12750_v63, %v6201_v36 }
 0x914   :  { %v6216_v51 = vmax.bf16 %v12750_v63, %v6200_v34  ;;  %11808 = vmatpush3.bf16.msra.mxu1 %v16056_v9  ;;  %v12736_v34 = vld [vmem:[%s16608_s9] sm:$0xff]  }
 0x915   :  { %11809 = vmatprep.subr.bf16.mxu1 %v14072_v57 }
 0x916   :  { %v11741_v24 = vpop.f32.mrb[40].mxu1  ;;  %11777 = vmatprep.mubr.msk.bf16.mxu1 %vm1337_vm6, %v6216_v51 }
 0x917   :  { %v6117_v8 = vpop.f32.mrb[41].mxu1  ;;  %11778 = vmatmul.mubr.msk.bf16.gmra.mrb[68].mxu1 %vm1337_vm6, %v6217_v37 }
 0x918   :  { %v11742_v54 = vpop.f32.mrb[42].mxu1  ;;  %11810 = vmatpush3.bf16.msra.mxu1 %v14072_v57 }
 0x919   :  { %v6203_v46 = vpack.c.bf16 %v11742_v54, %v11741_v24  ;;  %v6120_v30 = vpop.f32.mrb[43].mxu1  ;;  %11979 = vmatprep.subr.bf16.mxu1 %v12736_v34 }
 0x91a   :  { %v6202_v21 = vpack.c.bf16 %v6120_v30, %v6117_v8 }
 0x91b   :  { %v6219_v7 = vmax.bf16 %v12750_v63, %v6203_v46 }
 0x91c   :  { %v6218_v36 = vmax.bf16 %v12750_v63, %v6202_v21 }
 0x91e   :  { %v11745_v12 = vpop.f32.mrb[44].mxu1  ;;  %11781 = vmatprep.mubr.msk.bf16.mxu1 %vm1337_vm6, %v6218_v36 }
 0x91f   :  { %v6133_v51 = vpop.f32.mrb[45].mxu1  ;;  %11782 = vmatmul.mubr.msk.bf16.gmra.mrb[72].mxu1 %vm1337_vm6, %v6219_v7 }
 0x920   :  { %v11746_v37 = vpop.f32.mrb[46].mxu1 }
 0x921   :  { %v6205_v49 = vpack.c.bf16 %v11746_v37, %v11745_v12  ;;  %v6136_v24 = vpop.f32.mrb[47].mxu1 }
 0x922   :  { %v6204_v54 = vpack.c.bf16 %v6136_v24, %v6133_v51 }
 0x923   :  { %v6221_v40 = vmax.bf16 %v12750_v63, %v6205_v49 }
 0x924   :  { %v6220_v15 = vmax.bf16 %v12750_v63, %v6204_v54 }
 0x926   :  { %v11749_v26 = vpop.f32.mrb[48].mxu1  ;;  %11785 = vmatprep.mubr.msk.bf16.mxu1 %vm1337_vm6, %v6220_v15 }
 0x927   :  { %v6149_v30 = vpop.f32.mrb[49].mxu1  ;;  %11786 = vmatmul.mubr.msk.bf16.gmra.mrb[76].mxu1 %vm1337_vm6, %v6221_v40 }
 0x928   :  { %v11750_v21 = vpop.f32.mrb[50].mxu1 }
 0x929   :  { %v6207_v8 = vpack.c.bf16 %v11750_v21, %v11749_v26  ;;  %v6152_v46 = vpop.f32.mrb[51].mxu1 }
 0x92a   :  { %v6206_v36 = vpack.c.bf16 %v6152_v46, %v6149_v30 }
 0x92b   :  { %v6223_v12 = vmax.bf16 %v12750_v63, %v6207_v8 }
 0x92c   :  { %v6222_v7 = vmax.bf16 %v12750_v63, %v6206_v36 }
 0x92e   :  { %v11753_v37 = vpop.f32.mrb[52].mxu1  ;;  %11789 = vmatprep.mubr.msk.bf16.mxu1 %vm1337_vm6, %v6222_v7 }
 0x92f   :  { %v6165_v51 = vpop.f32.mrb[53].mxu1  ;;  %11790 = vmatmul.mubr.msk.bf16.gmra.mrb[80].mxu1 %vm1337_vm6, %v6223_v12 }
 0x930   :  { %v11754_v49 = vpop.f32.mrb[54].mxu1 }
 0x931   :  { %v6209_v24 = vpack.c.bf16 %v11754_v49, %v11753_v37  ;;  %v6168_v15 = vpop.f32.mrb[55].mxu1 }
 0x932   :  { %v6208_v54 = vpack.c.bf16 %v6168_v15, %v6165_v51 }
 0x933   :  { %v6225_v26 = vmax.bf16 %v12750_v63, %v6209_v24 }
 0x934   :  { %v6224_v40 = vmax.bf16 %v12750_v63, %v6208_v54 }
 0x936   :  { %v11757_v21 = vpop.f32.mrb[56].mxu1  ;;  %11793 = vmatprep.mubr.msk.bf16.mxu1 %vm1337_vm6, %v6224_v40 }
 0x937   :  { %v6181_v30 = vpop.f32.mrb[57].mxu1  ;;  %11794 = vmatmul.mubr.msk.bf16.gmra.mrb[84].mxu1 %vm1337_vm6, %v6225_v26 }
 0x938   :  { %v11758_v8 = vpop.f32.mrb[58].mxu1 }
 0x939   :  { %v6211_v46 = vpack.c.bf16 %v11758_v8, %v11757_v21  ;;  %v6184_v36 = vpop.f32.mrb[59].mxu1 }
 0x93a   :  { %v6210_v7 = vpack.c.bf16 %v6184_v36, %v6181_v30 }
 0x93b   :  { %v6227_v37 = vmax.bf16 %v12750_v63, %v6211_v46 }
 0x93c   :  { %v6226_v12 = vmax.bf16 %v12750_v63, %v6210_v7 }
 0x93e   :  { %11797 = vmatprep.mubr.msk.bf16.mxu1 %vm1337_vm6, %v6226_v12  ;;  %v12737_v12 = vld [vmem:[%s16608_s9 + $0x8] sm:$0xff]  }
 0x93f   :  { %11798 = vmatmul.mubr.msk.bf16.gmra.mrb[88].mxu1 %vm1337_vm6, %v6227_v37 }
 0x9da   :  { %v11771_v51 = vpop.f32.mrb[60].mxu1 }
 0x9db   :  { %v6310_v49 = vpop.f32.mrb[61].mxu1 }
 0x9dc   :  { %v11772_v24 = vpop.f32.mrb[62].mxu1 }
 0x9dd   :  { %v6438_v15 = vpack.c.bf16 %v11772_v24, %v11771_v51  ;;  %v6313_v54 = vpop.f32.mrb[63].mxu1  ;;  %v12738_v24 = vld [vmem:[%s16608_s9 + $0x10] sm:$0xff]  }
 0x9de   :  { %v6437_v40 = vpack.c.bf16 %v6313_v54, %v6310_v49 }
 0x9df   :  { %v6454_v21 = vmax.bf16 %v12750_v63, %v6438_v15 }
 0x9e0   :  { %v6453_v26 = vmax.bf16 %v12750_v63, %v6437_v40 }
 0x9e2   :  { %v11775_v8 = vpop.f32.mrb[64].mxu1  ;;  %11811 = vmatprep.mubr.msk.bf16.mxu1 %vm1337_vm6, %v6453_v26 }
 0x9e3   :  { %v6326_v30 = vpop.f32.mrb[65].mxu1  ;;  %11812 = vmatmul.mubr.msk.bf16.vlgmr.msra.gmra.mrb[92].mxu1 %vm1337_vm6, %v6454_v21  ;;  %v12739_v21 = vld [vmem:[%s16608_s9 + $0x18] sm:$0xff]  }
 0x9e4   :  { %v11776_v46 = vpop.f32.mrb[66].mxu1  ;;  %11980 = vmatpush3.bf16.msra.mxu1 %v12736_v34 }
 0x9e5   :  { %v6440_v36 = vpack.c.bf16 %v11776_v46, %v11775_v8  ;;  %v6329_v7 = vpop.f32.mrb[67].mxu1  ;;  %11981 = vmatprep.subr.bf16.mxu1 %v12737_v12 }
 0x9e6   :  { %v6439_v37 = vpack.c.bf16 %v6329_v7, %v6326_v30 }
 0x9e7   :  { %v6456_v49 = vmax.bf16 %v12750_v63, %v6440_v36 }
 0x9e8   :  { %v6455_v51 = vmax.bf16 %v12750_v63, %v6439_v37  ;;  %11982 = vmatpush3.bf16.msra.mxu1 %v12737_v12 }
 0x9e9   :  { %11983 = vmatprep.subr.bf16.mxu1 %v12738_v24 }
 0x9ea   :  { %v11779_v15 = vpop.f32.mrb[68].mxu1  ;;  %11815 = vmatprep.mubr.msk.bf16.mxu1 %vm1337_vm6, %v6455_v51 }
 0x9eb   :  { %v6342_v34 = vpop.f32.mrb[69].mxu1  ;;  %11816 = vmatmul.mubr.msk.bf16.gmra.mrb[96].mxu1 %vm1337_vm6, %v6456_v49  ;;  %v12740_v49 = vld [vmem:[%s16609_s10] sm:$0xff]  }
 0x9ec   :  { %v11780_v54 = vpop.f32.mrb[70].mxu1  ;;  %11984 = vmatpush3.bf16.msra.mxu1 %v12738_v24 }
 0x9ed   :  { %v6442_v40 = vpack.c.bf16 %v11780_v54, %v11779_v15  ;;  %v6345_v26 = vpop.f32.mrb[71].mxu1  ;;  %11985 = vmatprep.subr.bf16.mxu1 %v12739_v21 }
 0x9ee   :  { %v6441_v8 = vpack.c.bf16 %v6345_v26, %v6342_v34 }
 0x9ef   :  { %v6458_v46 = vmax.bf16 %v12750_v63, %v6442_v40 }
 0x9f0   :  { %v6457_v30 = vmax.bf16 %v12750_v63, %v6441_v8  ;;  %11986 = vmatpush3.bf16.msra.mxu1 %v12739_v21 }
 0x9f1   :  { %11987 = vmatprep.subr.bf16.mxu1 %v13148_v4 }
 0x9f2   :  { %v11783_v36 = vpop.f32.mrb[72].mxu1  ;;  %11819 = vmatprep.mubr.msk.bf16.mxu1 %vm1337_vm6, %v6457_v30 }
 0x9f3   :  { %v6358_v7 = vpop.f32.mrb[73].mxu1  ;;  %11820 = vmatmul.mubr.msk.bf16.gmra.mrb[100].mxu1 %vm1337_vm6, %v6458_v46 }
 0x9f4   :  { %v11784_v12 = vpop.f32.mrb[74].mxu1  ;;  %11988 = vmatpush3.bf16.msra.mxu1 %v13148_v4 }
 0x9f5   :  { %v6444_v37 = vpack.c.bf16 %v11784_v12, %v11783_v36  ;;  %v6361_v51 = vpop.f32.mrb[75].mxu1  ;;  %12021 = vmatprep.subr.bf16.mxu1 %v12740_v49 }
 0x9f6   :  { %v6443_v24 = vpack.c.bf16 %v6361_v51, %v6358_v7 }
 0x9f7   :  { %v6460_v34 = vmax.bf16 %v12750_v63, %v6444_v37 }
 0x9f8   :  { %v6459_v15 = vmax.bf16 %v12750_v63, %v6443_v24 }
 0x9fa   :  { %v11787_v54 = vpop.f32.mrb[76].mxu1  ;;  %11823 = vmatprep.mubr.msk.bf16.mxu1 %vm1337_vm6, %v6459_v15 }
 0x9fb   :  { %v6374_v40 = vpop.f32.mrb[77].mxu1  ;;  %11824 = vmatmul.mubr.msk.bf16.gmra.mrb[104].mxu1 %vm1337_vm6, %v6460_v34 }
 0x9fc   :  { %v11788_v26 = vpop.f32.mrb[78].mxu1 }
 0x9fd   :  { %v6446_v4 = vpack.c.bf16 %v11788_v26, %v11787_v54  ;;  %v6377_v21 = vpop.f32.mrb[79].mxu1 }
 0x9fe   :  { %v6445_v8 = vpack.c.bf16 %v6377_v21, %v6374_v40 }
 0x9ff   :  { %v6462_v46 = vmax.bf16 %v12750_v63, %v6446_v4 }
 0xa00   :  { %v6461_v30 = vmax.bf16 %v12750_v63, %v6445_v8 }
 0xa02   :  { %v11791_v36 = vpop.f32.mrb[80].mxu1  ;;  %11827 = vmatprep.mubr.msk.bf16.mxu1 %vm1337_vm6, %v6461_v30 }
 0xa03   :  { %v6390_v7 = vpop.f32.mrb[81].mxu1  ;;  %11828 = vmatmul.mubr.msk.bf16.gmra.mrb[108].mxu1 %vm1337_vm6, %v6462_v46 }
 0xa04   :  { %v11792_v12 = vpop.f32.mrb[82].mxu1 }
 0xa05   :  { %v6448_v37 = vpack.c.bf16 %v11792_v12, %v11791_v36  ;;  %v6393_v51 = vpop.f32.mrb[83].mxu1 }
 0xa06   :  { %v6447_v24 = vpack.c.bf16 %v6393_v51, %v6390_v7 }
 0xa07   :  { %v6464_v34 = vmax.bf16 %v12750_v63, %v6448_v37 }
 0xa08   :  { %v6463_v15 = vmax.bf16 %v12750_v63, %v6447_v24 }
 0xa0a   :  { %v11795_v54 = vpop.f32.mrb[84].mxu1  ;;  %11831 = vmatprep.mubr.msk.bf16.mxu1 %vm1337_vm6, %v6463_v15 }
 0xa0b   :  { %v6406_v40 = vpop.f32.mrb[85].mxu1  ;;  %11832 = vmatmul.mubr.msk.bf16.gmra.mrb[112].mxu1 %vm1337_vm6, %v6464_v34 }
 0xa0c   :  { %v11796_v26 = vpop.f32.mrb[86].mxu1 }
 0xa0d   :  { %v6450_v4 = vpack.c.bf16 %v11796_v26, %v11795_v54  ;;  %v6409_v21 = vpop.f32.mrb[87].mxu1  ;;  %v7887_v54 = vmax.bf16 %v12750_v63, %v7871_v32  ;;  %v7889_v26 = vmax.bf16 %v12750_v63, %v7873_v6  ;;  %v7892_v32 = vmax.bf16 %v12750_v63, %v7876_v47 }
 0xa0e   :  { %v6449_v8 = vpack.c.bf16 %v6409_v21, %v6406_v40  ;;  %v7888_v40 = vmax.bf16 %v12750_v63, %v7872_v53  ;;  %v12743_v53 = vld [vmem:[%s16609_s10 + $0x18] sm:$0xff]   ;;  %v16634_v47 = vpack.c.bf16 %v16017_v44, %v16010_v5 }
 0xa0f   :  { %v6466_v46 = vmax.bf16 %v12750_v63, %v6450_v4 }
 0xa10   :  { %v6465_v30 = vmax.bf16 %v12750_v63, %v6449_v8  ;;  %v7899_v27 = vmax.bf16 %v12750_v63, %v16634_v47 }
 0xa12   :  { %v11799_v36 = vpop.f32.mrb[88].mxu1  ;;  %11835 = vmatprep.mubr.msk.bf16.mxu1 %vm1337_vm6, %v6465_v30 }
 0xa13   :  { %v6422_v7 = vpop.f32.mrb[89].mxu1  ;;  %11836 = vmatmul.mubr.msk.bf16.gmra.mrb[116].mxu1 %vm1337_vm6, %v6466_v46 }
 0xa14   :  { %v11800_v12 = vpop.f32.mrb[90].mxu1 }
 0xa15   :  { %v6452_v37 = vpack.c.bf16 %v11800_v12, %v11799_v36  ;;  %v6425_v51 = vpop.f32.mrb[91].mxu1 }
 0xa16   :  { %v6451_v24 = vpack.c.bf16 %v6425_v51, %v6422_v7 }
 0xa17   :  { %v6468_v34 = vmax.bf16 %v12750_v63, %v6452_v37 }
 0xa18   :  { %v6467_v15 = vmax.bf16 %v12750_v63, %v6451_v24 }
 0xa1a   :  { %11839 = vmatprep.mubr.msk.bf16.mxu1 %vm1337_vm6, %v6467_v15 }
 0xa1b   :  { %11840 = vmatmul.mubr.msk.bf16.gmra.mrb[120].mxu1 %vm1337_vm6, %v6468_v34 }
 0xa1c   :  { %11989 = vmatprep.mubr.msk.bf16.mxu1 %vm1337_vm6, %v7887_v54 }
 0xa23   :  { %11990 = vmatmul.mubr.msk.bf16.vlgmr.msra.gmra.mrb[124].mxu1 %vm1337_vm6, %v7888_v40 }
 0xa24   :  { %11993 = vmatprep.mubr.msk.bf16.mxu1 %vm1337_vm6, %v7889_v26  ;;  %12022 = vmatpush3.bf16.msra.mxu1 %v12740_v49 }
 0xa25   :  { %12023 = vmatprep.subr.bf16.mxu1 %v12741_v13 }
 0xa28   :  { %12024 = vmatpush3.bf16.msra.mxu1 %v12741_v13 }
 0xa29   :  { %12025 = vmatprep.subr.bf16.mxu1 %v12742_v45 }
 0xa2b   :  { %11994 = vmatmul.mubr.msk.bf16.gmra.mrb[128].mxu1 %vm1337_vm6, %v7890_v38 }
 0xa2c   :  { %11997 = vmatprep.mubr.msk.bf16.mxu1 %vm1337_vm6, %v7891_v25  ;;  %12026 = vmatpush3.bf16.msra.mxu1 %v12742_v45 }
 0xa2d   :  { %12027 = vmatprep.subr.bf16.mxu1 %v12743_v53 }
 0xa30   :  { %12028 = vmatpush3.bf16.msra.mxu1 %v12743_v53 }
 0xa31   :  { %12029 = vmatprep.subr.bf16.mxu1 %v13454_v48 }
 0xa33   :  { %11998 = vmatmul.mubr.msk.bf16.gmra.mrb[132].mxu1 %vm1337_vm6, %v7892_v32 }
 0xa34   :  { %12001 = vmatprep.mubr.msk.bf16.mxu1 %vm1337_vm6, %v7893_v18  ;;  %12030 = vmatpush3.bf16.msra.mxu1 %v13454_v48  ;;  %v16631_v48 = vpack.c.bf16 %v15977_v14, %v15971_v62 }
 0xa35   :  { %12063 = vmatprep.subr.bf16.mxu1 %v16188_v41 }
 0xa36   :  { %v7896_v6 = vmax.bf16 %v12750_v63, %v16631_v48 }
 0xa3b   :  { %12002 = vmatmul.mubr.msk.bf16.gmra.mrb[136].mxu1 %vm1337_vm6, %v7894_v11 }
 0xa3c   :  { %12005 = vmatprep.mubr.msk.bf16.mxu1 %vm1337_vm6, %v7895_v33 }
 0xa43   :  { %12006 = vmatmul.mubr.msk.bf16.gmra.mrb[140].mxu1 %vm1337_vm6, %v7896_v6 }
 0xa44   :  { %12009 = vmatprep.mubr.msk.bf16.mxu1 %vm1337_vm6, %v7897_v19 }
 0xa4b   :  { %12010 = vmatmul.mubr.msk.bf16.gmra.mrb[144].mxu1 %vm1337_vm6, %v7898_v23 }
 0xa4c   :  { %12013 = vmatprep.mubr.msk.bf16.mxu1 %vm1337_vm6, %v7899_v27 }
 0xa53   :  { %12014 = vmatmul.mubr.msk.bf16.gmra.mrb[148].mxu1 %vm1337_vm6, %v7900_v42 }
 0xa54   :  { %12017 = vmatprep.mubr.msk.bf16.mxu1 %vm1337_vm6, %v7901_v43 }
 0xa5b   :  { %12018 = vmatmul.mubr.msk.bf16.gmra.mrb[152].mxu1 %vm1337_vm6, %v7902_v56 }
 0xab6   :  { %v11813_v62 = vpop.f32.mrb[92].mxu1 }
 0xab7   :  { %6681 = vst.msk [vmem:[#allocation2 + $0x210] sm:$0xff] %vm136_vm2, %v11813_v62  ;;  %v6551_v17 = vpop.f32.mrb[93].mxu1 }
 0xab8   :  { %6679 = vst.msk [vmem:[#allocation2 + $0x200] sm:$0xff] %vm136_vm2, %v6551_v17  ;;  %v11814_v14 = vpop.f32.mrb[94].mxu1 }
 0xab9   :  { %6682 = vst.msk [vmem:[#allocation2 + $0x218] sm:$0xff] %vm136_vm2, %v11814_v14  ;;  %v6554_v52 = vpop.f32.mrb[95].mxu1 }
 0xaba   :  { %6680 = vst.msk [vmem:[#allocation2 + $0x208] sm:$0xff] %vm136_vm2, %v6554_v52 }
 0xabe   :  { %v9277_v60 = vld [vmem:[#allocation2 + $0x210] sm:$0xff]  ;;  %v11817_v1 = vpop.f32.mrb[96].mxu1 }
 0xabf   :  { %9278 = vst [vmem:[%s16612_s13 + $0x210] sm:$0xff] %v9277_v60  ;;  %v9273_v0 = vld [vmem:[#allocation2 + $0x200] sm:$0xff]  ;;  %6685 = vst.msk [vmem:[#allocation2 + $0x230] sm:$0xff] %vm136_vm2, %v11817_v1  ;;  %v6567_v61 = vpop.f32.mrb[97].mxu1 }
 0xac0   :  { %9274 = vst [vmem:[%s16612_s13 + $0x200] sm:$0xff] %v9273_v0  ;;  %v9279_v35 = vld [vmem:[#allocation2 + $0x218] sm:$0xff]  ;;  %6683 = vst.msk [vmem:[#allocation2 + $0x220] sm:$0xff] %vm136_vm2, %v6567_v61  ;;  %v11818_v5 = vpop.f32.mrb[98].mxu1 }
 0xac1   :  { %9280 = vst [vmem:[%s16612_s13 + $0x218] sm:$0xff] %v9279_v35  ;;  %v9275_v58 = vld [vmem:[#allocation2 + $0x208] sm:$0xff]  ;;  %6686 = vst.msk [vmem:[#allocation2 + $0x238] sm:$0xff] %vm136_vm2, %v11818_v5  ;;  %v6570_v44 = vpop.f32.mrb[99].mxu1 }
 0xac2   :  { %9276 = vst [vmem:[%s16612_s13 + $0x208] sm:$0xff] %v9275_v58  ;;  %6684 = vst.msk [vmem:[#allocation2 + $0x228] sm:$0xff] %vm136_vm2, %v6570_v44 }
 0xac6   :  { %v9285_v20 = vld [vmem:[#allocation2 + $0x230] sm:$0xff]  ;;  %v11821_v28 = vpop.f32.mrb[100].mxu1 }
 0xac7   :  { %9286 = vst [vmem:[%s16612_s13 + $0x230] sm:$0xff] %v9285_v20  ;;  %v9281_v31 = vld [vmem:[#allocation2 + $0x220] sm:$0xff]  ;;  %6689 = vst.msk [vmem:[#allocation2 + $0x250] sm:$0xff] %vm136_vm2, %v11821_v28  ;;  %v6583_v16 = vpop.f32.mrb[101].mxu1 }
 0xac8   :  { %9282 = vst [vmem:[%s16612_s13 + $0x220] sm:$0xff] %v9281_v31  ;;  %v9287_v49 = vld [vmem:[#allocation2 + $0x238] sm:$0xff]  ;;  %6687 = vst.msk [vmem:[#allocation2 + $0x240] sm:$0xff] %vm136_vm2, %v6583_v16  ;;  %v11822_v4 = vpop.f32.mrb[102].mxu1 }
 0xac9   :  { %9288 = vst [vmem:[%s16612_s13 + $0x238] sm:$0xff] %v9287_v49  ;;  %v9283_v21 = vld [vmem:[#allocation2 + $0x228] sm:$0xff]  ;;  %6690 = vst.msk [vmem:[#allocation2 + $0x258] sm:$0xff] %vm136_vm2, %v11822_v4  ;;  %v6586_v8 = vpop.f32.mrb[103].mxu1 }
 0xaca   :  { %9284 = vst [vmem:[%s16612_s13 + $0x228] sm:$0xff] %v9283_v21  ;;  %6688 = vst.msk [vmem:[#allocation2 + $0x248] sm:$0xff] %vm136_vm2, %v6586_v8 }
 0xace   :  { %v9293_v30 = vld [vmem:[#allocation2 + $0x250] sm:$0xff]  ;;  %v11825_v46 = vpop.f32.mrb[104].mxu1 }
 0xacf   :  { %9294 = vst [vmem:[%s16612_s13 + $0x250] sm:$0xff] %v9293_v30  ;;  %v9289_v36 = vld [vmem:[#allocation2 + $0x240] sm:$0xff]  ;;  %6693 = vst.msk [vmem:[#allocation2 + $0x270] sm:$0xff] %vm136_vm2, %v11825_v46  ;;  %v6599_v7 = vpop.f32.mrb[105].mxu1  ;;  %v12745_v30 = vld [vmem:[%s16610_s11 + $0x8] sm:$0xff]  }
 0xad0   :  { %9290 = vst [vmem:[%s16612_s13 + $0x240] sm:$0xff] %v9289_v36  ;;  %v9295_v12 = vld [vmem:[#allocation2 + $0x258] sm:$0xff]  ;;  %6691 = vst.msk [vmem:[#allocation2 + $0x260] sm:$0xff] %vm136_vm2, %v6599_v7  ;;  %v11826_v37 = vpop.f32.mrb[106].mxu1 }
 0xad1   :  { %9296 = vst [vmem:[%s16612_s13 + $0x258] sm:$0xff] %v9295_v12  ;;  %v9291_v51 = vld [vmem:[#allocation2 + $0x248] sm:$0xff]  ;;  %6694 = vst.msk [vmem:[#allocation2 + $0x278] sm:$0xff] %vm136_vm2, %v11826_v37  ;;  %v6602_v24 = vpop.f32.mrb[107].mxu1  ;;  %v12746_v12 = vld [vmem:[%s16610_s11 + $0x10] sm:$0xff]  }
 0xad2   :  { %9292 = vst [vmem:[%s16612_s13 + $0x248] sm:$0xff] %v9291_v51  ;;  %6692 = vst.msk [vmem:[#allocation2 + $0x268] sm:$0xff] %vm136_vm2, %v6602_v24 }
 0xad6   :  { %v9301_v15 = vld [vmem:[#allocation2 + $0x270] sm:$0xff]  ;;  %v11829_v34 = vpop.f32.mrb[108].mxu1 }
 0xad7   :  { %9302 = vst [vmem:[%s16612_s13 + $0x270] sm:$0xff] %v9301_v15  ;;  %v9297_v54 = vld [vmem:[#allocation2 + $0x260] sm:$0xff]  ;;  %6697 = vst.msk [vmem:[#allocation2 + $0x290] sm:$0xff] %vm136_vm2, %v11829_v34  ;;  %v6615_v40 = vpop.f32.mrb[109].mxu1  ;;  %v12747_v34 = vld [vmem:[%s16610_s11 + $0x18] sm:$0xff]  }
 0xad8   :  { %9298 = vst [vmem:[%s16612_s13 + $0x260] sm:$0xff] %v9297_v54  ;;  %v9303_v26 = vld [vmem:[#allocation2 + $0x278] sm:$0xff]  ;;  %6695 = vst.msk [vmem:[#allocation2 + $0x280] sm:$0xff] %vm136_vm2, %v6615_v40  ;;  %v11830_v13 = vpop.f32.mrb[110].mxu1 }
 0xad9   :  { %9304 = vst [vmem:[%s16612_s13 + $0x278] sm:$0xff] %v9303_v26  ;;  %v9299_v38 = vld [vmem:[#allocation2 + $0x268] sm:$0xff]  ;;  %6698 = vst.msk [vmem:[#allocation2 + $0x298] sm:$0xff] %vm136_vm2, %v11830_v13  ;;  %v6618_v45 = vpop.f32.mrb[111].mxu1 }
 0xada   :  { %9300 = vst [vmem:[%s16612_s13 + $0x268] sm:$0xff] %v9299_v38  ;;  %6696 = vst.msk [vmem:[#allocation2 + $0x288] sm:$0xff] %vm136_vm2, %v6618_v45 }
 0xade   :  { %v9309_v25 = vld [vmem:[#allocation2 + $0x290] sm:$0xff]  ;;  %v11833_v53 = vpop.f32.mrb[112].mxu1 }
 0xadf   :  { %9310 = vst [vmem:[%s16612_s13 + $0x290] sm:$0xff] %v9309_v25  ;;  %v9305_v32 = vld [vmem:[#allocation2 + $0x280] sm:$0xff]  ;;  %6701 = vst.msk [vmem:[#allocation2 + $0x2b0] sm:$0xff] %vm136_vm2, %v11833_v53  ;;  %v6631_v18 = vpop.f32.mrb[113].mxu1 }
 0xae0   :  { %9306 = vst [vmem:[%s16612_s13 + $0x280] sm:$0xff] %v9305_v32  ;;  %v9311_v11 = vld [vmem:[#allocation2 + $0x298] sm:$0xff]  ;;  %6699 = vst.msk [vmem:[#allocation2 + $0x2a0] sm:$0xff] %vm136_vm2, %v6631_v18  ;;  %v11834_v55 = vpop.f32.mrb[114].mxu1  ;;  %v12748_v32 = vld [vmem:[%s16611_s12] sm:$0xff]  }
 0xae1   :  { %9312 = vst [vmem:[%s16612_s13 + $0x298] sm:$0xff] %v9311_v11  ;;  %v9307_v33 = vld [vmem:[#allocation2 + $0x288] sm:$0xff]  ;;  %6702 = vst.msk [vmem:[#allocation2 + $0x2b8] sm:$0xff] %vm136_vm2, %v11834_v55  ;;  %v6634_v48 = vpop.f32.mrb[115].mxu1 }
 0xae2   :  { %9308 = vst [vmem:[%s16612_s13 + $0x288] sm:$0xff] %v9307_v33  ;;  %6700 = vst.msk [vmem:[#allocation2 + $0x2a8] sm:$0xff] %vm136_vm2, %v6634_v48 }
 0xae6   :  { %v9317_v6 = vld [vmem:[#allocation2 + $0x2b0] sm:$0xff]  ;;  %v11837_v2 = vpop.f32.mrb[116].mxu1 }
 0xae7   :  { %9318 = vst [vmem:[%s16612_s13 + $0x2b0] sm:$0xff] %v9317_v6  ;;  %v9313_v19 = vld [vmem:[#allocation2 + $0x2a0] sm:$0xff]  ;;  %6705 = vst.msk [vmem:[#allocation2 + $0x2d0] sm:$0xff] %vm136_vm2, %v11837_v2  ;;  %v6647_v29 = vpop.f32.mrb[117].mxu1 }
 0xae8   :  { %9314 = vst [vmem:[%s16612_s13 + $0x2a0] sm:$0xff] %v9313_v19  ;;  %v9319_v23 = vld [vmem:[#allocation2 + $0x2b8] sm:$0xff]  ;;  %6703 = vst.msk [vmem:[#allocation2 + $0x2c0] sm:$0xff] %vm136_vm2, %v6647_v29  ;;  %v11838_v47 = vpop.f32.mrb[118].mxu1 }
 0xae9   :  { %9320 = vst [vmem:[%s16612_s13 + $0x2b8] sm:$0xff] %v9319_v23  ;;  %v9315_v27 = vld [vmem:[#allocation2 + $0x2a8] sm:$0xff]  ;;  %6706 = vst.msk [vmem:[#allocation2 + $0x2d8] sm:$0xff] %vm136_vm2, %v11838_v47  ;;  %v6650_v10 = vpop.f32.mrb[119].mxu1 }
 0xaea   :  { %9316 = vst [vmem:[%s16612_s13 + $0x2a8] sm:$0xff] %v9315_v27  ;;  %6704 = vst.msk [vmem:[#allocation2 + $0x2c8] sm:$0xff] %vm136_vm2, %v6650_v10 }
 0xaee   :  { %v9325_v42 = vld [vmem:[#allocation2 + $0x2d0] sm:$0xff]  ;;  %v11841_v50 = vpop.f32.mrb[120].mxu1 }
 0xaef   :  { %9326 = vst [vmem:[%s16612_s13 + $0x2d0] sm:$0xff] %v9325_v42  ;;  %v9321_v43 = vld [vmem:[#allocation2 + $0x2c0] sm:$0xff]  ;;  %6709 = vst.msk [vmem:[#allocation2 + $0x2f0] sm:$0xff] %vm136_vm2, %v11841_v50  ;;  %v6663_v39 = vpop.f32.mrb[121].mxu1 }
 0xaf0   :  { %9322 = vst [vmem:[%s16612_s13 + $0x2c0] sm:$0xff] %v9321_v43  ;;  %v9327_v56 = vld [vmem:[#allocation2 + $0x2d8] sm:$0xff]  ;;  %6707 = vst.msk [vmem:[#allocation2 + $0x2e0] sm:$0xff] %vm136_vm2, %v6663_v39  ;;  %v11842_v62 = vpop.f32.mrb[122].mxu1 }
 0xaf1   :  { %9328 = vst [vmem:[%s16612_s13 + $0x2d8] sm:$0xff] %v9327_v56  ;;  %v9323_v17 = vld [vmem:[#allocation2 + $0x2c8] sm:$0xff]  ;;  %6710 = vst.msk [vmem:[#allocation2 + $0x2f8] sm:$0xff] %vm136_vm2, %v11842_v62  ;;  %v6666_v14 = vpop.f32.mrb[123].mxu1 }
 0xaf2   :  { %9324 = vst [vmem:[%s16612_s13 + $0x2c8] sm:$0xff] %v9323_v17  ;;  %6708 = vst.msk [vmem:[#allocation2 + $0x2e8] sm:$0xff] %vm136_vm2, %v6666_v14 }
 0xaf6   :  { %v9333_v52 = vld [vmem:[#allocation2 + $0x2f0] sm:$0xff]  ;;  %v11991_v60 = vpop.f32.mrb[124].mxu1 }
 0xaf7   :  { %9334 = vst [vmem:[%s16612_s13 + $0x2f0] sm:$0xff] %v9333_v52  ;;  %v9329_v1 = vld [vmem:[#allocation2 + $0x2e0] sm:$0xff]  ;;  %v7985_v0 = vpop.f32.mrb[125].mxu1 }
 0xaf8   :  { %9330 = vst [vmem:[%s16612_s13 + $0x2e0] sm:$0xff] %v9329_v1  ;;  %v9335_v61 = vld [vmem:[#allocation2 + $0x2f8] sm:$0xff]  ;;  %v11992_v35 = vpop.f32.mrb[126].mxu1 }
 0xaf9   :  { %9336 = vst [vmem:[%s16612_s13 + $0x2f8] sm:$0xff] %v9335_v61  ;;  %v9331_v5 = vld [vmem:[#allocation2 + $0x2e8] sm:$0xff]  ;;  %v8113_v58 = vpack.c.bf16 %v11992_v35, %v11991_v60  ;;  %v7988_v44 = vpop.f32.mrb[127].mxu1 }
 0xafa   :  { %9332 = vst [vmem:[%s16612_s13 + $0x2e8] sm:$0xff] %v9331_v5  ;;  %v8112_v20 = vpack.c.bf16 %v7988_v44, %v7985_v0 }
 0xafb   :  { %v8129_v31 = vmax.bf16 %v12750_v63, %v8113_v58 }
 0xafc   :  { %v8128_v28 = vmax.bf16 %v12750_v63, %v8112_v20 }
 0xafe   :  { %v11995_v16 = vpop.f32.mrb[128].mxu1  ;;  %12031 = vmatprep.mubr.msk.bf16.mxu1 %vm1337_vm6, %v8128_v28 }
 0xaff   :  { %v8001_v49 = vpop.f32.mrb[129].mxu1  ;;  %12032 = vmatmul.mubr.msk.bf16.vlgmr.msra.gmra.mrb[156].mxu1 %vm1337_vm6, %v8129_v31 }
 0xb00   :  { %v11996_v4 = vpop.f32.mrb[130].mxu1  ;;  %12064 = vmatpush3.bf16.msra.mxu1 %v16188_v41 }
 0xb01   :  { %v8115_v21 = vpack.c.bf16 %v11996_v4, %v11995_v16  ;;  %v8004_v8 = vpop.f32.mrb[131].mxu1  ;;  %12065 = vmatprep.subr.bf16.mxu1 %v12745_v30 }
 0xb02   :  { %v8114_v46 = vpack.c.bf16 %v8004_v8, %v8001_v49 }
 0xb03   :  { %v8131_v7 = vmax.bf16 %v12750_v63, %v8115_v21 }
 0xb04   :  { %v8130_v36 = vmax.bf16 %v12750_v63, %v8114_v46  ;;  %12066 = vmatpush3.bf16.msra.mxu1 %v12745_v30 }
 0xb05   :  { %12067 = vmatprep.subr.bf16.mxu1 %v12746_v12 }
 0xb06   :  { %v11999_v37 = vpop.f32.mrb[132].mxu1  ;;  %12035 = vmatprep.mubr.msk.bf16.mxu1 %vm1337_vm6, %v8130_v36 }
 0xb07   :  { %v8017_v41 = vpop.f32.mrb[133].mxu1  ;;  %12036 = vmatmul.mubr.msk.bf16.gmra.mrb[160].mxu1 %vm1337_vm6, %v8131_v7 }
 0xb08   :  { %v12000_v51 = vpop.f32.mrb[134].mxu1  ;;  %12068 = vmatpush3.bf16.msra.mxu1 %v12746_v12 }
 0xb09   :  { %v8117_v24 = vpack.c.bf16 %v12000_v51, %v11999_v37  ;;  %v8020_v15 = vpop.f32.mrb[135].mxu1  ;;  %12069 = vmatprep.subr.bf16.mxu1 %v12747_v34 }
 0xb0a   :  { %v8116_v54 = vpack.c.bf16 %v8020_v15, %v8017_v41 }
 0xb0b   :  { %v8133_v26 = vmax.bf16 %v12750_v63, %v8117_v24 }
 0xb0c   :  { %v8132_v40 = vmax.bf16 %v12750_v63, %v8116_v54  ;;  %12070 = vmatpush3.bf16.msra.mxu1 %v12747_v34 }
 0xb0d   :  { %12071 = vmatprep.subr.bf16.mxu1 %v13898_v3 }
 0xb0e   :  { %v12003_v13 = vpop.f32.mrb[136].mxu1  ;;  %12039 = vmatprep.mubr.msk.bf16.mxu1 %vm1337_vm6, %v8132_v40 }
 0xb0f   :  { %v8033_v38 = vpop.f32.mrb[137].mxu1  ;;  %12040 = vmatmul.mubr.msk.bf16.gmra.mrb[164].mxu1 %vm1337_vm6, %v8133_v26 }
 0xb10   :  { %v12004_v45 = vpop.f32.mrb[138].mxu1  ;;  %12072 = vmatpush3.bf16.msra.mxu1 %v13898_v3 }
 0xb11   :  { %v8119_v25 = vpack.c.bf16 %v12004_v45, %v12003_v13  ;;  %v8036_v53 = vpop.f32.mrb[139].mxu1  ;;  %12105 = vmatprep.subr.bf16.mxu1 %v12748_v32 }
 0xb12   :  { %v8118_v18 = vpack.c.bf16 %v8036_v53, %v8033_v38 }
 0xb13   :  { %v8135_v55 = vmax.bf16 %v12750_v63, %v8119_v25 }
 0xb14   :  { %v8134_v11 = vmax.bf16 %v12750_v63, %v8118_v18 }
 0xb16   :  { %v12007_v33 = vpop.f32.mrb[140].mxu1  ;;  %12043 = vmatprep.mubr.msk.bf16.mxu1 %vm1337_vm6, %v8134_v11 }
 0xb17   :  { %v8049_v48 = vpop.f32.mrb[141].mxu1  ;;  %12044 = vmatmul.mubr.msk.bf16.gmra.mrb[168].mxu1 %vm1337_vm6, %v8135_v55 }
 0xb18   :  { %v12008_v6 = vpop.f32.mrb[142].mxu1 }
 0xb19   :  { %v8121_v3 = vpack.c.bf16 %v12008_v6, %v12007_v33  ;;  %v8052_v2 = vpop.f32.mrb[143].mxu1 }
 0xb1a   :  { %v8120_v19 = vpack.c.bf16 %v8052_v2, %v8049_v48 }
 0xb1b   :  { %v8137_v23 = vmax.bf16 %v12750_v63, %v8121_v3 }
 0xb1c   :  { %v8136_v29 = vmax.bf16 %v12750_v63, %v8120_v19 }
 0xb1e   :  { %v12011_v47 = vpop.f32.mrb[144].mxu1  ;;  %12047 = vmatprep.mubr.msk.bf16.mxu1 %vm1337_vm6, %v8136_v29 }
 0xb1f   :  { %v8065_v27 = vpop.f32.mrb[145].mxu1  ;;  %12048 = vmatmul.mubr.msk.bf16.gmra.mrb[172].mxu1 %vm1337_vm6, %v8137_v23 }
 0xb20   :  { %v12012_v10 = vpop.f32.mrb[146].mxu1 }
 0xb21   :  { %v8123_v42 = vpack.c.bf16 %v12012_v10, %v12011_v47  ;;  %v8068_v50 = vpop.f32.mrb[147].mxu1 }
 0xb22   :  { %v8122_v43 = vpack.c.bf16 %v8068_v50, %v8065_v27 }
 0xb23   :  { %v8139_v56 = vmax.bf16 %v12750_v63, %v8123_v42 }
 0xb24   :  { %v8138_v39 = vmax.bf16 %v12750_v63, %v8122_v43 }
 0xb26   :  { %v12015_v62 = vpop.f32.mrb[148].mxu1  ;;  %12051 = vmatprep.mubr.msk.bf16.mxu1 %vm1337_vm6, %v8138_v39 }
 0xb27   :  { %v8081_v17 = vpop.f32.mrb[149].mxu1  ;;  %12052 = vmatmul.mubr.msk.bf16.gmra.mrb[176].mxu1 %vm1337_vm6, %v8139_v56 }
 0xb28   :  { %v12016_v14 = vpop.f32.mrb[150].mxu1 }
 0xb29   :  { %v8125_v52 = vpack.c.bf16 %v12016_v14, %v12015_v62  ;;  %v8084_v60 = vpop.f32.mrb[151].mxu1 }
 0xb2a   :  { %v8124_v1 = vpack.c.bf16 %v8084_v60, %v8081_v17 }
 0xb2b   :  { %v8141_v61 = vmax.bf16 %v12750_v63, %v8125_v52 }
 0xb2c   :  { %v8140_v0 = vmax.bf16 %v12750_v63, %v8124_v1 }
 0xb2e   :  { %v12019_v35 = vpop.f32.mrb[152].mxu1  ;;  %12055 = vmatprep.mubr.msk.bf16.mxu1 %vm1337_vm6, %v8140_v0 }
 0xb2f   :  { %v8097_v5 = vpop.f32.mrb[153].mxu1  ;;  %12056 = vmatmul.mubr.msk.bf16.gmra.mrb[180].mxu1 %vm1337_vm6, %v8141_v61 }
 0xb30   :  { %v12020_v58 = vpop.f32.mrb[154].mxu1 }
 0xb31   :  { %v8127_v44 = vpack.c.bf16 %v12020_v58, %v12019_v35  ;;  %v8100_v20 = vpop.f32.mrb[155].mxu1 }
 0xb32   :  { %v8126_v28 = vpack.c.bf16 %v8100_v20, %v8097_v5 }
 0xb33   :  { %v8143_v16 = vmax.bf16 %v12750_v63, %v8127_v44 }
 0xb34   :  { %v8142_v31 = vmax.bf16 %v12750_v63, %v8126_v28 }
 0xb36   :  { %12059 = vmatprep.mubr.msk.bf16.mxu1 %vm1337_vm6, %v8142_v31 }
 0xb37   :  { %12060 = vmatmul.mubr.msk.bf16.gmra.mrb[184].mxu1 %vm1337_vm6, %v8143_v16 }
 0xbd2   :  { %v12033_v49 = vpop.f32.mrb[156].mxu1 }
 0xbd3   :  { %v8226_v4 = vpop.f32.mrb[157].mxu1 }
 0xbd4   :  { %v12034_v21 = vpop.f32.mrb[158].mxu1 }
 0xbd5   :  { %v8354_v8 = vpack.c.bf16 %v12034_v21, %v12033_v49  ;;  %v8229_v30 = vpop.f32.mrb[159].mxu1 }
 0xbd6   :  { %v8353_v46 = vpack.c.bf16 %v8229_v30, %v8226_v4 }
 0xbd7   :  { %v8370_v7 = vmax.bf16 %v12750_v63, %v8354_v8 }
 0xbd8   :  { %v8369_v36 = vmax.bf16 %v12750_v63, %v8353_v46 }
 0xbda   :  { %v12037_v12 = vpop.f32.mrb[160].mxu1  ;;  %12073 = vmatprep.mubr.msk.bf16.mxu1 %vm1337_vm6, %v8369_v36 }
 0xbdb   :  { %v8242_v37 = vpop.f32.mrb[161].mxu1  ;;  %12074 = vmatmul.mubr.msk.bf16.vlgmr.msra.gmra.mrb[188].mxu1 %vm1337_vm6, %v8370_v7 }
 0xbdc   :  { %v12038_v41 = vpop.f32.mrb[162].mxu1  ;;  %12106 = vmatpush3.bf16.msra.mxu1 %v12748_v32 }
 0xbdd   :  { %v8356_v51 = vpack.c.bf16 %v12038_v41, %v12037_v12  ;;  %v8245_v24 = vpop.f32.mrb[163].mxu1  ;;  %12107 = vmatprep.subr.bf16.mxu1 %v16022_v59 }
 0xbde   :  { %v8355_v15 = vpack.c.bf16 %v8245_v24, %v8242_v37 }
 0xbdf   :  { %v8372_v54 = vmax.bf16 %v12750_v63, %v8356_v51 }
 0xbe0   :  { %v8371_v34 = vmax.bf16 %v12750_v63, %v8355_v15  ;;  %12108 = vmatpush3.bf16.msra.mxu1 %v16022_v59 }
 0xbe1   :  { %12109 = vmatprep.subr.bf16.mxu1 %v16035_v22 }
 0xbe2   :  { %v12041_v40 = vpop.f32.mrb[164].mxu1  ;;  %12077 = vmatprep.mubr.msk.bf16.mxu1 %vm1337_vm6, %v8371_v34 }
 0xbe3   :  { %v8258_v26 = vpop.f32.mrb[165].mxu1  ;;  %12078 = vmatmul.mubr.msk.bf16.gmra.mrb[192].mxu1 %vm1337_vm6, %v8372_v54 }
 0xbe4   :  { %v12042_v13 = vpop.f32.mrb[166].mxu1  ;;  %12110 = vmatpush3.bf16.msra.mxu1 %v16035_v22 }
 0xbe5   :  { %v8358_v38 = vpack.c.bf16 %v12042_v13, %v12041_v40  ;;  %v8261_v45 = vpop.f32.mrb[167].mxu1  ;;  %12111 = vmatprep.subr.bf16.mxu1 %v16056_v9 }
 0xbe6   :  { %v8357_v25 = vpack.c.bf16 %v8261_v45, %v8258_v26 }
 0xbe7   :  { %v8374_v53 = vmax.bf16 %v12750_v63, %v8358_v38 }
 0xbe8   :  { %v8373_v59 = vmax.bf16 %v12750_v63, %v8357_v25  ;;  %12112 = vmatpush3.bf16.msra.mxu1 %v16056_v9 }
 0xbe9   :  { %12113 = vmatprep.subr.bf16.mxu1 %v14072_v57 }
 0xbea   :  { %v12045_v32 = vpop.f32.mrb[168].mxu1  ;;  %12081 = vmatprep.mubr.msk.bf16.mxu1 %vm1337_vm6, %v8373_v59 }
 0xbeb   :  { %v8274_v18 = vpop.f32.mrb[169].mxu1  ;;  %12082 = vmatmul.mubr.msk.bf16.gmra.mrb[196].mxu1 %vm1337_vm6, %v8374_v53 }
 0xbec   :  { %v12046_v22 = vpop.f32.mrb[170].mxu1  ;;  %12114 = vmatpush3.bf16.msra.mxu1 %v14072_v57 }
 0xbed   :  { %v8360_v11 = vpack.c.bf16 %v12046_v22, %v12045_v32  ;;  %v8277_v55 = vpop.f32.mrb[171].mxu1 }
 0xbee   :  { %v8359_v33 = vpack.c.bf16 %v8277_v55, %v8274_v18 }
 0xbef   :  { %v8376_v9 = vmax.bf16 %v12750_v63, %v8360_v11 }
 0xbf0   :  { %v8375_v48 = vmax.bf16 %v12750_v63, %v8359_v33 }
 0xbf2   :  { %v12049_v6 = vpop.f32.mrb[172].mxu1  ;;  %12085 = vmatprep.mubr.msk.bf16.mxu1 %vm1337_vm6, %v8375_v48 }
 0xbf3   :  { %v8290_v3 = vpop.f32.mrb[173].mxu1  ;;  %12086 = vmatmul.mubr.msk.bf16.gmra.mrb[200].mxu1 %vm1337_vm6, %v8376_v9 }
 0xbf4   :  { %v12050_v2 = vpop.f32.mrb[174].mxu1 }
 0xbf5   :  { %v8362_v19 = vpack.c.bf16 %v12050_v2, %v12049_v6  ;;  %v8293_v29 = vpop.f32.mrb[175].mxu1 }
 0xbf6   :  { %v8361_v23 = vpack.c.bf16 %v8293_v29, %v8290_v3 }
 0xbf7   :  { %v8378_v57 = vmax.bf16 %v12750_v63, %v8362_v19 }
 0xbf8   :  { %v8377_v47 = vmax.bf16 %v12750_v63, %v8361_v23 }
 0xbfa   :  { %v12053_v27 = vpop.f32.mrb[176].mxu1  ;;  %12089 = vmatprep.mubr.msk.bf16.mxu1 %vm1337_vm6, %v8377_v47 }
 0xbfb   :  { %v8306_v10 = vpop.f32.mrb[177].mxu1  ;;  %12090 = vmatmul.mubr.msk.bf16.gmra.mrb[204].mxu1 %vm1337_vm6, %v8378_v57 }
 0xbfc   :  { %v12054_v42 = vpop.f32.mrb[178].mxu1 }
 0xbfd   :  { %v8364_v50 = vpack.c.bf16 %v12054_v42, %v12053_v27  ;;  %v8309_v43 = vpop.f32.mrb[179].mxu1 }
 0xbfe   :  { %v8363_v39 = vpack.c.bf16 %v8309_v43, %v8306_v10 }
 0xbff   :  { %v8380_v62 = vmax.bf16 %v12750_v63, %v8364_v50 }
 0xc00   :  { %v8379_v56 = vmax.bf16 %v12750_v63, %v8363_v39 }
 0xc02   :  { %v12057_v17 = vpop.f32.mrb[180].mxu1  ;;  %12093 = vmatprep.mubr.msk.bf16.mxu1 %vm1337_vm6, %v8379_v56 }
 0xc03   :  { %v8322_v14 = vpop.f32.mrb[181].mxu1  ;;  %12094 = vmatmul.mubr.msk.bf16.gmra.mrb[208].mxu1 %vm1337_vm6, %v8380_v62 }
 0xc04   :  { %v12058_v52 = vpop.f32.mrb[182].mxu1 }
 0xc05   :  { %v8366_v60 = vpack.c.bf16 %v12058_v52, %v12057_v17  ;;  %v8325_v1 = vpop.f32.mrb[183].mxu1 }
 0xc06   :  { %v8365_v0 = vpack.c.bf16 %v8325_v1, %v8322_v14 }
 0xc07   :  { %v8382_v35 = vmax.bf16 %v12750_v63, %v8366_v60 }
 0xc08   :  { %v8381_v61 = vmax.bf16 %v12750_v63, %v8365_v0 }
 0xc0a   :  { %v12061_v5 = vpop.f32.mrb[184].mxu1  ;;  %12097 = vmatprep.mubr.msk.bf16.mxu1 %vm1337_vm6, %v8381_v61 }
 0xc0b   :  { %v8338_v58 = vpop.f32.mrb[185].mxu1  ;;  %12098 = vmatmul.mubr.msk.bf16.gmra.mrb[212].mxu1 %vm1337_vm6, %v8382_v35 }
 0xc0c   :  { %v12062_v44 = vpop.f32.mrb[186].mxu1 }
 0xc0d   :  { %v8368_v20 = vpack.c.bf16 %v12062_v44, %v12061_v5  ;;  %v8341_v28 = vpop.f32.mrb[187].mxu1 }
 0xc0e   :  { %v8367_v31 = vpack.c.bf16 %v8341_v28, %v8338_v58 }
 0xc0f   :  { %v8384_v49 = vmax.bf16 %v12750_v63, %v8368_v20 }
 0xc10   :  { %v8383_v16 = vmax.bf16 %v12750_v63, %v8367_v31 }
 0xc12   :  { %12101 = vmatprep.mubr.msk.bf16.mxu1 %vm1337_vm6, %v8383_v16 }
 0xc13   :  { %12102 = vmatmul.mubr.msk.bf16.gmra.mrb[216].mxu1 %vm1337_vm6, %v8384_v49 }
 0xcae   :  { %v12075_v4 = vpop.f32.mrb[188].mxu1 }
 0xcaf   :  { %v8467_v21 = vpop.f32.mrb[189].mxu1 }
 0xcb0   :  { %v12076_v8 = vpop.f32.mrb[190].mxu1 }
 0xcb1   :  { %v8595_v30 = vpack.c.bf16 %v12076_v8, %v12075_v4  ;;  %v8470_v46 = vpop.f32.mrb[191].mxu1 }
 0xcb2   :  { %v8594_v36 = vpack.c.bf16 %v8470_v46, %v8467_v21 }
 0xcb3   :  { %v8611_v12 = vmax.bf16 %v12750_v63, %v8595_v30 }
 0xcb4   :  { %v8610_v7 = vmax.bf16 %v12750_v63, %v8594_v36 }
 0xcb6   :  { %v12079_v37 = vpop.f32.mrb[192].mxu1  ;;  %12115 = vmatprep.mubr.msk.bf16.mxu1 %vm1337_vm6, %v8610_v7 }
 0xcb7   :  { %v8483_v41 = vpop.f32.mrb[193].mxu1  ;;  %12116 = vmatmul.mubr.msk.bf16.vlgmr.msra.gmra.mrb[220].mxu1 %vm1337_vm6, %v8611_v12 }
 0xcb8   :  { %v12080_v51 = vpop.f32.mrb[194].mxu1 }
 0xcb9   :  { %v8597_v24 = vpack.c.bf16 %v12080_v51, %v12079_v37  ;;  %v8486_v15 = vpop.f32.mrb[195].mxu1 }
 0xcba   :  { %v8596_v34 = vpack.c.bf16 %v8486_v15, %v8483_v41 }
 0xcbb   :  { %v8613_v40 = vmax.bf16 %v12750_v63, %v8597_v24 }
 0xcbc   :  { %v8612_v54 = vmax.bf16 %v12750_v63, %v8596_v34 }
 0xcbe   :  { %v12083_v26 = vpop.f32.mrb[196].mxu1  ;;  %12119 = vmatprep.mubr.msk.bf16.mxu1 %vm1337_vm6, %v8612_v54 }
 0xcbf   :  { %v8499_v13 = vpop.f32.mrb[197].mxu1  ;;  %12120 = vmatmul.mubr.msk.bf16.gmra.mrb[224].mxu1 %vm1337_vm6, %v8613_v40 }
 0xcc0   :  { %v12084_v38 = vpop.f32.mrb[198].mxu1 }
 0xcc1   :  { %v8599_v45 = vpack.c.bf16 %v12084_v38, %v12083_v26  ;;  %v8502_v25 = vpop.f32.mrb[199].mxu1 }
 0xcc2   :  { %v8598_v59 = vpack.c.bf16 %v8502_v25, %v8499_v13 }
 0xcc3   :  { %v8615_v32 = vmax.bf16 %v12750_v63, %v8599_v45 }
 0xcc4   :  { %v8614_v53 = vmax.bf16 %v12750_v63, %v8598_v59 }
 0xcc6   :  { %v12087_v18 = vpop.f32.mrb[200].mxu1  ;;  %12123 = vmatprep.mubr.msk.bf16.mxu1 %vm1337_vm6, %v8614_v53 }
 0xcc7   :  { %v8515_v22 = vpop.f32.mrb[201].mxu1  ;;  %12124 = vmatmul.mubr.msk.bf16.gmra.mrb[228].mxu1 %vm1337_vm6, %v8615_v32 }
 0xcc8   :  { %v12088_v11 = vpop.f32.mrb[202].mxu1 }
 0xcc9   :  { %v8601_v55 = vpack.c.bf16 %v12088_v11, %v12087_v18  ;;  %v8518_v33 = vpop.f32.mrb[203].mxu1 }
 0xcca   :  { %v8600_v48 = vpack.c.bf16 %v8518_v33, %v8515_v22 }
 0xccb   :  { %v8617_v6 = vmax.bf16 %v12750_v63, %v8601_v55 }
 0xccc   :  { %v8616_v9 = vmax.bf16 %v12750_v63, %v8600_v48 }
 0xcce   :  { %v12091_v3 = vpop.f32.mrb[204].mxu1  ;;  %12127 = vmatprep.mubr.msk.bf16.mxu1 %vm1337_vm6, %v8616_v9 }
 0xccf   :  { %v8531_v2 = vpop.f32.mrb[205].mxu1  ;;  %12128 = vmatmul.mubr.msk.bf16.gmra.mrb[232].mxu1 %vm1337_vm6, %v8617_v6 }
 0xcd0   :  { %v12092_v19 = vpop.f32.mrb[206].mxu1 }
 0xcd1   :  { %v8603_v29 = vpack.c.bf16 %v12092_v19, %v12091_v3  ;;  %v8534_v23 = vpop.f32.mrb[207].mxu1 }
 0xcd2   :  { %v8602_v47 = vpack.c.bf16 %v8534_v23, %v8531_v2 }
 0xcd3   :  { %v8619_v27 = vmax.bf16 %v12750_v63, %v8603_v29 }
 0xcd4   :  { %v8618_v57 = vmax.bf16 %v12750_v63, %v8602_v47 }
 0xcd6   :  { %v12095_v10 = vpop.f32.mrb[208].mxu1  ;;  %12131 = vmatprep.mubr.msk.bf16.mxu1 %vm1337_vm6, %v8618_v57 }
 0xcd7   :  { %v8547_v42 = vpop.f32.mrb[209].mxu1  ;;  %12132 = vmatmul.mubr.msk.bf16.gmra.mrb[236].mxu1 %vm1337_vm6, %v8619_v27 }
 0xcd8   :  { %v12096_v50 = vpop.f32.mrb[210].mxu1 }
 0xcd9   :  { %v8605_v43 = vpack.c.bf16 %v12096_v50, %v12095_v10  ;;  %v8550_v39 = vpop.f32.mrb[211].mxu1 }
 0xcda   :  { %v8604_v56 = vpack.c.bf16 %v8550_v39, %v8547_v42 }
 0xcdb   :  { %v8621_v17 = vmax.bf16 %v12750_v63, %v8605_v43 }
 0xcdc   :  { %v8620_v62 = vmax.bf16 %v12750_v63, %v8604_v56 }
 0xcde   :  { %v12099_v14 = vpop.f32.mrb[212].mxu1  ;;  %12135 = vmatprep.mubr.msk.bf16.mxu1 %vm1337_vm6, %v8620_v62 }
 0xcdf   :  { %v8563_v52 = vpop.f32.mrb[213].mxu1  ;;  %12136 = vmatmul.mubr.msk.bf16.gmra.mrb[240].mxu1 %vm1337_vm6, %v8621_v17 }
 0xce0   :  { %v12100_v60 = vpop.f32.mrb[214].mxu1 }
 0xce1   :  { %v8607_v1 = vpack.c.bf16 %v12100_v60, %v12099_v14  ;;  %v8566_v0 = vpop.f32.mrb[215].mxu1 }
 0xce2   :  { %v8606_v61 = vpack.c.bf16 %v8566_v0, %v8563_v52 }
 0xce3   :  { %v8623_v5 = vmax.bf16 %v12750_v63, %v8607_v1 }
 0xce4   :  { %v8622_v35 = vmax.bf16 %v12750_v63, %v8606_v61 }
 0xce6   :  { %v12103_v58 = vpop.f32.mrb[216].mxu1  ;;  %12139 = vmatprep.mubr.msk.bf16.mxu1 %vm1337_vm6, %v8622_v35 }
 0xce7   :  { %v8579_v44 = vpop.f32.mrb[217].mxu1  ;;  %12140 = vmatmul.mubr.msk.bf16.gmra.mrb[244].mxu1 %vm1337_vm6, %v8623_v5 }
 0xce8   :  { %v12104_v20 = vpop.f32.mrb[218].mxu1 }
 0xce9   :  { %v8609_v28 = vpack.c.bf16 %v12104_v20, %v12103_v58  ;;  %v8582_v31 = vpop.f32.mrb[219].mxu1 }
 0xcea   :  { %v8608_v16 = vpack.c.bf16 %v8582_v31, %v8579_v44 }
 0xceb   :  { %v8625_v4 = vmax.bf16 %v12750_v63, %v8609_v28 }
 0xcec   :  { %v8624_v49 = vmax.bf16 %v12750_v63, %v8608_v16 }
 0xcee   :  { %12143 = vmatprep.mubr.msk.bf16.mxu1 %vm1337_vm6, %v8624_v49 }
 0xcef   :  { %12144 = vmatmul.mubr.msk.bf16.gmra.mrb[248].mxu1 %vm1337_vm6, %v8625_v4 }
 0xd8a   :  { %v12117_v21 = vpop.f32.mrb[220].mxu1 }
 0xd8b   :  { %8838 = vst.msk [vmem:[#allocation2 + $0x310] sm:$0xff] %vm136_vm2, %v12117_v21  ;;  %v8708_v8 = vpop.f32.mrb[221].mxu1 }
 0xd8c   :  { %8836 = vst.msk [vmem:[#allocation2 + $0x300] sm:$0xff] %vm136_vm2, %v8708_v8  ;;  %v12118_v30 = vpop.f32.mrb[222].mxu1 }
 0xd8d   :  { %8839 = vst.msk [vmem:[#allocation2 + $0x318] sm:$0xff] %vm136_vm2, %v12118_v30  ;;  %v8711_v46 = vpop.f32.mrb[223].mxu1 }
 0xd8e   :  { %8837 = vst.msk [vmem:[#allocation2 + $0x308] sm:$0xff] %vm136_vm2, %v8711_v46 }
 0xd92   :  { %v9341_v36 = vld [vmem:[#allocation2 + $0x310] sm:$0xff]  ;;  %v12121_v7 = vpop.f32.mrb[224].mxu1 }
 0xd93   :  { %9342 = vst [vmem:[%s16612_s13 + $0x310] sm:$0xff] %v9341_v36  ;;  %v9337_v63 = vld [vmem:[#allocation2 + $0x300] sm:$0xff]  ;;  %8842 = vst.msk [vmem:[#allocation2 + $0x330] sm:$0xff] %vm136_vm2, %v12121_v7  ;;  %v8724_v12 = vpop.f32.mrb[225].mxu1 }
 0xd94   :  { %9338 = vst [vmem:[%s16612_s13 + $0x300] sm:$0xff] %v9337_v63  ;;  %v9343_v37 = vld [vmem:[#allocation2 + $0x318] sm:$0xff]  ;;  %8840 = vst.msk [vmem:[#allocation2 + $0x320] sm:$0xff] %vm136_vm2, %v8724_v12  ;;  %v12122_v41 = vpop.f32.mrb[226].mxu1 }
 0xd95   :  { %9344 = vst [vmem:[%s16612_s13 + $0x318] sm:$0xff] %v9343_v37  ;;  %v9339_v51 = vld [vmem:[#allocation2 + $0x308] sm:$0xff]  ;;  %8843 = vst.msk [vmem:[#allocation2 + $0x338] sm:$0xff] %vm136_vm2, %v12122_v41  ;;  %v8727_v24 = vpop.f32.mrb[227].mxu1 }
 0xd96   :  { %9340 = vst [vmem:[%s16612_s13 + $0x308] sm:$0xff] %v9339_v51  ;;  %8841 = vst.msk [vmem:[#allocation2 + $0x328] sm:$0xff] %vm136_vm2, %v8727_v24 }
 0xd9a   :  { %v9349_v15 = vld [vmem:[#allocation2 + $0x330] sm:$0xff]  ;;  %v12125_v34 = vpop.f32.mrb[228].mxu1 }
 0xd9b   :  { %9350 = vst [vmem:[%s16612_s13 + $0x330] sm:$0xff] %v9349_v15  ;;  %v9345_v54 = vld [vmem:[#allocation2 + $0x320] sm:$0xff]  ;;  %8846 = vst.msk [vmem:[#allocation2 + $0x350] sm:$0xff] %vm136_vm2, %v12125_v34  ;;  %v8740_v40 = vpop.f32.mrb[229].mxu1 }
 0xd9c   :  { %9346 = vst [vmem:[%s16612_s13 + $0x320] sm:$0xff] %v9345_v54  ;;  %v9351_v26 = vld [vmem:[#allocation2 + $0x338] sm:$0xff]  ;;  %8844 = vst.msk [vmem:[#allocation2 + $0x340] sm:$0xff] %vm136_vm2, %v8740_v40  ;;  %v12126_v13 = vpop.f32.mrb[230].mxu1 }
 0xd9d   :  { %9352 = vst [vmem:[%s16612_s13 + $0x338] sm:$0xff] %v9351_v26  ;;  %v9347_v38 = vld [vmem:[#allocation2 + $0x328] sm:$0xff]  ;;  %8847 = vst.msk [vmem:[#allocation2 + $0x358] sm:$0xff] %vm136_vm2, %v12126_v13  ;;  %v8743_v45 = vpop.f32.mrb[231].mxu1 }
 0xd9e   :  { %9348 = vst [vmem:[%s16612_s13 + $0x328] sm:$0xff] %v9347_v38  ;;  %8845 = vst.msk [vmem:[#allocation2 + $0x348] sm:$0xff] %vm136_vm2, %v8743_v45 }
 0xda2   :  { %v9357_v25 = vld [vmem:[#allocation2 + $0x350] sm:$0xff]  ;;  %v12129_v59 = vpop.f32.mrb[232].mxu1 }
 0xda3   :  { %9358 = vst [vmem:[%s16612_s13 + $0x350] sm:$0xff] %v9357_v25  ;;  %v9353_v53 = vld [vmem:[#allocation2 + $0x340] sm:$0xff]  ;;  %8850 = vst.msk [vmem:[#allocation2 + $0x370] sm:$0xff] %vm136_vm2, %v12129_v59  ;;  %v8756_v32 = vpop.f32.mrb[233].mxu1 }
 0xda4   :  { %9354 = vst [vmem:[%s16612_s13 + $0x340] sm:$0xff] %v9353_v53  ;;  %v9359_v18 = vld [vmem:[#allocation2 + $0x358] sm:$0xff]  ;;  %8848 = vst.msk [vmem:[#allocation2 + $0x360] sm:$0xff] %vm136_vm2, %v8756_v32  ;;  %v12130_v22 = vpop.f32.mrb[234].mxu1 }
 0xda5   :  { %9360 = vst [vmem:[%s16612_s13 + $0x358] sm:$0xff] %v9359_v18  ;;  %v9355_v11 = vld [vmem:[#allocation2 + $0x348] sm:$0xff]  ;;  %8851 = vst.msk [vmem:[#allocation2 + $0x378] sm:$0xff] %vm136_vm2, %v12130_v22  ;;  %v8759_v55 = vpop.f32.mrb[235].mxu1 }
 0xda6   :  { %9356 = vst [vmem:[%s16612_s13 + $0x348] sm:$0xff] %v9355_v11  ;;  %8849 = vst.msk [vmem:[#allocation2 + $0x368] sm:$0xff] %vm136_vm2, %v8759_v55 }
 0xdaa   :  { %v9365_v33 = vld [vmem:[#allocation2 + $0x370] sm:$0xff]  ;;  %v12133_v48 = vpop.f32.mrb[236].mxu1 }
 0xdab   :  { %9366 = vst [vmem:[%s16612_s13 + $0x370] sm:$0xff] %v9365_v33  ;;  %v9361_v9 = vld [vmem:[#allocation2 + $0x360] sm:$0xff]  ;;  %8854 = vst.msk [vmem:[#allocation2 + $0x390] sm:$0xff] %vm136_vm2, %v12133_v48  ;;  %v8772_v6 = vpop.f32.mrb[237].mxu1 }
 0xdac   :  { %9362 = vst [vmem:[%s16612_s13 + $0x360] sm:$0xff] %v9361_v9  ;;  %v9367_v3 = vld [vmem:[#allocation2 + $0x378] sm:$0xff]  ;;  %8852 = vst.msk [vmem:[#allocation2 + $0x380] sm:$0xff] %vm136_vm2, %v8772_v6  ;;  %v12134_v2 = vpop.f32.mrb[238].mxu1 }
 0xdad   :  { %9368 = vst [vmem:[%s16612_s13 + $0x378] sm:$0xff] %v9367_v3  ;;  %v9363_v19 = vld [vmem:[#allocation2 + $0x368] sm:$0xff]  ;;  %8855 = vst.msk [vmem:[#allocation2 + $0x398] sm:$0xff] %vm136_vm2, %v12134_v2  ;;  %v8775_v29 = vpop.f32.mrb[239].mxu1 }
 0xdae   :  { %9364 = vst [vmem:[%s16612_s13 + $0x368] sm:$0xff] %v9363_v19  ;;  %8853 = vst.msk [vmem:[#allocation2 + $0x388] sm:$0xff] %vm136_vm2, %v8775_v29 }
 0xdb2   :  { %v9373_v23 = vld [vmem:[#allocation2 + $0x390] sm:$0xff]  ;;  %v12137_v47 = vpop.f32.mrb[240].mxu1 }
 0xdb3   :  { %9374 = vst [vmem:[%s16612_s13 + $0x390] sm:$0xff] %v9373_v23  ;;  %v9369_v57 = vld [vmem:[#allocation2 + $0x380] sm:$0xff]  ;;  %8858 = vst.msk [vmem:[#allocation2 + $0x3b0] sm:$0xff] %vm136_vm2, %v12137_v47  ;;  %v8788_v27 = vpop.f32.mrb[241].mxu1 }
 0xdb4   :  { %9370 = vst [vmem:[%s16612_s13 + $0x380] sm:$0xff] %v9369_v57  ;;  %v9375_v10 = vld [vmem:[#allocation2 + $0x398] sm:$0xff]  ;;  %8856 = vst.msk [vmem:[#allocation2 + $0x3a0] sm:$0xff] %vm136_vm2, %v8788_v27  ;;  %v12138_v42 = vpop.f32.mrb[242].mxu1 }
 0xdb5   :  { %9376 = vst [vmem:[%s16612_s13 + $0x398] sm:$0xff] %v9375_v10  ;;  %v9371_v50 = vld [vmem:[#allocation2 + $0x388] sm:$0xff]  ;;  %8859 = vst.msk [vmem:[#allocation2 + $0x3b8] sm:$0xff] %vm136_vm2, %v12138_v42  ;;  %v8791_v43 = vpop.f32.mrb[243].mxu1 }
 0xdb6   :  { %9372 = vst [vmem:[%s16612_s13 + $0x388] sm:$0xff] %v9371_v50  ;;  %8857 = vst.msk [vmem:[#allocation2 + $0x3a8] sm:$0xff] %vm136_vm2, %v8791_v43 }
 0xdba   :  { %v9381_v39 = vld [vmem:[#allocation2 + $0x3b0] sm:$0xff]  ;;  %v12141_v56 = vpop.f32.mrb[244].mxu1 }
 0xdbb   :  { %9382 = vst [vmem:[%s16612_s13 + $0x3b0] sm:$0xff] %v9381_v39  ;;  %v9377_v62 = vld [vmem:[#allocation2 + $0x3a0] sm:$0xff]  ;;  %8862 = vst.msk [vmem:[#allocation2 + $0x3d0] sm:$0xff] %vm136_vm2, %v12141_v56  ;;  %v8804_v17 = vpop.f32.mrb[245].mxu1 }
 0xdbc   :  { %9378 = vst [vmem:[%s16612_s13 + $0x3a0] sm:$0xff] %v9377_v62  ;;  %v9383_v14 = vld [vmem:[#allocation2 + $0x3b8] sm:$0xff]  ;;  %8860 = vst.msk [vmem:[#allocation2 + $0x3c0] sm:$0xff] %vm136_vm2, %v8804_v17  ;;  %v12142_v52 = vpop.f32.mrb[246].mxu1 }
 0xdbd   :  { %9384 = vst [vmem:[%s16612_s13 + $0x3b8] sm:$0xff] %v9383_v14  ;;  %v9379_v60 = vld [vmem:[#allocation2 + $0x3a8] sm:$0xff]  ;;  %8863 = vst.msk [vmem:[#allocation2 + $0x3d8] sm:$0xff] %vm136_vm2, %v12142_v52  ;;  %v8807_v1 = vpop.f32.mrb[247].mxu1 }
 0xdbe   :  { %9380 = vst [vmem:[%s16612_s13 + $0x3a8] sm:$0xff] %v9379_v60  ;;  %8861 = vst.msk [vmem:[#allocation2 + $0x3c8] sm:$0xff] %vm136_vm2, %v8807_v1 }
 0xdc2   :  { %v9389_v0 = vld [vmem:[#allocation2 + $0x3d0] sm:$0xff]  ;;  %v12145_v61 = vpop.f32.mrb[248].mxu1 }
 0xdc3   :  { %9390 = vst [vmem:[%s16612_s13 + $0x3d0] sm:$0xff] %v9389_v0  ;;  %v9385_v35 = vld [vmem:[#allocation2 + $0x3c0] sm:$0xff]  ;;  %v8820_v5 = vpop.f32.mrb[249].mxu1 }
 0xdc4   :  { %9386 = vst [vmem:[%s16612_s13 + $0x3c0] sm:$0xff] %v9385_v35  ;;  %v9391_v58 = vld [vmem:[#allocation2 + $0x3d8] sm:$0xff]  ;;  %8864 = vst.msk [vmem:[#allocation2 + $0x3e0] sm:$0xff] %vm136_vm2, %v8820_v5  ;;  %v12146_v44 = vpop.f32.mrb[250].mxu1 }
 0xdc5   :  { %9392 = vst [vmem:[%s16612_s13 + $0x3d8] sm:$0xff] %v9391_v58  ;;  %v9387_v20 = vld [vmem:[#allocation2 + $0x3c8] sm:$0xff]  ;;  %v8823_v28 = vpop.f32.mrb[251].mxu1 }
 0xdc6   :  { %9388 = vst [vmem:[%s16612_s13 + $0x3c8] sm:$0xff] %v9387_v20 }
 0xdcb   :  { %v9393_v31 = vld [vmem:[#allocation2 + $0x3e0] sm:$0xff] }
 0xdcc   :  { %9394 = vst [vmem:[%s16612_s13 + $0x3e0] sm:$0xff] %v9393_v31 }

</bundles_post_ra>
